<compile_context>
chip_gen: v6e
topology: v6e:2x2x1
jax: 0.10.0
libtpu: 0.0.40
codegen_flags: <defaults>
</compile_context>

<pallas_src>
import math
import functools
import numpy as np

import jax
import jax.numpy as jnp
from jax.experimental import pallas as pl
from jax.experimental.pallas import tpu as pltpu

# ----------------------------- config (small, consistent with the module) ----
B = 2
GRID = 4                        # grid_size
L = GRID * GRID                 # sequence length (16)
X_DIM = 16                      # x_dim
HIDDEN = 64                     # hidden_size
NUM_HEADS = 2
HEAD_DIM = HIDDEN // NUM_HEADS  # 32
DEPTH = 2
NUM_CLASSES = 10
FREQ_EMB = 256                  # TimestepEmbedder frequency_embedding_size
MLP_HIDDEN = 4 * HIDDEN         # mlp_ratio = 4
EPS = 1e-6                      # LayerNorm eps (elementwise_affine=False)


# ----------------------------- BlockSpec helpers ------------------------------
def full_spec(shape):
    """Whole array resident in VMEM, independent of the grid index."""
    n = len(shape)
    return pl.BlockSpec(shape, lambda i, _n=n: (0,) * _n)


def batch_spec(shape):
    """Leading dim indexed by the (batch) grid, rest full."""
    n = len(shape)
    return pl.BlockSpec((1,) + tuple(shape[1:]),
                        lambda i, _n=n: (i,) + (0,) * (_n - 1))


# ----------------------------- in-kernel helpers -------------------------------
def _layernorm(v):
    mu = jnp.mean(v, axis=-1, keepdims=True)
    var = jnp.mean((v - mu) ** 2, axis=-1, keepdims=True)
    return (v - mu) * jax.lax.rsqrt(var + EPS)


def _gelu_tanh(v):
    return 0.5 * v * (1.0 + jnp.tanh(0.7978845608028654 * (v + 0.044715 * v * v * v)))


def _mm(a, w):
    """bf16 x bf16 MXU matmul with f32 accumulation."""
    return jnp.dot(a.astype(jnp.bfloat16), w.astype(jnp.bfloat16),
                   preferred_element_type=jnp.float32)


# ----------------------------- the fused kernel --------------------------------
def fused_dit_kernel(x_t_ref, tf_ref, ye_ref, cosf_ref, sins_ref,
                     wxp_ref, bxp_ref, wt1_ref, bt1_ref, wt2_ref, bt2_ref,
                     wa_ref, ba_ref,
                     wq_ref, bq_ref, wqs_ref, bqs_ref,
                     wk_ref, bk_ref, wks_ref, bks_ref,
                     wv_ref, bv_ref,
                     wo_ref, bo_ref,
                     wm1_ref, bm1_ref, wm2_ref, bm2_ref,
                     wfa_ref, bfa_ref, wf_ref, bf_ref,
                     o_ref, *, depth, num_heads, head_dim):
    # ---- conditioning: c = SiLU-MLP(timestep_embedding(t)) + y_embedding -----
    h = _mm(tf_ref[0], wt1_ref[...]) + bt1_ref[...]          # (1, H)
    h = h * jax.nn.sigmoid(h)                                # SiLU
    c = _mm(h, wt2_ref[...]) + bt2_ref[...] + ye_ref[0]      # (1, H)
    cm = c * jax.nn.sigmoid(c)                               # SiLU(c), shared by all blocks

    # ---- x projection ---------------------------------------------------------
    x = _mm(x_t_ref[0], wxp_ref[...]) + bxp_ref[...]         # (L, H)

    cosf = cosf_ref[...]                                     # (L, head_dim)  [cos, cos]
    sins = sins_ref[...]                                     # (L, head_dim)  [-sin, sin]
    inv_sqrt_d = 1.0 / math.sqrt(head_dim)

    for d in range(depth):
        # adaLN modulation: 6 x (1, H) chunks, one tiny matmul each (no lane slices)
        mods = [_mm(cm, wa_ref[d, k]) + ba_ref[d, k] for k in range(6)]
        shift_msa, scale_msa, gate_msa, shift_mlp, scale_mlp, gate_mlp = mods

        # ---- attention branch -------------------------------------------------
        xn = _layernorm(x) * (1.0 + scale_msa) + shift_msa   # (L, H)
        xnb = xn.astype(jnp.bfloat16)
        attn = jnp.zeros_like(x)
        for hh in range(num_heads):
            q = _mm(xnb, wq_ref[d, hh]) + bq_ref[d, hh]      # (L, hd)
            qs = _mm(xnb, wqs_ref[d, hh]) + bqs_ref[d, hh]   # = swap_halves(q)
            k = _mm(xnb, wk_ref[d, hh]) + bk_ref[d, hh]
            ks = _mm(xnb, wks_ref[d, hh]) + bks_ref[d, hh]   # = swap_halves(k)
            v = _mm(xnb, wv_ref[d, hh]) + bv_ref[d, hh]
            # RoPE (half-split), swap folded into the extra weight copies
            qr = q * cosf + qs * sins
            kr = k * cosf + ks * sins
            s = jax.lax.dot_general(
                qr.astype(jnp.bfloat16), kr.astype(jnp.bfloat16),
                (((1,), (1,)), ((), ())),
                preferred_element_type=jnp.float32) * inv_sqrt_d        # (L, L)
            s = s - jnp.max(s, axis=-1, keepdims=True)
            p = jnp.exp(s)
            p = p * pl.reciprocal(jnp.sum(p, axis=-1, keepdims=True), approx=True)
            o_h = _mm(p, v)                                   # (L, hd)
            attn = attn + _mm(o_h, wo_ref[d, hh])             # head-summed out-proj
        attn = attn + bo_ref[d]
        x = x + gate_msa * attn

        # ---- MLP branch ---------------------------------------------------------
        xn2 = _layernorm(x) * (1.0 + scale_mlp) + shift_mlp
        h1 = _mm(xn2, wm1_ref[d]) + bm1_ref[d]
        h1 = _gelu_tanh(h1)
        x = x + gate_mlp * (_mm(h1, wm2_ref[d]) + bm2_ref[d])

    # ---- final layer ------------------------------------------------------------
    shift_f = _mm(cm, wfa_ref[0]) + bfa_ref[0]
    scale_f = _mm(cm, wfa_ref[1]) + bfa_ref[1]
    xf = _layernorm(x) * (1.0 + scale_f) + shift_f
    o_ref[0] = (_mm(xf, wf_ref[...]) + bf_ref[...]).astype(o_ref.dtype)


# ----------------------------- host wrapper -------------------------------------
def dit_forward_pallas(x_t, y, t, y_table, weights, cos_f, sin_s):
    t_freq = timestep_embedding(t, FREQ_EMB)[:, None, :]      # (B, 1, FREQ_EMB)
    # TODO(synk): label-embedding row gather kept in plain JAX (tiny; no Pallas win here)
    y_emb = y_table[y][:, None, :]                            # (B, 1, H)

    kern = functools.partial(fused_dit_kernel, depth=DEPTH,
                             num_heads=NUM_HEADS, head_dim=HEAD_DIM)
    batch_args = (x_t, t_freq, y_emb)
    const_args = (cos_f, sin_s) + tuple(weights)
    in_specs = ([batch_spec(a.shape) for a in batch_args]
                + [full_spec(a.shape) for a in const_args])
    return pl.pallas_call(
        kern,
        out_shape=jax.ShapeDtypeStruct((B, L, X_DIM), jnp.float32),
        grid=(B,),
        in_specs=in_specs,
        out_specs=batch_spec((B, L, X_DIM)),
        compiler_params=pltpu.CompilerParams(dimension_semantics=("parallel",)),
    )(*batch_args, *const_args)


# ----------------------------- plain-JAX glue ------------------------------------
def timestep_embedding(t, dim, max_period=10000.0):
    half = dim // 2
    freqs = jnp.exp(-math.log(max_period) * jnp.arange(half, dtype=jnp.float32) / half)
    args = t.astype(jnp.float32)[:, None] * freqs[None, :]
    return jnp.concatenate([jnp.cos(args), jnp.sin(args)], axis=-1)   # (B, dim)


def precompute_rope_2d(head_dim, height, width, theta=10000.0):
    # precompute_freqs_cis_2d, returned as (cos, sin) of shape (H*W, head_dim//2)
    quarter = head_dim // 4
    freqs = 1.0 / (theta ** (np.arange(0, head_dim, 4)[:quarter].astype(np.float32) / head_dim))
    th = np.arange(height, dtype=np.float32)
    tw = np.arange(width, dtype=np.float32)
    fh = np.broadcast_to(np.outer(th, freqs)[:, None, :], (height, width, quarter))
    fw = np.broadcast_to(np.outer(tw, freqs)[None, :, :], (height, width, quarter))
    f = np.concatenate([fh, fw], axis=-1).reshape(height * width, head_dim // 2)
    return jnp.asarray(np.cos(f)), jnp.asarray(np.sin(f))


def init_params(key):
    keys = iter(jax.random.split(key, 64))

    def lin(in_d, out_d):
        w = jax.random.normal(next(keys), (in_d, out_d), jnp.float32) * 0.02
        b = jnp.zeros((1, out_d), jnp.float32)
        return w, b

    params = {
        "x_proj": lin(X_DIM, HIDDEN),
        "y_table": jax.random.normal(next(keys), (NUM_CLASSES, HIDDEN), jnp.float32) * 0.02,
        "t_mlp1": lin(FREQ_EMB, HIDDEN),
        "t_mlp2": lin(HIDDEN, HIDDEN),
        "blocks": [],
        "final_ada": lin(HIDDEN, 2 * HIDDEN),
        "final_lin": lin(HIDDEN, X_DIM),
    }
    for _ in range(DEPTH):
        params["blocks"].append((
            *lin(HIDDEN, 6 * HIDDEN),     # adaLN modulation
            *lin(HIDDEN, 3 * HIDDEN),     # qkv
            *lin(HIDDEN, HIDDEN),         # attn out proj
            *lin(HIDDEN, MLP_HIDDEN),     # mlp fc1
            *lin(MLP_HIDDEN, HIDDEN),     # mlp fc2
        ))
    return params


def pack_params(params):
    """Restructure weights for the fused kernel: depth-stacked, per-head split,
    adaLN chunk-split, RoPE half-swap folded into extra q/k weight copies,
    matmul weights cast to bf16 (biases stay f32)."""
    bf = jnp.bfloat16
    H, hd, nh = HIDDEN, HEAD_DIM, NUM_HEADS
    blocks = params["blocks"]

    def swap_cols(w):
        half = w.shape[-1] // 2
        return jnp.concatenate([w[..., half:], w[..., :half]], axis=-1)

    wa = jnp.stack([b[0].reshape(H, 6, H).transpose(1, 0, 2) for b in blocks]).astype(bf)
    ba = jnp.stack([b[1].reshape(6, 1, H) for b in blocks])

    wq = jnp.stack([b[2].reshape(H, 3, nh, hd)[:, 0].transpose(1, 0, 2) for b in blocks]).astype(bf)
    wk = jnp.stack([b[2].reshape(H, 3, nh, hd)[:, 1].transpose(1, 0, 2) for b in blocks]).astype(bf)
    wv = jnp.stack([b[2].reshape(H, 3, nh, hd)[:, 2].transpose(1, 0, 2) for b in blocks]).astype(bf)
    bq = jnp.stack([b[3].reshape(3, nh, 1, hd)[0] for b in blocks])
    bk = jnp.stack([b[3].reshape(3, nh, 1, hd)[1] for b in blocks])
    bv = jnp.stack([b[3].reshape(3, nh, 1, hd)[2] for b in blocks])
    wqs, bqs = swap_cols(wq), swap_cols(bq)
    wks, bks = swap_cols(wk), swap_cols(bk)

    wo = jnp.stack([b[4].reshape(nh, hd, H) for b in blocks]).astype(bf)
    bo = jnp.stack([b[5] for b in blocks])
    wm1 = jnp.stack([b[6] for b in blocks]).astype(bf)
    bm1 = jnp.stack([b[7] for b in blocks])
    wm2 = jnp.stack([b[8] for b in blocks]).astype(bf)
    bm2 = jnp.stack([b[9] for b in blocks])

    wxp, bxp = params["x_proj"]
    wt1, bt1 = params["t_mlp1"]
    wt2, bt2 = params["t_mlp2"]
    wfa_, bfa_ = params["final_ada"]
    wfa = wfa_.reshape(H, 2, H).transpose(1, 0, 2).astype(bf)
    bfa = bfa_.reshape(2, 1, H)
    wf, bfw = params["final_lin"]

    return [wxp.astype(bf), bxp, wt1.astype(bf), bt1, wt2.astype(bf), bt2,
            wa, ba, wq, bq, wqs, bqs, wk, bk, wks, bks, wv, bv,
            wo, bo, wm1, bm1, wm2, bm2, wfa, bfa, wf.astype(bf), bfw]


# ----------------------------- pure-JAX f32 reference ------------------------------
def reference_forward(x_t, y, t, params, cos, sin):
    def ln(v):
        mu = jnp.mean(v, -1, keepdims=True)
        var = jnp.mean((v - mu) ** 2, -1, keepdims=True)
        return (v - mu) * jax.lax.rsqrt(var + EPS)

    w, b = params["x_proj"]
    x = x_t @ w + b
    t_freq = timestep_embedding(t, FREQ_EMB)
    w1, b1 = params["t_mlp1"]
    w2, b2 = params["t_mlp2"]
    te = t_freq @ w1 + b1
    te = te * jax.nn.sigmoid(te)
    te = te @ w2 + b2
    c = te + params["y_table"][y]                                   # (B, H)

    half = HEAD_DIM // 2
    for (wa, ba, wq, bq, wo, bo, wm1, bm1, wm2, bm2) in params["blocks"]:
        cm = c * jax.nn.sigmoid(c)
        mod = cm @ wa + ba[0]
        sm, scm, gm, sp, scp, gp = jnp.split(mod, 6, axis=-1)
        xn = ln(x) * (1 + scm[:, None, :]) + sm[:, None, :]
        qkv = xn @ wq + bq[0]
        q, k, v = jnp.split(qkv, 3, axis=-1)
        sh = lambda z: z.reshape(B, L, NUM_HEADS, HEAD_DIM).transpose(0, 2, 1, 3)
        qh, kh, vh = sh(q), sh(k), sh(v)

        def rope(z):
            z1, z2 = z[..., :half], z[..., half:]
            return jnp.concatenate([z1 * cos - z2 * sin, z1 * sin + z2 * cos], axis=-1)

        qh, kh = rope(qh), rope(kh)
        s = jnp.einsum("bhqd,bhkd->bhqk", qh, kh) / math.sqrt(HEAD_DIM)
        p = jax.nn.softmax(s, axis=-1)
        o = jnp.einsum("bhqk,bhkd->bhqd", p, vh)
        o = o.transpose(0, 2, 1, 3).reshape(B, L, HIDDEN)
        x = x + gm[:, None, :] * (o @ wo + bo[0])

        xn2 = ln(x) * (1 + scp[:, None, :]) + sp[:, None, :]
        h1 = xn2 @ wm1 + bm1[0]
        h1 = 0.5 * h1 * (1 + jnp.tanh(0.7978845608028654 * (h1 + 0.044715 * h1 ** 3)))
        x = x + gp[:, None, :] * (h1 @ wm2 + bm2[0])

    wa, ba = params["final_ada"]
    wl, bl = params["final_lin"]
    cm = c * jax.nn.sigmoid(c)
    mod = cm @ wa + ba[0]
    shf, scl = jnp.split(mod, 2, axis=-1)
    xn = ln(x) * (1 + scl[:, None, :]) + shf[:, None, :]
    return xn @ wl + bl[0]


# ----------------------------- main --------------------------------------------
if __name__ == "__main__":
    key = jax.random.PRNGKey(0)
    k_param, k_x, k_y, k_t = jax.random.split(key, 4)

    params = init_params(k_param)
    weights = pack_params(params)
    x_t = jax.random.normal(k_x, (B, L, X_DIM), jnp.float32)
    y = jax.random.randint(k_y, (B,), 0, NUM_CLASSES)
    t = jax.random.uniform(k_t, (B,), jnp.float32) * 1000.0

    cos, sin = precompute_rope_2d(HEAD_DIM, GRID, GRID)             # (L, hd//2)
    cos_f = jnp.concatenate([cos, cos], axis=-1)                    # (L, hd)
    sin_s = jnp.concatenate([-sin, sin], axis=-1)                   # (L, hd), sign-folded

    fwd = jax.jit(dit_forward_pallas)
    out = jax.block_until_ready(fwd(x_t, y, t, params["y_table"], weights, cos_f, sin_s))
    ref = jax.block_until_ready(reference_forward(x_t, y, t, params, cos, sin))

    assert out.shape == (B, L, X_DIM), out.shape
    max_err = float(jnp.max(jnp.abs(out - ref)))
    # bf16 matmuls vs f32 reference: tolerance loosened accordingly (values ~O(0.2)).
    assert max_err < 2e-2, f"Pallas vs reference mismatch: {max_err}"
    print("KERNEL_OK")
</pallas_src>

<mosaic_0001>
module attributes {stable_mosaic.version = 11 : i64} {
  func.func @fused_dit_kernel(%arg0: i32, %arg1: memref<1x16x16xf32, #tpu.memory_space<vmem>>, %arg2: memref<1x1x256xf32, #tpu.memory_space<vmem>>, %arg3: memref<1x1x64xf32, #tpu.memory_space<vmem>>, %arg4: memref<16x32xf32, #tpu.memory_space<vmem>>, %arg5: memref<16x32xf32, #tpu.memory_space<vmem>>, %arg6: memref<16x64xbf16, #tpu.memory_space<vmem>>, %arg7: memref<1x64xf32, #tpu.memory_space<vmem>>, %arg8: memref<256x64xbf16, #tpu.memory_space<vmem>>, %arg9: memref<1x64xf32, #tpu.memory_space<vmem>>, %arg10: memref<64x64xbf16, #tpu.memory_space<vmem>>, %arg11: memref<1x64xf32, #tpu.memory_space<vmem>>, %arg12: memref<2x6x64x64xbf16, #tpu.memory_space<vmem>>, %arg13: memref<2x6x1x64xf32, #tpu.memory_space<vmem>>, %arg14: memref<2x2x64x32xbf16, #tpu.memory_space<vmem>>, %arg15: memref<2x2x1x32xf32, #tpu.memory_space<vmem>>, %arg16: memref<2x2x64x32xbf16, #tpu.memory_space<vmem>>, %arg17: memref<2x2x1x32xf32, #tpu.memory_space<vmem>>, %arg18: memref<2x2x64x32xbf16, #tpu.memory_space<vmem>>, %arg19: memref<2x2x1x32xf32, #tpu.memory_space<vmem>>, %arg20: memref<2x2x64x32xbf16, #tpu.memory_space<vmem>>, %arg21: memref<2x2x1x32xf32, #tpu.memory_space<vmem>>, %arg22: memref<2x2x64x32xbf16, #tpu.memory_space<vmem>>, %arg23: memref<2x2x1x32xf32, #tpu.memory_space<vmem>>, %arg24: memref<2x2x32x64xbf16, #tpu.memory_space<vmem>>, %arg25: memref<2x1x64xf32, #tpu.memory_space<vmem>>, %arg26: memref<2x64x256xbf16, #tpu.memory_space<vmem>>, %arg27: memref<2x1x256xf32, #tpu.memory_space<vmem>>, %arg28: memref<2x256x64xbf16, #tpu.memory_space<vmem>>, %arg29: memref<2x1x64xf32, #tpu.memory_space<vmem>>, %arg30: memref<2x64x64xbf16, #tpu.memory_space<vmem>>, %arg31: memref<2x1x64xf32, #tpu.memory_space<vmem>>, %arg32: memref<64x16xbf16, #tpu.memory_space<vmem>>, %arg33: memref<1x16xf32, #tpu.memory_space<vmem>>, %arg34: memref<1x16x16xf32, #tpu.memory_space<vmem>>) attributes {dimension_semantics = [#tpu.dimension_semantics<parallel>], iteration_bounds = array<i64: 2>, scalar_prefetch = 0 : i64, scratch_operands = 0 : i64, tpu.core_type = #tpu.core_type<tc>, window_params = [{transform_indices = @transform_0, window_bounds = array<i64: 1, 16, 16>}, {transform_indices = @transform_1, window_bounds = array<i64: 1, 1, 256>}, {transform_indices = @transform_2, window_bounds = array<i64: 1, 1, 64>}, {pipeline_mode = #tpu.pipeline_mode<synchronous>, transform_indices = @transform_3, window_bounds = array<i64: 16, 32>}, {pipeline_mode = #tpu.pipeline_mode<synchronous>, transform_indices = @transform_4, window_bounds = array<i64: 16, 32>}, {pipeline_mode = #tpu.pipeline_mode<synchronous>, transform_indices = @transform_5, window_bounds = array<i64: 16, 64>}, {pipeline_mode = #tpu.pipeline_mode<synchronous>, transform_indices = @transform_6, window_bounds = array<i64: 1, 64>}, {pipeline_mode = #tpu.pipeline_mode<synchronous>, transform_indices = @transform_7, window_bounds = array<i64: 256, 64>}, {pipeline_mode = #tpu.pipeline_mode<synchronous>, transform_indices = @transform_8, window_bounds = array<i64: 1, 64>}, {pipeline_mode = #tpu.pipeline_mode<synchronous>, transform_indices = @transform_9, window_bounds = array<i64: 64, 64>}, {pipeline_mode = #tpu.pipeline_mode<synchronous>, transform_indices = @transform_10, window_bounds = array<i64: 1, 64>}, {pipeline_mode = #tpu.pipeline_mode<synchronous>, transform_indices = @transform_11, window_bounds = array<i64: 2, 6, 64, 64>}, {pipeline_mode = #tpu.pipeline_mode<synchronous>, transform_indices = @transform_12, window_bounds = array<i64: 2, 6, 1, 64>}, {pipeline_mode = #tpu.pipeline_mode<synchronous>, transform_indices = @transform_13, window_bounds = array<i64: 2, 2, 64, 32>}, {pipeline_mode = #tpu.pipeline_mode<synchronous>, transform_indices = @transform_14, window_bounds = array<i64: 2, 2, 1, 32>}, {pipeline_mode = #tpu.pipeline_mode<synchronous>, transform_indices = @transform_15, window_bounds = array<i64: 2, 2, 64, 32>}, {pipeline_mode = #tpu.pipeline_mode<synchronous>, transform_indices = @transform_16, window_bounds = array<i64: 2, 2, 1, 32>}, {pipeline_mode = #tpu.pipeline_mode<synchronous>, transform_indices = @transform_17, window_bounds = array<i64: 2, 2, 64, 32>}, {pipeline_mode = #tpu.pipeline_mode<synchronous>, transform_indices = @transform_18, window_bounds = array<i64: 2, 2, 1, 32>}, {pipeline_mode = #tpu.pipeline_mode<synchronous>, transform_indices = @transform_19, window_bounds = array<i64: 2, 2, 64, 32>}, {pipeline_mode = #tpu.pipeline_mode<synchronous>, transform_indices = @transform_20, window_bounds = array<i64: 2, 2, 1, 32>}, {pipeline_mode = #tpu.pipeline_mode<synchronous>, transform_indices = @transform_21, window_bounds = array<i64: 2, 2, 64, 32>}, {pipeline_mode = #tpu.pipeline_mode<synchronous>, transform_indices = @transform_22, window_bounds = array<i64: 2, 2, 1, 32>}, {pipeline_mode = #tpu.pipeline_mode<synchronous>, transform_indices = @transform_23, window_bounds = array<i64: 2, 2, 32, 64>}, {pipeline_mode = #tpu.pipeline_mode<synchronous>, transform_indices = @transform_24, window_bounds = array<i64: 2, 1, 64>}, {pipeline_mode = #tpu.pipeline_mode<synchronous>, transform_indices = @transform_25, window_bounds = array<i64: 2, 64, 256>}, {pipeline_mode = #tpu.pipeline_mode<synchronous>, transform_indices = @transform_26, window_bounds = array<i64: 2, 1, 256>}, {pipeline_mode = #tpu.pipeline_mode<synchronous>, transform_indices = @transform_27, window_bounds = array<i64: 2, 256, 64>}, {pipeline_mode = #tpu.pipeline_mode<synchronous>, transform_indices = @transform_28, window_bounds = array<i64: 2, 1, 64>}, {pipeline_mode = #tpu.pipeline_mode<synchronous>, transform_indices = @transform_29, window_bounds = array<i64: 2, 64, 64>}, {pipeline_mode = #tpu.pipeline_mode<synchronous>, transform_indices = @transform_30, window_bounds = array<i64: 2, 1, 64>}, {pipeline_mode = #tpu.pipeline_mode<synchronous>, transform_indices = @transform_31, window_bounds = array<i64: 64, 16>}, {pipeline_mode = #tpu.pipeline_mode<synchronous>, transform_indices = @transform_32, window_bounds = array<i64: 1, 16>}, {transform_indices = @transform_33, window_bounds = array<i64: 1, 16, 16>}]} {
    %c0 = arith.constant 0 : index
    %c0_0 = arith.constant 0 : index
    %c0_1 = arith.constant 0 : index
    %0 = vector.load %arg2[%c0, %c0_0, %c0_1] : memref<1x1x256xf32, #tpu.memory_space<vmem>>, vector<1x1x256xf32>
    %1 = vector.shape_cast %0 : vector<1x1x256xf32> to vector<1x256xf32>
    %c0_2 = arith.constant 0 : index
    %c0_3 = arith.constant 0 : index
    %2 = vector.load %arg8[%c0_2, %c0_3] : memref<256x64xbf16, #tpu.memory_space<vmem>>, vector<256x64xbf16>
    %3 = arith.truncf %1 : vector<1x256xf32> to vector<1x256xbf16>
    %cst = arith.constant dense<0.000000e+00> : vector<1x64xf32>
    %4 = tpu.matmul %3, %2, %cst {dimension_numbers = #tpu.dot_dimension_numbers<[1], [0], [0], [1], [0, 0, 1, 1], [], []>} : vector<1x256xbf16>, vector<256x64xbf16>, vector<1x64xf32> -> vector<1x64xf32>
    %c0_4 = arith.constant 0 : index
    %c0_5 = arith.constant 0 : index
    %5 = vector.load %arg9[%c0_4, %c0_5] : memref<1x64xf32, #tpu.memory_space<vmem>>, vector<1x64xf32>
    %6 = arith.addf %4, %5 : vector<1x64xf32>
    %7 = arith.negf %6 : vector<1x64xf32>
    %8 = math.exp %7 : vector<1x64xf32>
    %cst_6 = arith.constant 1.000000e+00 : f32
    %9 = vector.broadcast %cst_6 : f32 to vector<1x64xf32>
    %10 = arith.addf %9, %8 : vector<1x64xf32>
    %11 = arith.divf %9, %10 : vector<1x64xf32>
    %12 = arith.mulf %6, %11 : vector<1x64xf32>
    %c0_7 = arith.constant 0 : index
    %c0_8 = arith.constant 0 : index
    %13 = vector.load %arg10[%c0_7, %c0_8] : memref<64x64xbf16, #tpu.memory_space<vmem>>, vector<64x64xbf16>
    %14 = arith.truncf %12 : vector<1x64xf32> to vector<1x64xbf16>
    %cst_9 = arith.constant dense<0.000000e+00> : vector<1x64xf32>
    %15 = tpu.matmul %14, %13, %cst_9 {dimension_numbers = #tpu.dot_dimension_numbers<[1], [0], [0], [1], [0, 0, 1, 1], [], []>} : vector<1x64xbf16>, vector<64x64xbf16>, vector<1x64xf32> -> vector<1x64xf32>
    %c0_10 = arith.constant 0 : index
    %c0_11 = arith.constant 0 : index
    %16 = vector.load %arg11[%c0_10, %c0_11] : memref<1x64xf32, #tpu.memory_space<vmem>>, vector<1x64xf32>
    %17 = arith.addf %15, %16 : vector<1x64xf32>
    %c0_12 = arith.constant 0 : index
    %c0_13 = arith.constant 0 : index
    %c0_14 = arith.constant 0 : index
    %18 = vector.load %arg3[%c0_12, %c0_13, %c0_14] : memref<1x1x64xf32, #tpu.memory_space<vmem>>, vector<1x1x64xf32>
    %19 = vector.shape_cast %18 : vector<1x1x64xf32> to vector<1x64xf32>
    %20 = arith.addf %17, %19 : vector<1x64xf32>
    %21 = arith.negf %20 : vector<1x64xf32>
    %22 = math.exp %21 : vector<1x64xf32>
    %cst_15 = arith.constant 1.000000e+00 : f32
    %23 = vector.broadcast %cst_15 : f32 to vector<1x64xf32>
    %24 = arith.addf %23, %22 : vector<1x64xf32>
    %25 = arith.divf %23, %24 : vector<1x64xf32>
    %26 = arith.mulf %20, %25 : vector<1x64xf32>
    %c0_16 = arith.constant 0 : index
    %c0_17 = arith.constant 0 : index
    %c0_18 = arith.constant 0 : index
    %27 = vector.load %arg1[%c0_16, %c0_17, %c0_18] : memref<1x16x16xf32, #tpu.memory_space<vmem>>, vector<1x16x16xf32>
    %28 = vector.shape_cast %27 : vector<1x16x16xf32> to vector<16x16xf32>
    %c0_19 = arith.constant 0 : index
    %c0_20 = arith.constant 0 : index
    %29 = vector.load %arg6[%c0_19, %c0_20] : memref<16x64xbf16, #tpu.memory_space<vmem>>, vector<16x64xbf16>
    %30 = arith.truncf %28 : vector<16x16xf32> to vector<16x16xbf16>
    %cst_21 = arith.constant dense<0.000000e+00> : vector<16x64xf32>
    %31 = tpu.matmul %30, %29, %cst_21 {dimension_numbers = #tpu.dot_dimension_numbers<[1], [0], [0], [1], [0, 0, 1, 1], [], []>} : vector<16x16xbf16>, vector<16x64xbf16>, vector<16x64xf32> -> vector<16x64xf32>
    %c0_22 = arith.constant 0 : index
    %c0_23 = arith.constant 0 : index
    %32 = vector.load %arg7[%c0_22, %c0_23] : memref<1x64xf32, #tpu.memory_space<vmem>>, vector<1x64xf32>
    %33 = vector.broadcast %32 : vector<1x64xf32> to vector<16x64xf32>
    %34 = arith.addf %31, %33 : vector<16x64xf32>
    %c0_24 = arith.constant 0 : index
    %c0_25 = arith.constant 0 : index
    %35 = vector.load %arg4[%c0_24, %c0_25] : memref<16x32xf32, #tpu.memory_space<vmem>>, vector<16x32xf32>
    %c0_26 = arith.constant 0 : index
    %c0_27 = arith.constant 0 : index
    %36 = vector.load %arg5[%c0_26, %c0_27] : memref<16x32xf32, #tpu.memory_space<vmem>>, vector<16x32xf32>
    %c0_28 = arith.constant 0 : index
    %c0_29 = arith.constant 0 : index
    %c0_30 = arith.constant 0 : index
    %c0_31 = arith.constant 0 : index
    %37 = vector.load %arg12[%c0_28, %c0_29, %c0_30, %c0_31] : memref<2x6x64x64xbf16, #tpu.memory_space<vmem>>, vector<1x1x64x64xbf16>
    %38 = vector.shape_cast %37 : vector<1x1x64x64xbf16> to vector<64x64xbf16>
    %39 = arith.truncf %26 : vector<1x64xf32> to vector<1x64xbf16>
    %cst_32 = arith.constant dense<0.000000e+00> : vector<1x64xf32>
    %40 = tpu.matmul %39, %38, %cst_32 {dimension_numbers = #tpu.dot_dimension_numbers<[1], [0], [0], [1], [0, 0, 1, 1], [], []>} : vector<1x64xbf16>, vector<64x64xbf16>, vector<1x64xf32> -> vector<1x64xf32>
    %c0_33 = arith.constant 0 : index
    %c0_34 = arith.constant 0 : index
    %c0_35 = arith.constant 0 : index
    %c0_36 = arith.constant 0 : index
    %41 = vector.load %arg13[%c0_33, %c0_34, %c0_35, %c0_36] : memref<2x6x1x64xf32, #tpu.memory_space<vmem>>, vector<1x1x1x64xf32>
    %42 = vector.shape_cast %41 : vector<1x1x1x64xf32> to vector<1x64xf32>
    %43 = arith.addf %40, %42 : vector<1x64xf32>
    %c0_37 = arith.constant 0 : index
    %c1 = arith.constant 1 : index
    %c0_38 = arith.constant 0 : index
    %c0_39 = arith.constant 0 : index
    %44 = vector.load %arg12[%c0_37, %c1, %c0_38, %c0_39] : memref<2x6x64x64xbf16, #tpu.memory_space<vmem>>, vector<1x1x64x64xbf16>
    %45 = vector.shape_cast %44 : vector<1x1x64x64xbf16> to vector<64x64xbf16>
    %46 = arith.truncf %26 : vector<1x64xf32> to vector<1x64xbf16>
    %cst_40 = arith.constant dense<0.000000e+00> : vector<1x64xf32>
    %47 = tpu.matmul %46, %45, %cst_40 {dimension_numbers = #tpu.dot_dimension_numbers<[1], [0], [0], [1], [0, 0, 1, 1], [], []>} : vector<1x64xbf16>, vector<64x64xbf16>, vector<1x64xf32> -> vector<1x64xf32>
    %c0_41 = arith.constant 0 : index
    %c1_42 = arith.constant 1 : index
    %c0_43 = arith.constant 0 : index
    %c0_44 = arith.constant 0 : index
    %48 = vector.load %arg13[%c0_41, %c1_42, %c0_43, %c0_44] : memref<2x6x1x64xf32, #tpu.memory_space<vmem>>, vector<1x1x1x64xf32>
    %49 = vector.shape_cast %48 : vector<1x1x1x64xf32> to vector<1x64xf32>
    %50 = arith.addf %47, %49 : vector<1x64xf32>
    %c0_45 = arith.constant 0 : index
    %c2 = arith.constant 2 : index
    %c0_46 = arith.constant 0 : index
    %c0_47 = arith.constant 0 : index
    %51 = vector.load %arg12[%c0_45, %c2, %c0_46, %c0_47] : memref<2x6x64x64xbf16, #tpu.memory_space<vmem>>, vector<1x1x64x64xbf16>
    %52 = vector.shape_cast %51 : vector<1x1x64x64xbf16> to vector<64x64xbf16>
    %53 = arith.truncf %26 : vector<1x64xf32> to vector<1x64xbf16>
    %cst_48 = arith.constant dense<0.000000e+00> : vector<1x64xf32>
    %54 = tpu.matmul %53, %52, %cst_48 {dimension_numbers = #tpu.dot_dimension_numbers<[1], [0], [0], [1], [0, 0, 1, 1], [], []>} : vector<1x64xbf16>, vector<64x64xbf16>, vector<1x64xf32> -> vector<1x64xf32>
    %c0_49 = arith.constant 0 : index
    %c2_50 = arith.constant 2 : index
    %c0_51 = arith.constant 0 : index
    %c0_52 = arith.constant 0 : index
    %55 = vector.load %arg13[%c0_49, %c2_50, %c0_51, %c0_52] : memref<2x6x1x64xf32, #tpu.memory_space<vmem>>, vector<1x1x1x64xf32>
    %56 = vector.shape_cast %55 : vector<1x1x1x64xf32> to vector<1x64xf32>
    %57 = arith.addf %54, %56 : vector<1x64xf32>
    %c0_53 = arith.constant 0 : index
    %c3 = arith.constant 3 : index
    %c0_54 = arith.constant 0 : index
    %c0_55 = arith.constant 0 : index
    %58 = vector.load %arg12[%c0_53, %c3, %c0_54, %c0_55] : memref<2x6x64x64xbf16, #tpu.memory_space<vmem>>, vector<1x1x64x64xbf16>
    %59 = vector.shape_cast %58 : vector<1x1x64x64xbf16> to vector<64x64xbf16>
    %60 = arith.truncf %26 : vector<1x64xf32> to vector<1x64xbf16>
    %cst_56 = arith.constant dense<0.000000e+00> : vector<1x64xf32>
    %61 = tpu.matmul %60, %59, %cst_56 {dimension_numbers = #tpu.dot_dimension_numbers<[1], [0], [0], [1], [0, 0, 1, 1], [], []>} : vector<1x64xbf16>, vector<64x64xbf16>, vector<1x64xf32> -> vector<1x64xf32>
    %c0_57 = arith.constant 0 : index
    %c3_58 = arith.constant 3 : index
    %c0_59 = arith.constant 0 : index
    %c0_60 = arith.constant 0 : index
    %62 = vector.load %arg13[%c0_57, %c3_58, %c0_59, %c0_60] : memref<2x6x1x64xf32, #tpu.memory_space<vmem>>, vector<1x1x1x64xf32>
    %63 = vector.shape_cast %62 : vector<1x1x1x64xf32> to vector<1x64xf32>
    %64 = arith.addf %61, %63 : vector<1x64xf32>
    %c0_61 = arith.constant 0 : index
    %c4 = arith.constant 4 : index
    %c0_62 = arith.constant 0 : index
    %c0_63 = arith.constant 0 : index
    %65 = vector.load %arg12[%c0_61, %c4, %c0_62, %c0_63] : memref<2x6x64x64xbf16, #tpu.memory_space<vmem>>, vector<1x1x64x64xbf16>
    %66 = vector.shape_cast %65 : vector<1x1x64x64xbf16> to vector<64x64xbf16>
    %67 = arith.truncf %26 : vector<1x64xf32> to vector<1x64xbf16>
    %cst_64 = arith.constant dense<0.000000e+00> : vector<1x64xf32>
    %68 = tpu.matmul %67, %66, %cst_64 {dimension_numbers = #tpu.dot_dimension_numbers<[1], [0], [0], [1], [0, 0, 1, 1], [], []>} : vector<1x64xbf16>, vector<64x64xbf16>, vector<1x64xf32> -> vector<1x64xf32>
    %c0_65 = arith.constant 0 : index
    %c4_66 = arith.constant 4 : index
    %c0_67 = arith.constant 0 : index
    %c0_68 = arith.constant 0 : index
    %69 = vector.load %arg13[%c0_65, %c4_66, %c0_67, %c0_68] : memref<2x6x1x64xf32, #tpu.memory_space<vmem>>, vector<1x1x1x64xf32>
    %70 = vector.shape_cast %69 : vector<1x1x1x64xf32> to vector<1x64xf32>
    %71 = arith.addf %68, %70 : vector<1x64xf32>
    %c0_69 = arith.constant 0 : index
    %c5 = arith.constant 5 : index
    %c0_70 = arith.constant 0 : index
    %c0_71 = arith.constant 0 : index
    %72 = vector.load %arg12[%c0_69, %c5, %c0_70, %c0_71] : memref<2x6x64x64xbf16, #tpu.memory_space<vmem>>, vector<1x1x64x64xbf16>
    %73 = vector.shape_cast %72 : vector<1x1x64x64xbf16> to vector<64x64xbf16>
    %74 = arith.truncf %26 : vector<1x64xf32> to vector<1x64xbf16>
    %cst_72 = arith.constant dense<0.000000e+00> : vector<1x64xf32>
    %75 = tpu.matmul %74, %73, %cst_72 {dimension_numbers = #tpu.dot_dimension_numbers<[1], [0], [0], [1], [0, 0, 1, 1], [], []>} : vector<1x64xbf16>, vector<64x64xbf16>, vector<1x64xf32> -> vector<1x64xf32>
    %c0_73 = arith.constant 0 : index
    %c5_74 = arith.constant 5 : index
    %c0_75 = arith.constant 0 : index
    %c0_76 = arith.constant 0 : index
    %76 = vector.load %arg13[%c0_73, %c5_74, %c0_75, %c0_76] : memref<2x6x1x64xf32, #tpu.memory_space<vmem>>, vector<1x1x1x64xf32>
    %77 = vector.shape_cast %76 : vector<1x1x1x64xf32> to vector<1x64xf32>
    %78 = arith.addf %75, %77 : vector<1x64xf32>
    %cst_77 = arith.constant dense<0.000000e+00> : vector<16xf32>
    %79 = vector.multi_reduction <add>, %34, %cst_77 [1] : vector<16x64xf32> to vector<16xf32>
    %80 = vector.shape_cast %79 : vector<16xf32> to vector<16x1xf32>
    %cst_78 = arith.constant 6.400000e+01 : f32
    %81 = vector.broadcast %cst_78 : f32 to vector<16x1xf32>
    %82 = arith.divf %80, %81 : vector<16x1xf32>
    %83 = vector.broadcast %82 : vector<16x1xf32> to vector<16x64xf32>
    %84 = arith.subf %34, %83 : vector<16x64xf32>
    %85 = arith.mulf %84, %84 : vector<16x64xf32>
    %cst_79 = arith.constant dense<0.000000e+00> : vector<16xf32>
    %86 = vector.multi_reduction <add>, %85, %cst_79 [1] : vector<16x64xf32> to vector<16xf32>
    %87 = vector.shape_cast %86 : vector<16xf32> to vector<16x1xf32>
    %cst_80 = arith.constant 6.400000e+01 : f32
    %88 = vector.broadcast %cst_80 : f32 to vector<16x1xf32>
    %89 = arith.divf %87, %88 : vector<16x1xf32>
    %90 = vector.broadcast %82 : vector<16x1xf32> to vector<16x64xf32>
    %91 = arith.subf %34, %90 : vector<16x64xf32>
    %cst_81 = arith.constant 9.99999997E-7 : f32
    %92 = vector.broadcast %cst_81 : f32 to vector<16x1xf32>
    %93 = arith.addf %89, %92 : vector<16x1xf32>
    %94 = math.rsqrt %93 : vector<16x1xf32>
    %95 = vector.broadcast %94 : vector<16x1xf32> to vector<16x64xf32>
    %96 = arith.mulf %91, %95 : vector<16x64xf32>
    %cst_82 = arith.constant 1.000000e+00 : f32
    %97 = vector.broadcast %cst_82 : f32 to vector<1x64xf32>
    %98 = arith.addf %97, %50 : vector<1x64xf32>
    %99 = vector.broadcast %98 : vector<1x64xf32> to vector<16x64xf32>
    %100 = arith.mulf %96, %99 : vector<16x64xf32>
    %101 = vector.broadcast %43 : vector<1x64xf32> to vector<16x64xf32>
    %102 = arith.addf %100, %101 : vector<16x64xf32>
    %103 = arith.truncf %102 : vector<16x64xf32> to vector<16x64xbf16>
    %cst_83 = arith.constant 0.000000e+00 : f32
    %104 = vector.broadcast %cst_83 : f32 to vector<16x64xf32>
    %c0_84 = arith.constant 0 : index
    %c0_85 = arith.constant 0 : index
    %c0_86 = arith.constant 0 : index
    %c0_87 = arith.constant 0 : index
    %105 = vector.load %arg14[%c0_84, %c0_85, %c0_86, %c0_87] : memref<2x2x64x32xbf16, #tpu.memory_space<vmem>>, vector<1x1x64x32xbf16>
    %106 = vector.shape_cast %105 : vector<1x1x64x32xbf16> to vector<64x32xbf16>
    %cst_88 = arith.constant dense<0.000000e+00> : vector<16x32xf32>
    %107 = tpu.matmul %103, %106, %cst_88 {dimension_numbers = #tpu.dot_dimension_numbers<[1], [0], [0], [1], [0, 0, 1, 1], [], []>} : vector<16x64xbf16>, vector<64x32xbf16>, vector<16x32xf32> -> vector<16x32xf32>
    %c0_89 = arith.constant 0 : index
    %c0_90 = arith.constant 0 : index
    %c0_91 = arith.constant 0 : index
    %c0_92 = arith.constant 0 : index
    %108 = vector.load %arg15[%c0_89, %c0_90, %c0_91, %c0_92] : memref<2x2x1x32xf32, #tpu.memory_space<vmem>>, vector<1x1x1x32xf32>
    %109 = vector.shape_cast %108 : vector<1x1x1x32xf32> to vector<1x32xf32>
    %110 = vector.broadcast %109 : vector<1x32xf32> to vector<16x32xf32>
    %111 = arith.addf %107, %110 : vector<16x32xf32>
    %c0_93 = arith.constant 0 : index
    %c0_94 = arith.constant 0 : index
    %c0_95 = arith.constant 0 : index
    %c0_96 = arith.constant 0 : index
    %112 = vector.load %arg16[%c0_93, %c0_94, %c0_95, %c0_96] : memref<2x2x64x32xbf16, #tpu.memory_space<vmem>>, vector<1x1x64x32xbf16>
    %113 = vector.shape_cast %112 : vector<1x1x64x32xbf16> to vector<64x32xbf16>
    %cst_97 = arith.constant dense<0.000000e+00> : vector<16x32xf32>
    %114 = tpu.matmul %103, %113, %cst_97 {dimension_numbers = #tpu.dot_dimension_numbers<[1], [0], [0], [1], [0, 0, 1, 1], [], []>} : vector<16x64xbf16>, vector<64x32xbf16>, vector<16x32xf32> -> vector<16x32xf32>
    %c0_98 = arith.constant 0 : index
    %c0_99 = arith.constant 0 : index
    %c0_100 = arith.constant 0 : index
    %c0_101 = arith.constant 0 : index
    %115 = vector.load %arg17[%c0_98, %c0_99, %c0_100, %c0_101] : memref<2x2x1x32xf32, #tpu.memory_space<vmem>>, vector<1x1x1x32xf32>
    %116 = vector.shape_cast %115 : vector<1x1x1x32xf32> to vector<1x32xf32>
    %117 = vector.broadcast %116 : vector<1x32xf32> to vector<16x32xf32>
    %118 = arith.addf %114, %117 : vector<16x32xf32>
    %c0_102 = arith.constant 0 : index
    %c0_103 = arith.constant 0 : index
    %c0_104 = arith.constant 0 : index
    %c0_105 = arith.constant 0 : index
    %119 = vector.load %arg18[%c0_102, %c0_103, %c0_104, %c0_105] : memref<2x2x64x32xbf16, #tpu.memory_space<vmem>>, vector<1x1x64x32xbf16>
    %120 = vector.shape_cast %119 : vector<1x1x64x32xbf16> to vector<64x32xbf16>
    %cst_106 = arith.constant dense<0.000000e+00> : vector<16x32xf32>
    %121 = tpu.matmul %103, %120, %cst_106 {dimension_numbers = #tpu.dot_dimension_numbers<[1], [0], [0], [1], [0, 0, 1, 1], [], []>} : vector<16x64xbf16>, vector<64x32xbf16>, vector<16x32xf32> -> vector<16x32xf32>
    %c0_107 = arith.constant 0 : index
    %c0_108 = arith.constant 0 : index
    %c0_109 = arith.constant 0 : index
    %c0_110 = arith.constant 0 : index
    %122 = vector.load %arg19[%c0_107, %c0_108, %c0_109, %c0_110] : memref<2x2x1x32xf32, #tpu.memory_space<vmem>>, vector<1x1x1x32xf32>
    %123 = vector.shape_cast %122 : vector<1x1x1x32xf32> to vector<1x32xf32>
    %124 = vector.broadcast %123 : vector<1x32xf32> to vector<16x32xf32>
    %125 = arith.addf %121, %124 : vector<16x32xf32>
    %c0_111 = arith.constant 0 : index
    %c0_112 = arith.constant 0 : index
    %c0_113 = arith.constant 0 : index
    %c0_114 = arith.constant 0 : index
    %126 = vector.load %arg20[%c0_111, %c0_112, %c0_113, %c0_114] : memref<2x2x64x32xbf16, #tpu.memory_space<vmem>>, vector<1x1x64x32xbf16>
    %127 = vector.shape_cast %126 : vector<1x1x64x32xbf16> to vector<64x32xbf16>
    %cst_115 = arith.constant dense<0.000000e+00> : vector<16x32xf32>
    %128 = tpu.matmul %103, %127, %cst_115 {dimension_numbers = #tpu.dot_dimension_numbers<[1], [0], [0], [1], [0, 0, 1, 1], [], []>} : vector<16x64xbf16>, vector<64x32xbf16>, vector<16x32xf32> -> vector<16x32xf32>
    %c0_116 = arith.constant 0 : index
    %c0_117 = arith.constant 0 : index
    %c0_118 = arith.constant 0 : index
    %c0_119 = arith.constant 0 : index
    %129 = vector.load %arg21[%c0_116, %c0_117, %c0_118, %c0_119] : memref<2x2x1x32xf32, #tpu.memory_space<vmem>>, vector<1x1x1x32xf32>
    %130 = vector.shape_cast %129 : vector<1x1x1x32xf32> to vector<1x32xf32>
    %131 = vector.broadcast %130 : vector<1x32xf32> to vector<16x32xf32>
    %132 = arith.addf %128, %131 : vector<16x32xf32>
    %c0_120 = arith.constant 0 : index
    %c0_121 = arith.constant 0 : index
    %c0_122 = arith.constant 0 : index
    %c0_123 = arith.constant 0 : index
    %133 = vector.load %arg22[%c0_120, %c0_121, %c0_122, %c0_123] : memref<2x2x64x32xbf16, #tpu.memory_space<vmem>>, vector<1x1x64x32xbf16>
    %134 = vector.shape_cast %133 : vector<1x1x64x32xbf16> to vector<64x32xbf16>
    %cst_124 = arith.constant dense<0.000000e+00> : vector<16x32xf32>
    %135 = tpu.matmul %103, %134, %cst_124 {dimension_numbers = #tpu.dot_dimension_numbers<[1], [0], [0], [1], [0, 0, 1, 1], [], []>} : vector<16x64xbf16>, vector<64x32xbf16>, vector<16x32xf32> -> vector<16x32xf32>
    %c0_125 = arith.constant 0 : index
    %c0_126 = arith.constant 0 : index
    %c0_127 = arith.constant 0 : index
    %c0_128 = arith.constant 0 : index
    %136 = vector.load %arg23[%c0_125, %c0_126, %c0_127, %c0_128] : memref<2x2x1x32xf32, #tpu.memory_space<vmem>>, vector<1x1x1x32xf32>
    %137 = vector.shape_cast %136 : vector<1x1x1x32xf32> to vector<1x32xf32>
    %138 = vector.broadcast %137 : vector<1x32xf32> to vector<16x32xf32>
    %139 = arith.addf %135, %138 : vector<16x32xf32>
    %140 = arith.mulf %111, %35 : vector<16x32xf32>
    %141 = arith.mulf %118, %36 : vector<16x32xf32>
    %142 = arith.addf %140, %141 : vector<16x32xf32>
    %143 = arith.mulf %125, %35 : vector<16x32xf32>
    %144 = arith.mulf %132, %36 : vector<16x32xf32>
    %145 = arith.addf %143, %144 : vector<16x32xf32>
    %146 = arith.truncf %142 : vector<16x32xf32> to vector<16x32xbf16>
    %147 = arith.truncf %145 : vector<16x32xf32> to vector<16x32xbf16>
    %cst_129 = arith.constant dense<0.000000e+00> : vector<16x16xf32>
    %148 = tpu.matmul %146, %147, %cst_129 {dimension_numbers = #tpu.dot_dimension_numbers<[1], [1], [0], [0], [0, 0, 1, 0], [], []>} : vector<16x32xbf16>, vector<16x32xbf16>, vector<16x16xf32> -> vector<16x16xf32>
    %cst_130 = arith.constant 0.176776692 : f32
    %149 = vector.broadcast %cst_130 : f32 to vector<16x16xf32>
    %150 = arith.mulf %148, %149 : vector<16x16xf32>
    %cst_131 = arith.constant dense<0xFF800000> : vector<16xf32>
    %151 = vector.multi_reduction <maximumf>, %150, %cst_131 [1] : vector<16x16xf32> to vector<16xf32>
    %152 = vector.shape_cast %151 : vector<16xf32> to vector<16x1xf32>
    %153 = vector.broadcast %152 : vector<16x1xf32> to vector<16x16xf32>
    %154 = arith.subf %150, %153 : vector<16x16xf32>
    %155 = math.exp %154 : vector<16x16xf32>
    %cst_132 = arith.constant dense<0.000000e+00> : vector<16xf32>
    %156 = vector.multi_reduction <add>, %155, %cst_132 [1] : vector<16x16xf32> to vector<16xf32>
    %157 = vector.shape_cast %156 : vector<16xf32> to vector<16x1xf32>
    %158 = tpu.reciprocal %157 {approx = true} : vector<16x1xf32> -> vector<16x1xf32>
    %159 = vector.broadcast %158 : vector<16x1xf32> to vector<16x16xf32>
    %160 = arith.mulf %155, %159 : vector<16x16xf32>
    %161 = arith.truncf %160 : vector<16x16xf32> to vector<16x16xbf16>
    %162 = arith.truncf %139 : vector<16x32xf32> to vector<16x32xbf16>
    %cst_133 = arith.constant dense<0.000000e+00> : vector<16x32xf32>
    %163 = tpu.matmul %161, %162, %cst_133 {dimension_numbers = #tpu.dot_dimension_numbers<[1], [0], [0], [1], [0, 0, 1, 1], [], []>} : vector<16x16xbf16>, vector<16x32xbf16>, vector<16x32xf32> -> vector<16x32xf32>
    %c0_134 = arith.constant 0 : index
    %c0_135 = arith.constant 0 : index
    %c0_136 = arith.constant 0 : index
    %c0_137 = arith.constant 0 : index
    %164 = vector.load %arg24[%c0_134, %c0_135, %c0_136, %c0_137] : memref<2x2x32x64xbf16, #tpu.memory_space<vmem>>, vector<1x1x32x64xbf16>
    %165 = vector.shape_cast %164 : vector<1x1x32x64xbf16> to vector<32x64xbf16>
    %166 = arith.truncf %163 : vector<16x32xf32> to vector<16x32xbf16>
    %cst_138 = arith.constant dense<0.000000e+00> : vector<16x64xf32>
    %167 = tpu.matmul %166, %165, %cst_138 {dimension_numbers = #tpu.dot_dimension_numbers<[1], [0], [0], [1], [0, 0, 1, 1], [], []>} : vector<16x32xbf16>, vector<32x64xbf16>, vector<16x64xf32> -> vector<16x64xf32>
    %168 = arith.addf %104, %167 : vector<16x64xf32>
    %c0_139 = arith.constant 0 : index
    %c1_140 = arith.constant 1 : index
    %c0_141 = arith.constant 0 : index
    %c0_142 = arith.constant 0 : index
    %169 = vector.load %arg14[%c0_139, %c1_140, %c0_141, %c0_142] : memref<2x2x64x32xbf16, #tpu.memory_space<vmem>>, vector<1x1x64x32xbf16>
    %170 = vector.shape_cast %169 : vector<1x1x64x32xbf16> to vector<64x32xbf16>
    %cst_143 = arith.constant dense<0.000000e+00> : vector<16x32xf32>
    %171 = tpu.matmul %103, %170, %cst_143 {dimension_numbers = #tpu.dot_dimension_numbers<[1], [0], [0], [1], [0, 0, 1, 1], [], []>} : vector<16x64xbf16>, vector<64x32xbf16>, vector<16x32xf32> -> vector<16x32xf32>
    %c0_144 = arith.constant 0 : index
    %c1_145 = arith.constant 1 : index
    %c0_146 = arith.constant 0 : index
    %c0_147 = arith.constant 0 : index
    %172 = vector.load %arg15[%c0_144, %c1_145, %c0_146, %c0_147] : memref<2x2x1x32xf32, #tpu.memory_space<vmem>>, vector<1x1x1x32xf32>
    %173 = vector.shape_cast %172 : vector<1x1x1x32xf32> to vector<1x32xf32>
    %174 = vector.broadcast %173 : vector<1x32xf32> to vector<16x32xf32>
    %175 = arith.addf %171, %174 : vector<16x32xf32>
    %c0_148 = arith.constant 0 : index
    %c1_149 = arith.constant 1 : index
    %c0_150 = arith.constant 0 : index
    %c0_151 = arith.constant 0 : index
    %176 = vector.load %arg16[%c0_148, %c1_149, %c0_150, %c0_151] : memref<2x2x64x32xbf16, #tpu.memory_space<vmem>>, vector<1x1x64x32xbf16>
    %177 = vector.shape_cast %176 : vector<1x1x64x32xbf16> to vector<64x32xbf16>
    %cst_152 = arith.constant dense<0.000000e+00> : vector<16x32xf32>
    %178 = tpu.matmul %103, %177, %cst_152 {dimension_numbers = #tpu.dot_dimension_numbers<[1], [0], [0], [1], [0, 0, 1, 1], [], []>} : vector<16x64xbf16>, vector<64x32xbf16>, vector<16x32xf32> -> vector<16x32xf32>
    %c0_153 = arith.constant 0 : index
    %c1_154 = arith.constant 1 : index
    %c0_155 = arith.constant 0 : index
    %c0_156 = arith.constant 0 : index
    %179 = vector.load %arg17[%c0_153, %c1_154, %c0_155, %c0_156] : memref<2x2x1x32xf32, #tpu.memory_space<vmem>>, vector<1x1x1x32xf32>
    %180 = vector.shape_cast %179 : vector<1x1x1x32xf32> to vector<1x32xf32>
    %181 = vector.broadcast %180 : vector<1x32xf32> to vector<16x32xf32>
    %182 = arith.addf %178, %181 : vector<16x32xf32>
    %c0_157 = arith.constant 0 : index
    %c1_158 = arith.constant 1 : index
    %c0_159 = arith.constant 0 : index
    %c0_160 = arith.constant 0 : index
    %183 = vector.load %arg18[%c0_157, %c1_158, %c0_159, %c0_160] : memref<2x2x64x32xbf16, #tpu.memory_space<vmem>>, vector<1x1x64x32xbf16>
    %184 = vector.shape_cast %183 : vector<1x1x64x32xbf16> to vector<64x32xbf16>
    %cst_161 = arith.constant dense<0.000000e+00> : vector<16x32xf32>
    %185 = tpu.matmul %103, %184, %cst_161 {dimension_numbers = #tpu.dot_dimension_numbers<[1], [0], [0], [1], [0, 0, 1, 1], [], []>} : vector<16x64xbf16>, vector<64x32xbf16>, vector<16x32xf32> -> vector<16x32xf32>
    %c0_162 = arith.constant 0 : index
    %c1_163 = arith.constant 1 : index
    %c0_164 = arith.constant 0 : index
    %c0_165 = arith.constant 0 : index
    %186 = vector.load %arg19[%c0_162, %c1_163, %c0_164, %c0_165] : memref<2x2x1x32xf32, #tpu.memory_space<vmem>>, vector<1x1x1x32xf32>
    %187 = vector.shape_cast %186 : vector<1x1x1x32xf32> to vector<1x32xf32>
    %188 = vector.broadcast %187 : vector<1x32xf32> to vector<16x32xf32>
    %189 = arith.addf %185, %188 : vector<16x32xf32>
    %c0_166 = arith.constant 0 : index
    %c1_167 = arith.constant 1 : index
    %c0_168 = arith.constant 0 : index
    %c0_169 = arith.constant 0 : index
    %190 = vector.load %arg20[%c0_166, %c1_167, %c0_168, %c0_169] : memref<2x2x64x32xbf16, #tpu.memory_space<vmem>>, vector<1x1x64x32xbf16>
    %191 = vector.shape_cast %190 : vector<1x1x64x32xbf16> to vector<64x32xbf16>
    %cst_170 = arith.constant dense<0.000000e+00> : vector<16x32xf32>
    %192 = tpu.matmul %103, %191, %cst_170 {dimension_numbers = #tpu.dot_dimension_numbers<[1], [0], [0], [1], [0, 0, 1, 1], [], []>} : vector<16x64xbf16>, vector<64x32xbf16>, vector<16x32xf32> -> vector<16x32xf32>
    %c0_171 = arith.constant 0 : index
    %c1_172 = arith.constant 1 : index
    %c0_173 = arith.constant 0 : index
    %c0_174 = arith.constant 0 : index
    %193 = vector.load %arg21[%c0_171, %c1_172, %c0_173, %c0_174] : memref<2x2x1x32xf32, #tpu.memory_space<vmem>>, vector<1x1x1x32xf32>
    %194 = vector.shape_cast %193 : vector<1x1x1x32xf32> to vector<1x32xf32>
    %195 = vector.broadcast %194 : vector<1x32xf32> to vector<16x32xf32>
    %196 = arith.addf %192, %195 : vector<16x32xf32>
    %c0_175 = arith.constant 0 : index
    %c1_176 = arith.constant 1 : index
    %c0_177 = arith.constant 0 : index
    %c0_178 = arith.constant 0 : index
    %197 = vector.load %arg22[%c0_175, %c1_176, %c0_177, %c0_178] : memref<2x2x64x32xbf16, #tpu.memory_space<vmem>>, vector<1x1x64x32xbf16>
    %198 = vector.shape_cast %197 : vector<1x1x64x32xbf16> to vector<64x32xbf16>
    %cst_179 = arith.constant dense<0.000000e+00> : vector<16x32xf32>
    %199 = tpu.matmul %103, %198, %cst_179 {dimension_numbers = #tpu.dot_dimension_numbers<[1], [0], [0], [1], [0, 0, 1, 1], [], []>} : vector<16x64xbf16>, vector<64x32xbf16>, vector<16x32xf32> -> vector<16x32xf32>
    %c0_180 = arith.constant 0 : index
    %c1_181 = arith.constant 1 : index
    %c0_182 = arith.constant 0 : index
    %c0_183 = arith.constant 0 : index
    %200 = vector.load %arg23[%c0_180, %c1_181, %c0_182, %c0_183] : memref<2x2x1x32xf32, #tpu.memory_space<vmem>>, vector<1x1x1x32xf32>
    %201 = vector.shape_cast %200 : vector<1x1x1x32xf32> to vector<1x32xf32>
    %202 = vector.broadcast %201 : vector<1x32xf32> to vector<16x32xf32>
    %203 = arith.addf %199, %202 : vector<16x32xf32>
    %204 = arith.mulf %175, %35 : vector<16x32xf32>
    %205 = arith.mulf %182, %36 : vector<16x32xf32>
    %206 = arith.addf %204, %205 : vector<16x32xf32>
    %207 = arith.mulf %189, %35 : vector<16x32xf32>
    %208 = arith.mulf %196, %36 : vector<16x32xf32>
    %209 = arith.addf %207, %208 : vector<16x32xf32>
    %210 = arith.truncf %206 : vector<16x32xf32> to vector<16x32xbf16>
    %211 = arith.truncf %209 : vector<16x32xf32> to vector<16x32xbf16>
    %cst_184 = arith.constant dense<0.000000e+00> : vector<16x16xf32>
    %212 = tpu.matmul %210, %211, %cst_184 {dimension_numbers = #tpu.dot_dimension_numbers<[1], [1], [0], [0], [0, 0, 1, 0], [], []>} : vector<16x32xbf16>, vector<16x32xbf16>, vector<16x16xf32> -> vector<16x16xf32>
    %cst_185 = arith.constant 0.176776692 : f32
    %213 = vector.broadcast %cst_185 : f32 to vector<16x16xf32>
    %214 = arith.mulf %212, %213 : vector<16x16xf32>
    %cst_186 = arith.constant dense<0xFF800000> : vector<16xf32>
    %215 = vector.multi_reduction <maximumf>, %214, %cst_186 [1] : vector<16x16xf32> to vector<16xf32>
    %216 = vector.shape_cast %215 : vector<16xf32> to vector<16x1xf32>
    %217 = vector.broadcast %216 : vector<16x1xf32> to vector<16x16xf32>
    %218 = arith.subf %214, %217 : vector<16x16xf32>
    %219 = math.exp %218 : vector<16x16xf32>
    %cst_187 = arith.constant dense<0.000000e+00> : vector<16xf32>
    %220 = vector.multi_reduction <add>, %219, %cst_187 [1] : vector<16x16xf32> to vector<16xf32>
    %221 = vector.shape_cast %220 : vector<16xf32> to vector<16x1xf32>
    %222 = tpu.reciprocal %221 {approx = true} : vector<16x1xf32> -> vector<16x1xf32>
    %223 = vector.broadcast %222 : vector<16x1xf32> to vector<16x16xf32>
    %224 = arith.mulf %219, %223 : vector<16x16xf32>
    %225 = arith.truncf %224 : vector<16x16xf32> to vector<16x16xbf16>
    %226 = arith.truncf %203 : vector<16x32xf32> to vector<16x32xbf16>
    %cst_188 = arith.constant dense<0.000000e+00> : vector<16x32xf32>
    %227 = tpu.matmul %225, %226, %cst_188 {dimension_numbers = #tpu.dot_dimension_numbers<[1], [0], [0], [1], [0, 0, 1, 1], [], []>} : vector<16x16xbf16>, vector<16x32xbf16>, vector<16x32xf32> -> vector<16x32xf32>
    %c0_189 = arith.constant 0 : index
    %c1_190 = arith.constant 1 : index
    %c0_191 = arith.constant 0 : index
    %c0_192 = arith.constant 0 : index
    %228 = vector.load %arg24[%c0_189, %c1_190, %c0_191, %c0_192] : memref<2x2x32x64xbf16, #tpu.memory_space<vmem>>, vector<1x1x32x64xbf16>
    %229 = vector.shape_cast %228 : vector<1x1x32x64xbf16> to vector<32x64xbf16>
    %230 = arith.truncf %227 : vector<16x32xf32> to vector<16x32xbf16>
    %cst_193 = arith.constant dense<0.000000e+00> : vector<16x64xf32>
    %231 = tpu.matmul %230, %229, %cst_193 {dimension_numbers = #tpu.dot_dimension_numbers<[1], [0], [0], [1], [0, 0, 1, 1], [], []>} : vector<16x32xbf16>, vector<32x64xbf16>, vector<16x64xf32> -> vector<16x64xf32>
    %232 = arith.addf %168, %231 : vector<16x64xf32>
    %c0_194 = arith.constant 0 : index
    %c0_195 = arith.constant 0 : index
    %c0_196 = arith.constant 0 : index
    %233 = vector.load %arg25[%c0_194, %c0_195, %c0_196] : memref<2x1x64xf32, #tpu.memory_space<vmem>>, vector<1x1x64xf32>
    %234 = vector.shape_cast %233 : vector<1x1x64xf32> to vector<1x64xf32>
    %235 = vector.broadcast %234 : vector<1x64xf32> to vector<16x64xf32>
    %236 = arith.addf %232, %235 : vector<16x64xf32>
    %237 = vector.broadcast %57 : vector<1x64xf32> to vector<16x64xf32>
    %238 = arith.mulf %237, %236 : vector<16x64xf32>
    %239 = arith.addf %34, %238 : vector<16x64xf32>
    %cst_197 = arith.constant dense<0.000000e+00> : vector<16xf32>
    %240 = vector.multi_reduction <add>, %239, %cst_197 [1] : vector<16x64xf32> to vector<16xf32>
    %241 = vector.shape_cast %240 : vector<16xf32> to vector<16x1xf32>
    %cst_198 = arith.constant 6.400000e+01 : f32
    %242 = vector.broadcast %cst_198 : f32 to vector<16x1xf32>
    %243 = arith.divf %241, %242 : vector<16x1xf32>
    %244 = vector.broadcast %243 : vector<16x1xf32> to vector<16x64xf32>
    %245 = arith.subf %239, %244 : vector<16x64xf32>
    %246 = arith.mulf %245, %245 : vector<16x64xf32>
    %cst_199 = arith.constant dense<0.000000e+00> : vector<16xf32>
    %247 = vector.multi_reduction <add>, %246, %cst_199 [1] : vector<16x64xf32> to vector<16xf32>
    %248 = vector.shape_cast %247 : vector<16xf32> to vector<16x1xf32>
    %cst_200 = arith.constant 6.400000e+01 : f32
    %249 = vector.broadcast %cst_200 : f32 to vector<16x1xf32>
    %250 = arith.divf %248, %249 : vector<16x1xf32>
    %251 = vector.broadcast %243 : vector<16x1xf32> to vector<16x64xf32>
    %252 = arith.subf %239, %251 : vector<16x64xf32>
    %cst_201 = arith.constant 9.99999997E-7 : f32
    %253 = vector.broadcast %cst_201 : f32 to vector<16x1xf32>
    %254 = arith.addf %250, %253 : vector<16x1xf32>
    %255 = math.rsqrt %254 : vector<16x1xf32>
    %256 = vector.broadcast %255 : vector<16x1xf32> to vector<16x64xf32>
    %257 = arith.mulf %252, %256 : vector<16x64xf32>
    %cst_202 = arith.constant 1.000000e+00 : f32
    %258 = vector.broadcast %cst_202 : f32 to vector<1x64xf32>
    %259 = arith.addf %258, %71 : vector<1x64xf32>
    %260 = vector.broadcast %259 : vector<1x64xf32> to vector<16x64xf32>
    %261 = arith.mulf %257, %260 : vector<16x64xf32>
    %262 = vector.broadcast %64 : vector<1x64xf32> to vector<16x64xf32>
    %263 = arith.addf %261, %262 : vector<16x64xf32>
    %c0_203 = arith.constant 0 : index
    %c0_204 = arith.constant 0 : index
    %c0_205 = arith.constant 0 : index
    %264 = vector.load %arg26[%c0_203, %c0_204, %c0_205] : memref<2x64x256xbf16, #tpu.memory_space<vmem>>, vector<1x64x256xbf16>
    %265 = vector.shape_cast %264 : vector<1x64x256xbf16> to vector<64x256xbf16>
    %266 = arith.truncf %263 : vector<16x64xf32> to vector<16x64xbf16>
    %cst_206 = arith.constant dense<0.000000e+00> : vector<16x256xf32>
    %267 = tpu.matmul %266, %265, %cst_206 {dimension_numbers = #tpu.dot_dimension_numbers<[1], [0], [0], [1], [0, 0, 1, 1], [], []>} : vector<16x64xbf16>, vector<64x256xbf16>, vector<16x256xf32> -> vector<16x256xf32>
    %c0_207 = arith.constant 0 : index
    %c0_208 = arith.constant 0 : index
    %c0_209 = arith.constant 0 : index
    %268 = vector.load %arg27[%c0_207, %c0_208, %c0_209] : memref<2x1x256xf32, #tpu.memory_space<vmem>>, vector<1x1x256xf32>
    %269 = vector.shape_cast %268 : vector<1x1x256xf32> to vector<1x256xf32>
    %270 = vector.broadcast %269 : vector<1x256xf32> to vector<16x256xf32>
    %271 = arith.addf %267, %270 : vector<16x256xf32>
    %cst_210 = arith.constant 5.000000e-01 : f32
    %272 = vector.broadcast %cst_210 : f32 to vector<16x256xf32>
    %273 = arith.mulf %272, %271 : vector<16x256xf32>
    %cst_211 = arith.constant 4.471500e-02 : f32
    %274 = vector.broadcast %cst_211 : f32 to vector<16x256xf32>
    %275 = arith.mulf %274, %271 : vector<16x256xf32>
    %276 = arith.mulf %275, %271 : vector<16x256xf32>
    %277 = arith.mulf %276, %271 : vector<16x256xf32>
    %278 = arith.addf %271, %277 : vector<16x256xf32>
    %cst_212 = arith.constant 0.797884583 : f32
    %279 = vector.broadcast %cst_212 : f32 to vector<16x256xf32>
    %280 = arith.mulf %279, %278 : vector<16x256xf32>
    %281 = math.tanh %280 : vector<16x256xf32>
    %cst_213 = arith.constant 1.000000e+00 : f32
    %282 = vector.broadcast %cst_213 : f32 to vector<16x256xf32>
    %283 = arith.addf %282, %281 : vector<16x256xf32>
    %284 = arith.mulf %273, %283 : vector<16x256xf32>
    %c0_214 = arith.constant 0 : index
    %c0_215 = arith.constant 0 : index
    %c0_216 = arith.constant 0 : index
    %285 = vector.load %arg28[%c0_214, %c0_215, %c0_216] : memref<2x256x64xbf16, #tpu.memory_space<vmem>>, vector<1x256x64xbf16>
    %286 = vector.shape_cast %285 : vector<1x256x64xbf16> to vector<256x64xbf16>
    %287 = arith.truncf %284 : vector<16x256xf32> to vector<16x256xbf16>
    %cst_217 = arith.constant dense<0.000000e+00> : vector<16x64xf32>
    %288 = tpu.matmul %287, %286, %cst_217 {dimension_numbers = #tpu.dot_dimension_numbers<[1], [0], [0], [1], [0, 0, 1, 1], [], []>} : vector<16x256xbf16>, vector<256x64xbf16>, vector<16x64xf32> -> vector<16x64xf32>
    %c0_218 = arith.constant 0 : index
    %c0_219 = arith.constant 0 : index
    %c0_220 = arith.constant 0 : index
    %289 = vector.load %arg29[%c0_218, %c0_219, %c0_220] : memref<2x1x64xf32, #tpu.memory_space<vmem>>, vector<1x1x64xf32>
    %290 = vector.shape_cast %289 : vector<1x1x64xf32> to vector<1x64xf32>
    %291 = vector.broadcast %290 : vector<1x64xf32> to vector<16x64xf32>
    %292 = arith.addf %288, %291 : vector<16x64xf32>
    %293 = vector.broadcast %78 : vector<1x64xf32> to vector<16x64xf32>
    %294 = arith.mulf %293, %292 : vector<16x64xf32>
    %295 = arith.addf %239, %294 : vector<16x64xf32>
    %c1_221 = arith.constant 1 : index
    %c0_222 = arith.constant 0 : index
    %c0_223 = arith.constant 0 : index
    %c0_224 = arith.constant 0 : index
    %296 = vector.load %arg12[%c1_221, %c0_222, %c0_223, %c0_224] : memref<2x6x64x64xbf16, #tpu.memory_space<vmem>>, vector<1x1x64x64xbf16>
    %297 = vector.shape_cast %296 : vector<1x1x64x64xbf16> to vector<64x64xbf16>
    %298 = arith.truncf %26 : vector<1x64xf32> to vector<1x64xbf16>
    %cst_225 = arith.constant dense<0.000000e+00> : vector<1x64xf32>
    %299 = tpu.matmul %298, %297, %cst_225 {dimension_numbers = #tpu.dot_dimension_numbers<[1], [0], [0], [1], [0, 0, 1, 1], [], []>} : vector<1x64xbf16>, vector<64x64xbf16>, vector<1x64xf32> -> vector<1x64xf32>
    %c1_226 = arith.constant 1 : index
    %c0_227 = arith.constant 0 : index
    %c0_228 = arith.constant 0 : index
    %c0_229 = arith.constant 0 : index
    %300 = vector.load %arg13[%c1_226, %c0_227, %c0_228, %c0_229] : memref<2x6x1x64xf32, #tpu.memory_space<vmem>>, vector<1x1x1x64xf32>
    %301 = vector.shape_cast %300 : vector<1x1x1x64xf32> to vector<1x64xf32>
    %302 = arith.addf %299, %301 : vector<1x64xf32>
    %c1_230 = arith.constant 1 : index
    %c1_231 = arith.constant 1 : index
    %c0_232 = arith.constant 0 : index
    %c0_233 = arith.constant 0 : index
    %303 = vector.load %arg12[%c1_230, %c1_231, %c0_232, %c0_233] : memref<2x6x64x64xbf16, #tpu.memory_space<vmem>>, vector<1x1x64x64xbf16>
    %304 = vector.shape_cast %303 : vector<1x1x64x64xbf16> to vector<64x64xbf16>
    %305 = arith.truncf %26 : vector<1x64xf32> to vector<1x64xbf16>
    %cst_234 = arith.constant dense<0.000000e+00> : vector<1x64xf32>
    %306 = tpu.matmul %305, %304, %cst_234 {dimension_numbers = #tpu.dot_dimension_numbers<[1], [0], [0], [1], [0, 0, 1, 1], [], []>} : vector<1x64xbf16>, vector<64x64xbf16>, vector<1x64xf32> -> vector<1x64xf32>
    %c1_235 = arith.constant 1 : index
    %c1_236 = arith.constant 1 : index
    %c0_237 = arith.constant 0 : index
    %c0_238 = arith.constant 0 : index
    %307 = vector.load %arg13[%c1_235, %c1_236, %c0_237, %c0_238] : memref<2x6x1x64xf32, #tpu.memory_space<vmem>>, vector<1x1x1x64xf32>
    %308 = vector.shape_cast %307 : vector<1x1x1x64xf32> to vector<1x64xf32>
    %309 = arith.addf %306, %308 : vector<1x64xf32>
    %c1_239 = arith.constant 1 : index
    %c2_240 = arith.constant 2 : index
    %c0_241 = arith.constant 0 : index
    %c0_242 = arith.constant 0 : index
    %310 = vector.load %arg12[%c1_239, %c2_240, %c0_241, %c0_242] : memref<2x6x64x64xbf16, #tpu.memory_space<vmem>>, vector<1x1x64x64xbf16>
    %311 = vector.shape_cast %310 : vector<1x1x64x64xbf16> to vector<64x64xbf16>
    %312 = arith.truncf %26 : vector<1x64xf32> to vector<1x64xbf16>
    %cst_243 = arith.constant dense<0.000000e+00> : vector<1x64xf32>
    %313 = tpu.matmul %312, %311, %cst_243 {dimension_numbers = #tpu.dot_dimension_numbers<[1], [0], [0], [1], [0, 0, 1, 1], [], []>} : vector<1x64xbf16>, vector<64x64xbf16>, vector<1x64xf32> -> vector<1x64xf32>
    %c1_244 = arith.constant 1 : index
    %c2_245 = arith.constant 2 : index
    %c0_246 = arith.constant 0 : index
    %c0_247 = arith.constant 0 : index
    %314 = vector.load %arg13[%c1_244, %c2_245, %c0_246, %c0_247] : memref<2x6x1x64xf32, #tpu.memory_space<vmem>>, vector<1x1x1x64xf32>
    %315 = vector.shape_cast %314 : vector<1x1x1x64xf32> to vector<1x64xf32>
    %316 = arith.addf %313, %315 : vector<1x64xf32>
    %c1_248 = arith.constant 1 : index
    %c3_249 = arith.constant 3 : index
    %c0_250 = arith.constant 0 : index
    %c0_251 = arith.constant 0 : index
    %317 = vector.load %arg12[%c1_248, %c3_249, %c0_250, %c0_251] : memref<2x6x64x64xbf16, #tpu.memory_space<vmem>>, vector<1x1x64x64xbf16>
    %318 = vector.shape_cast %317 : vector<1x1x64x64xbf16> to vector<64x64xbf16>
    %319 = arith.truncf %26 : vector<1x64xf32> to vector<1x64xbf16>
    %cst_252 = arith.constant dense<0.000000e+00> : vector<1x64xf32>
    %320 = tpu.matmul %319, %318, %cst_252 {dimension_numbers = #tpu.dot_dimension_numbers<[1], [0], [0], [1], [0, 0, 1, 1], [], []>} : vector<1x64xbf16>, vector<64x64xbf16>, vector<1x64xf32> -> vector<1x64xf32>
    %c1_253 = arith.constant 1 : index
    %c3_254 = arith.constant 3 : index
    %c0_255 = arith.constant 0 : index
    %c0_256 = arith.constant 0 : index
    %321 = vector.load %arg13[%c1_253, %c3_254, %c0_255, %c0_256] : memref<2x6x1x64xf32, #tpu.memory_space<vmem>>, vector<1x1x1x64xf32>
    %322 = vector.shape_cast %321 : vector<1x1x1x64xf32> to vector<1x64xf32>
    %323 = arith.addf %320, %322 : vector<1x64xf32>
    %c1_257 = arith.constant 1 : index
    %c4_258 = arith.constant 4 : index
    %c0_259 = arith.constant 0 : index
    %c0_260 = arith.constant 0 : index
    %324 = vector.load %arg12[%c1_257, %c4_258, %c0_259, %c0_260] : memref<2x6x64x64xbf16, #tpu.memory_space<vmem>>, vector<1x1x64x64xbf16>
    %325 = vector.shape_cast %324 : vector<1x1x64x64xbf16> to vector<64x64xbf16>
    %326 = arith.truncf %26 : vector<1x64xf32> to vector<1x64xbf16>
    %cst_261 = arith.constant dense<0.000000e+00> : vector<1x64xf32>
    %327 = tpu.matmul %326, %325, %cst_261 {dimension_numbers = #tpu.dot_dimension_numbers<[1], [0], [0], [1], [0, 0, 1, 1], [], []>} : vector<1x64xbf16>, vector<64x64xbf16>, vector<1x64xf32> -> vector<1x64xf32>
    %c1_262 = arith.constant 1 : index
    %c4_263 = arith.constant 4 : index
    %c0_264 = arith.constant 0 : index
    %c0_265 = arith.constant 0 : index
    %328 = vector.load %arg13[%c1_262, %c4_263, %c0_264, %c0_265] : memref<2x6x1x64xf32, #tpu.memory_space<vmem>>, vector<1x1x1x64xf32>
    %329 = vector.shape_cast %328 : vector<1x1x1x64xf32> to vector<1x64xf32>
    %330 = arith.addf %327, %329 : vector<1x64xf32>
    %c1_266 = arith.constant 1 : index
    %c5_267 = arith.constant 5 : index
    %c0_268 = arith.constant 0 : index
    %c0_269 = arith.constant 0 : index
    %331 = vector.load %arg12[%c1_266, %c5_267, %c0_268, %c0_269] : memref<2x6x64x64xbf16, #tpu.memory_space<vmem>>, vector<1x1x64x64xbf16>
    %332 = vector.shape_cast %331 : vector<1x1x64x64xbf16> to vector<64x64xbf16>
    %333 = arith.truncf %26 : vector<1x64xf32> to vector<1x64xbf16>
    %cst_270 = arith.constant dense<0.000000e+00> : vector<1x64xf32>
    %334 = tpu.matmul %333, %332, %cst_270 {dimension_numbers = #tpu.dot_dimension_numbers<[1], [0], [0], [1], [0, 0, 1, 1], [], []>} : vector<1x64xbf16>, vector<64x64xbf16>, vector<1x64xf32> -> vector<1x64xf32>
    %c1_271 = arith.constant 1 : index
    %c5_272 = arith.constant 5 : index
    %c0_273 = arith.constant 0 : index
    %c0_274 = arith.constant 0 : index
    %335 = vector.load %arg13[%c1_271, %c5_272, %c0_273, %c0_274] : memref<2x6x1x64xf32, #tpu.memory_space<vmem>>, vector<1x1x1x64xf32>
    %336 = vector.shape_cast %335 : vector<1x1x1x64xf32> to vector<1x64xf32>
    %337 = arith.addf %334, %336 : vector<1x64xf32>
    %cst_275 = arith.constant dense<0.000000e+00> : vector<16xf32>
    %338 = vector.multi_reduction <add>, %295, %cst_275 [1] : vector<16x64xf32> to vector<16xf32>
    %339 = vector.shape_cast %338 : vector<16xf32> to vector<16x1xf32>
    %cst_276 = arith.constant 6.400000e+01 : f32
    %340 = vector.broadcast %cst_276 : f32 to vector<16x1xf32>
    %341 = arith.divf %339, %340 : vector<16x1xf32>
    %342 = vector.broadcast %341 : vector<16x1xf32> to vector<16x64xf32>
    %343 = arith.subf %295, %342 : vector<16x64xf32>
    %344 = arith.mulf %343, %343 : vector<16x64xf32>
    %cst_277 = arith.constant dense<0.000000e+00> : vector<16xf32>
    %345 = vector.multi_reduction <add>, %344, %cst_277 [1] : vector<16x64xf32> to vector<16xf32>
    %346 = vector.shape_cast %345 : vector<16xf32> to vector<16x1xf32>
    %cst_278 = arith.constant 6.400000e+01 : f32
    %347 = vector.broadcast %cst_278 : f32 to vector<16x1xf32>
    %348 = arith.divf %346, %347 : vector<16x1xf32>
    %349 = vector.broadcast %341 : vector<16x1xf32> to vector<16x64xf32>
    %350 = arith.subf %295, %349 : vector<16x64xf32>
    %cst_279 = arith.constant 9.99999997E-7 : f32
    %351 = vector.broadcast %cst_279 : f32 to vector<16x1xf32>
    %352 = arith.addf %348, %351 : vector<16x1xf32>
    %353 = math.rsqrt %352 : vector<16x1xf32>
    %354 = vector.broadcast %353 : vector<16x1xf32> to vector<16x64xf32>
    %355 = arith.mulf %350, %354 : vector<16x64xf32>
    %cst_280 = arith.constant 1.000000e+00 : f32
    %356 = vector.broadcast %cst_280 : f32 to vector<1x64xf32>
    %357 = arith.addf %356, %309 : vector<1x64xf32>
    %358 = vector.broadcast %357 : vector<1x64xf32> to vector<16x64xf32>
    %359 = arith.mulf %355, %358 : vector<16x64xf32>
    %360 = vector.broadcast %302 : vector<1x64xf32> to vector<16x64xf32>
    %361 = arith.addf %359, %360 : vector<16x64xf32>
    %362 = arith.truncf %361 : vector<16x64xf32> to vector<16x64xbf16>
    %cst_281 = arith.constant 0.000000e+00 : f32
    %363 = vector.broadcast %cst_281 : f32 to vector<16x64xf32>
    %c1_282 = arith.constant 1 : index
    %c0_283 = arith.constant 0 : index
    %c0_284 = arith.constant 0 : index
    %c0_285 = arith.constant 0 : index
    %364 = vector.load %arg14[%c1_282, %c0_283, %c0_284, %c0_285] : memref<2x2x64x32xbf16, #tpu.memory_space<vmem>>, vector<1x1x64x32xbf16>
    %365 = vector.shape_cast %364 : vector<1x1x64x32xbf16> to vector<64x32xbf16>
    %cst_286 = arith.constant dense<0.000000e+00> : vector<16x32xf32>
    %366 = tpu.matmul %362, %365, %cst_286 {dimension_numbers = #tpu.dot_dimension_numbers<[1], [0], [0], [1], [0, 0, 1, 1], [], []>} : vector<16x64xbf16>, vector<64x32xbf16>, vector<16x32xf32> -> vector<16x32xf32>
    %c1_287 = arith.constant 1 : index
    %c0_288 = arith.constant 0 : index
    %c0_289 = arith.constant 0 : index
    %c0_290 = arith.constant 0 : index
    %367 = vector.load %arg15[%c1_287, %c0_288, %c0_289, %c0_290] : memref<2x2x1x32xf32, #tpu.memory_space<vmem>>, vector<1x1x1x32xf32>
    %368 = vector.shape_cast %367 : vector<1x1x1x32xf32> to vector<1x32xf32>
    %369 = vector.broadcast %368 : vector<1x32xf32> to vector<16x32xf32>
    %370 = arith.addf %366, %369 : vector<16x32xf32>
    %c1_291 = arith.constant 1 : index
    %c0_292 = arith.constant 0 : index
    %c0_293 = arith.constant 0 : index
    %c0_294 = arith.constant 0 : index
    %371 = vector.load %arg16[%c1_291, %c0_292, %c0_293, %c0_294] : memref<2x2x64x32xbf16, #tpu.memory_space<vmem>>, vector<1x1x64x32xbf16>
    %372 = vector.shape_cast %371 : vector<1x1x64x32xbf16> to vector<64x32xbf16>
    %cst_295 = arith.constant dense<0.000000e+00> : vector<16x32xf32>
    %373 = tpu.matmul %362, %372, %cst_295 {dimension_numbers = #tpu.dot_dimension_numbers<[1], [0], [0], [1], [0, 0, 1, 1], [], []>} : vector<16x64xbf16>, vector<64x32xbf16>, vector<16x32xf32> -> vector<16x32xf32>
    %c1_296 = arith.constant 1 : index
    %c0_297 = arith.constant 0 : index
    %c0_298 = arith.constant 0 : index
    %c0_299 = arith.constant 0 : index
    %374 = vector.load %arg17[%c1_296, %c0_297, %c0_298, %c0_299] : memref<2x2x1x32xf32, #tpu.memory_space<vmem>>, vector<1x1x1x32xf32>
    %375 = vector.shape_cast %374 : vector<1x1x1x32xf32> to vector<1x32xf32>
    %376 = vector.broadcast %375 : vector<1x32xf32> to vector<16x32xf32>
    %377 = arith.addf %373, %376 : vector<16x32xf32>
    %c1_300 = arith.constant 1 : index
    %c0_301 = arith.constant 0 : index
    %c0_302 = arith.constant 0 : index
    %c0_303 = arith.constant 0 : index
    %378 = vector.load %arg18[%c1_300, %c0_301, %c0_302, %c0_303] : memref<2x2x64x32xbf16, #tpu.memory_space<vmem>>, vector<1x1x64x32xbf16>
    %379 = vector.shape_cast %378 : vector<1x1x64x32xbf16> to vector<64x32xbf16>
    %cst_304 = arith.constant dense<0.000000e+00> : vector<16x32xf32>
    %380 = tpu.matmul %362, %379, %cst_304 {dimension_numbers = #tpu.dot_dimension_numbers<[1], [0], [0], [1], [0, 0, 1, 1], [], []>} : vector<16x64xbf16>, vector<64x32xbf16>, vector<16x32xf32> -> vector<16x32xf32>
    %c1_305 = arith.constant 1 : index
    %c0_306 = arith.constant 0 : index
    %c0_307 = arith.constant 0 : index
    %c0_308 = arith.constant 0 : index
    %381 = vector.load %arg19[%c1_305, %c0_306, %c0_307, %c0_308] : memref<2x2x1x32xf32, #tpu.memory_space<vmem>>, vector<1x1x1x32xf32>
    %382 = vector.shape_cast %381 : vector<1x1x1x32xf32> to vector<1x32xf32>
    %383 = vector.broadcast %382 : vector<1x32xf32> to vector<16x32xf32>
    %384 = arith.addf %380, %383 : vector<16x32xf32>
    %c1_309 = arith.constant 1 : index
    %c0_310 = arith.constant 0 : index
    %c0_311 = arith.constant 0 : index
    %c0_312 = arith.constant 0 : index
    %385 = vector.load %arg20[%c1_309, %c0_310, %c0_311, %c0_312] : memref<2x2x64x32xbf16, #tpu.memory_space<vmem>>, vector<1x1x64x32xbf16>
    %386 = vector.shape_cast %385 : vector<1x1x64x32xbf16> to vector<64x32xbf16>
    %cst_313 = arith.constant dense<0.000000e+00> : vector<16x32xf32>
    %387 = tpu.matmul %362, %386, %cst_313 {dimension_numbers = #tpu.dot_dimension_numbers<[1], [0], [0], [1], [0, 0, 1, 1], [], []>} : vector<16x64xbf16>, vector<64x32xbf16>, vector<16x32xf32> -> vector<16x32xf32>
    %c1_314 = arith.constant 1 : index
    %c0_315 = arith.constant 0 : index
    %c0_316 = arith.constant 0 : index
    %c0_317 = arith.constant 0 : index
    %388 = vector.load %arg21[%c1_314, %c0_315, %c0_316, %c0_317] : memref<2x2x1x32xf32, #tpu.memory_space<vmem>>, vector<1x1x1x32xf32>
    %389 = vector.shape_cast %388 : vector<1x1x1x32xf32> to vector<1x32xf32>
    %390 = vector.broadcast %389 : vector<1x32xf32> to vector<16x32xf32>
    %391 = arith.addf %387, %390 : vector<16x32xf32>
    %c1_318 = arith.constant 1 : index
    %c0_319 = arith.constant 0 : index
    %c0_320 = arith.constant 0 : index
    %c0_321 = arith.constant 0 : index
    %392 = vector.load %arg22[%c1_318, %c0_319, %c0_320, %c0_321] : memref<2x2x64x32xbf16, #tpu.memory_space<vmem>>, vector<1x1x64x32xbf16>
    %393 = vector.shape_cast %392 : vector<1x1x64x32xbf16> to vector<64x32xbf16>
    %cst_322 = arith.constant dense<0.000000e+00> : vector<16x32xf32>
    %394 = tpu.matmul %362, %393, %cst_322 {dimension_numbers = #tpu.dot_dimension_numbers<[1], [0], [0], [1], [0, 0, 1, 1], [], []>} : vector<16x64xbf16>, vector<64x32xbf16>, vector<16x32xf32> -> vector<16x32xf32>
    %c1_323 = arith.constant 1 : index
    %c0_324 = arith.constant 0 : index
    %c0_325 = arith.constant 0 : index
    %c0_326 = arith.constant 0 : index
    %395 = vector.load %arg23[%c1_323, %c0_324, %c0_325, %c0_326] : memref<2x2x1x32xf32, #tpu.memory_space<vmem>>, vector<1x1x1x32xf32>
    %396 = vector.shape_cast %395 : vector<1x1x1x32xf32> to vector<1x32xf32>
    %397 = vector.broadcast %396 : vector<1x32xf32> to vector<16x32xf32>
    %398 = arith.addf %394, %397 : vector<16x32xf32>
    %399 = arith.mulf %370, %35 : vector<16x32xf32>
    %400 = arith.mulf %377, %36 : vector<16x32xf32>
    %401 = arith.addf %399, %400 : vector<16x32xf32>
    %402 = arith.mulf %384, %35 : vector<16x32xf32>
    %403 = arith.mulf %391, %36 : vector<16x32xf32>
    %404 = arith.addf %402, %403 : vector<16x32xf32>
    %405 = arith.truncf %401 : vector<16x32xf32> to vector<16x32xbf16>
    %406 = arith.truncf %404 : vector<16x32xf32> to vector<16x32xbf16>
    %cst_327 = arith.constant dense<0.000000e+00> : vector<16x16xf32>
    %407 = tpu.matmul %405, %406, %cst_327 {dimension_numbers = #tpu.dot_dimension_numbers<[1], [1], [0], [0], [0, 0, 1, 0], [], []>} : vector<16x32xbf16>, vector<16x32xbf16>, vector<16x16xf32> -> vector<16x16xf32>
    %cst_328 = arith.constant 0.176776692 : f32
    %408 = vector.broadcast %cst_328 : f32 to vector<16x16xf32>
    %409 = arith.mulf %407, %408 : vector<16x16xf32>
    %cst_329 = arith.constant dense<0xFF800000> : vector<16xf32>
    %410 = vector.multi_reduction <maximumf>, %409, %cst_329 [1] : vector<16x16xf32> to vector<16xf32>
    %411 = vector.shape_cast %410 : vector<16xf32> to vector<16x1xf32>
    %412 = vector.broadcast %411 : vector<16x1xf32> to vector<16x16xf32>
    %413 = arith.subf %409, %412 : vector<16x16xf32>
    %414 = math.exp %413 : vector<16x16xf32>
    %cst_330 = arith.constant dense<0.000000e+00> : vector<16xf32>
    %415 = vector.multi_reduction <add>, %414, %cst_330 [1] : vector<16x16xf32> to vector<16xf32>
    %416 = vector.shape_cast %415 : vector<16xf32> to vector<16x1xf32>
    %417 = tpu.reciprocal %416 {approx = true} : vector<16x1xf32> -> vector<16x1xf32>
    %418 = vector.broadcast %417 : vector<16x1xf32> to vector<16x16xf32>
    %419 = arith.mulf %414, %418 : vector<16x16xf32>
    %420 = arith.truncf %419 : vector<16x16xf32> to vector<16x16xbf16>
    %421 = arith.truncf %398 : vector<16x32xf32> to vector<16x32xbf16>
    %cst_331 = arith.constant dense<0.000000e+00> : vector<16x32xf32>
    %422 = tpu.matmul %420, %421, %cst_331 {dimension_numbers = #tpu.dot_dimension_numbers<[1], [0], [0], [1], [0, 0, 1, 1], [], []>} : vector<16x16xbf16>, vector<16x32xbf16>, vector<16x32xf32> -> vector<16x32xf32>
    %c1_332 = arith.constant 1 : index
    %c0_333 = arith.constant 0 : index
    %c0_334 = arith.constant 0 : index
    %c0_335 = arith.constant 0 : index
    %423 = vector.load %arg24[%c1_332, %c0_333, %c0_334, %c0_335] : memref<2x2x32x64xbf16, #tpu.memory_space<vmem>>, vector<1x1x32x64xbf16>
    %424 = vector.shape_cast %423 : vector<1x1x32x64xbf16> to vector<32x64xbf16>
    %425 = arith.truncf %422 : vector<16x32xf32> to vector<16x32xbf16>
    %cst_336 = arith.constant dense<0.000000e+00> : vector<16x64xf32>
    %426 = tpu.matmul %425, %424, %cst_336 {dimension_numbers = #tpu.dot_dimension_numbers<[1], [0], [0], [1], [0, 0, 1, 1], [], []>} : vector<16x32xbf16>, vector<32x64xbf16>, vector<16x64xf32> -> vector<16x64xf32>
    %427 = arith.addf %363, %426 : vector<16x64xf32>
    %c1_337 = arith.constant 1 : index
    %c1_338 = arith.constant 1 : index
    %c0_339 = arith.constant 0 : index
    %c0_340 = arith.constant 0 : index
    %428 = vector.load %arg14[%c1_337, %c1_338, %c0_339, %c0_340] : memref<2x2x64x32xbf16, #tpu.memory_space<vmem>>, vector<1x1x64x32xbf16>
    %429 = vector.shape_cast %428 : vector<1x1x64x32xbf16> to vector<64x32xbf16>
    %cst_341 = arith.constant dense<0.000000e+00> : vector<16x32xf32>
    %430 = tpu.matmul %362, %429, %cst_341 {dimension_numbers = #tpu.dot_dimension_numbers<[1], [0], [0], [1], [0, 0, 1, 1], [], []>} : vector<16x64xbf16>, vector<64x32xbf16>, vector<16x32xf32> -> vector<16x32xf32>
    %c1_342 = arith.constant 1 : index
    %c1_343 = arith.constant 1 : index
    %c0_344 = arith.constant 0 : index
    %c0_345 = arith.constant 0 : index
    %431 = vector.load %arg15[%c1_342, %c1_343, %c0_344, %c0_345] : memref<2x2x1x32xf32, #tpu.memory_space<vmem>>, vector<1x1x1x32xf32>
    %432 = vector.shape_cast %431 : vector<1x1x1x32xf32> to vector<1x32xf32>
    %433 = vector.broadcast %432 : vector<1x32xf32> to vector<16x32xf32>
    %434 = arith.addf %430, %433 : vector<16x32xf32>
    %c1_346 = arith.constant 1 : index
    %c1_347 = arith.constant 1 : index
    %c0_348 = arith.constant 0 : index
    %c0_349 = arith.constant 0 : index
    %435 = vector.load %arg16[%c1_346, %c1_347, %c0_348, %c0_349] : memref<2x2x64x32xbf16, #tpu.memory_space<vmem>>, vector<1x1x64x32xbf16>
    %436 = vector.shape_cast %435 : vector<1x1x64x32xbf16> to vector<64x32xbf16>
    %cst_350 = arith.constant dense<0.000000e+00> : vector<16x32xf32>
    %437 = tpu.matmul %362, %436, %cst_350 {dimension_numbers = #tpu.dot_dimension_numbers<[1], [0], [0], [1], [0, 0, 1, 1], [], []>} : vector<16x64xbf16>, vector<64x32xbf16>, vector<16x32xf32> -> vector<16x32xf32>
    %c1_351 = arith.constant 1 : index
    %c1_352 = arith.constant 1 : index
    %c0_353 = arith.constant 0 : index
    %c0_354 = arith.constant 0 : index
    %438 = vector.load %arg17[%c1_351, %c1_352, %c0_353, %c0_354] : memref<2x2x1x32xf32, #tpu.memory_space<vmem>>, vector<1x1x1x32xf32>
    %439 = vector.shape_cast %438 : vector<1x1x1x32xf32> to vector<1x32xf32>
    %440 = vector.broadcast %439 : vector<1x32xf32> to vector<16x32xf32>
    %441 = arith.addf %437, %440 : vector<16x32xf32>
    %c1_355 = arith.constant 1 : index
    %c1_356 = arith.constant 1 : index
    %c0_357 = arith.constant 0 : index
    %c0_358 = arith.constant 0 : index
    %442 = vector.load %arg18[%c1_355, %c1_356, %c0_357, %c0_358] : memref<2x2x64x32xbf16, #tpu.memory_space<vmem>>, vector<1x1x64x32xbf16>
    %443 = vector.shape_cast %442 : vector<1x1x64x32xbf16> to vector<64x32xbf16>
    %cst_359 = arith.constant dense<0.000000e+00> : vector<16x32xf32>
    %444 = tpu.matmul %362, %443, %cst_359 {dimension_numbers = #tpu.dot_dimension_numbers<[1], [0], [0], [1], [0, 0, 1, 1], [], []>} : vector<16x64xbf16>, vector<64x32xbf16>, vector<16x32xf32> -> vector<16x32xf32>
    %c1_360 = arith.constant 1 : index
    %c1_361 = arith.constant 1 : index
    %c0_362 = arith.constant 0 : index
    %c0_363 = arith.constant 0 : index
    %445 = vector.load %arg19[%c1_360, %c1_361, %c0_362, %c0_363] : memref<2x2x1x32xf32, #tpu.memory_space<vmem>>, vector<1x1x1x32xf32>
    %446 = vector.shape_cast %445 : vector<1x1x1x32xf32> to vector<1x32xf32>
    %447 = vector.broadcast %446 : vector<1x32xf32> to vector<16x32xf32>
    %448 = arith.addf %444, %447 : vector<16x32xf32>
    %c1_364 = arith.constant 1 : index
    %c1_365 = arith.constant 1 : index
    %c0_366 = arith.constant 0 : index
    %c0_367 = arith.constant 0 : index
    %449 = vector.load %arg20[%c1_364, %c1_365, %c0_366, %c0_367] : memref<2x2x64x32xbf16, #tpu.memory_space<vmem>>, vector<1x1x64x32xbf16>
    %450 = vector.shape_cast %449 : vector<1x1x64x32xbf16> to vector<64x32xbf16>
    %cst_368 = arith.constant dense<0.000000e+00> : vector<16x32xf32>
    %451 = tpu.matmul %362, %450, %cst_368 {dimension_numbers = #tpu.dot_dimension_numbers<[1], [0], [0], [1], [0, 0, 1, 1], [], []>} : vector<16x64xbf16>, vector<64x32xbf16>, vector<16x32xf32> -> vector<16x32xf32>
    %c1_369 = arith.constant 1 : index
    %c1_370 = arith.constant 1 : index
    %c0_371 = arith.constant 0 : index
    %c0_372 = arith.constant 0 : index
    %452 = vector.load %arg21[%c1_369, %c1_370, %c0_371, %c0_372] : memref<2x2x1x32xf32, #tpu.memory_space<vmem>>, vector<1x1x1x32xf32>
    %453 = vector.shape_cast %452 : vector<1x1x1x32xf32> to vector<1x32xf32>
    %454 = vector.broadcast %453 : vector<1x32xf32> to vector<16x32xf32>
    %455 = arith.addf %451, %454 : vector<16x32xf32>
    %c1_373 = arith.constant 1 : index
    %c1_374 = arith.constant 1 : index
    %c0_375 = arith.constant 0 : index
    %c0_376 = arith.constant 0 : index
    %456 = vector.load %arg22[%c1_373, %c1_374, %c0_375, %c0_376] : memref<2x2x64x32xbf16, #tpu.memory_space<vmem>>, vector<1x1x64x32xbf16>
    %457 = vector.shape_cast %456 : vector<1x1x64x32xbf16> to vector<64x32xbf16>
    %cst_377 = arith.constant dense<0.000000e+00> : vector<16x32xf32>
    %458 = tpu.matmul %362, %457, %cst_377 {dimension_numbers = #tpu.dot_dimension_numbers<[1], [0], [0], [1], [0, 0, 1, 1], [], []>} : vector<16x64xbf16>, vector<64x32xbf16>, vector<16x32xf32> -> vector<16x32xf32>
    %c1_378 = arith.constant 1 : index
    %c1_379 = arith.constant 1 : index
    %c0_380 = arith.constant 0 : index
    %c0_381 = arith.constant 0 : index
    %459 = vector.load %arg23[%c1_378, %c1_379, %c0_380, %c0_381] : memref<2x2x1x32xf32, #tpu.memory_space<vmem>>, vector<1x1x1x32xf32>
    %460 = vector.shape_cast %459 : vector<1x1x1x32xf32> to vector<1x32xf32>
    %461 = vector.broadcast %460 : vector<1x32xf32> to vector<16x32xf32>
    %462 = arith.addf %458, %461 : vector<16x32xf32>
    %463 = arith.mulf %434, %35 : vector<16x32xf32>
    %464 = arith.mulf %441, %36 : vector<16x32xf32>
    %465 = arith.addf %463, %464 : vector<16x32xf32>
    %466 = arith.mulf %448, %35 : vector<16x32xf32>
    %467 = arith.mulf %455, %36 : vector<16x32xf32>
    %468 = arith.addf %466, %467 : vector<16x32xf32>
    %469 = arith.truncf %465 : vector<16x32xf32> to vector<16x32xbf16>
    %470 = arith.truncf %468 : vector<16x32xf32> to vector<16x32xbf16>
    %cst_382 = arith.constant dense<0.000000e+00> : vector<16x16xf32>
    %471 = tpu.matmul %469, %470, %cst_382 {dimension_numbers = #tpu.dot_dimension_numbers<[1], [1], [0], [0], [0, 0, 1, 0], [], []>} : vector<16x32xbf16>, vector<16x32xbf16>, vector<16x16xf32> -> vector<16x16xf32>
    %cst_383 = arith.constant 0.176776692 : f32
    %472 = vector.broadcast %cst_383 : f32 to vector<16x16xf32>
    %473 = arith.mulf %471, %472 : vector<16x16xf32>
    %cst_384 = arith.constant dense<0xFF800000> : vector<16xf32>
    %474 = vector.multi_reduction <maximumf>, %473, %cst_384 [1] : vector<16x16xf32> to vector<16xf32>
    %475 = vector.shape_cast %474 : vector<16xf32> to vector<16x1xf32>
    %476 = vector.broadcast %475 : vector<16x1xf32> to vector<16x16xf32>
    %477 = arith.subf %473, %476 : vector<16x16xf32>
    %478 = math.exp %477 : vector<16x16xf32>
    %cst_385 = arith.constant dense<0.000000e+00> : vector<16xf32>
    %479 = vector.multi_reduction <add>, %478, %cst_385 [1] : vector<16x16xf32> to vector<16xf32>
    %480 = vector.shape_cast %479 : vector<16xf32> to vector<16x1xf32>
    %481 = tpu.reciprocal %480 {approx = true} : vector<16x1xf32> -> vector<16x1xf32>
    %482 = vector.broadcast %481 : vector<16x1xf32> to vector<16x16xf32>
    %483 = arith.mulf %478, %482 : vector<16x16xf32>
    %484 = arith.truncf %483 : vector<16x16xf32> to vector<16x16xbf16>
    %485 = arith.truncf %462 : vector<16x32xf32> to vector<16x32xbf16>
    %cst_386 = arith.constant dense<0.000000e+00> : vector<16x32xf32>
    %486 = tpu.matmul %484, %485, %cst_386 {dimension_numbers = #tpu.dot_dimension_numbers<[1], [0], [0], [1], [0, 0, 1, 1], [], []>} : vector<16x16xbf16>, vector<16x32xbf16>, vector<16x32xf32> -> vector<16x32xf32>
    %c1_387 = arith.constant 1 : index
    %c1_388 = arith.constant 1 : index
    %c0_389 = arith.constant 0 : index
    %c0_390 = arith.constant 0 : index
    %487 = vector.load %arg24[%c1_387, %c1_388, %c0_389, %c0_390] : memref<2x2x32x64xbf16, #tpu.memory_space<vmem>>, vector<1x1x32x64xbf16>
    %488 = vector.shape_cast %487 : vector<1x1x32x64xbf16> to vector<32x64xbf16>
    %489 = arith.truncf %486 : vector<16x32xf32> to vector<16x32xbf16>
    %cst_391 = arith.constant dense<0.000000e+00> : vector<16x64xf32>
    %490 = tpu.matmul %489, %488, %cst_391 {dimension_numbers = #tpu.dot_dimension_numbers<[1], [0], [0], [1], [0, 0, 1, 1], [], []>} : vector<16x32xbf16>, vector<32x64xbf16>, vector<16x64xf32> -> vector<16x64xf32>
    %491 = arith.addf %427, %490 : vector<16x64xf32>
    %c1_392 = arith.constant 1 : index
    %c0_393 = arith.constant 0 : index
    %c0_394 = arith.constant 0 : index
    %492 = vector.load %arg25[%c1_392, %c0_393, %c0_394] : memref<2x1x64xf32, #tpu.memory_space<vmem>>, vector<1x1x64xf32>
    %493 = vector.shape_cast %492 : vector<1x1x64xf32> to vector<1x64xf32>
    %494 = vector.broadcast %493 : vector<1x64xf32> to vector<16x64xf32>
    %495 = arith.addf %491, %494 : vector<16x64xf32>
    %496 = vector.broadcast %316 : vector<1x64xf32> to vector<16x64xf32>
    %497 = arith.mulf %496, %495 : vector<16x64xf32>
    %498 = arith.addf %295, %497 : vector<16x64xf32>
    %cst_395 = arith.constant dense<0.000000e+00> : vector<16xf32>
    %499 = vector.multi_reduction <add>, %498, %cst_395 [1] : vector<16x64xf32> to vector<16xf32>
    %500 = vector.shape_cast %499 : vector<16xf32> to vector<16x1xf32>
    %cst_396 = arith.constant 6.400000e+01 : f32
    %501 = vector.broadcast %cst_396 : f32 to vector<16x1xf32>
    %502 = arith.divf %500, %501 : vector<16x1xf32>
    %503 = vector.broadcast %502 : vector<16x1xf32> to vector<16x64xf32>
    %504 = arith.subf %498, %503 : vector<16x64xf32>
    %505 = arith.mulf %504, %504 : vector<16x64xf32>
    %cst_397 = arith.constant dense<0.000000e+00> : vector<16xf32>
    %506 = vector.multi_reduction <add>, %505, %cst_397 [1] : vector<16x64xf32> to vector<16xf32>
    %507 = vector.shape_cast %506 : vector<16xf32> to vector<16x1xf32>
    %cst_398 = arith.constant 6.400000e+01 : f32
    %508 = vector.broadcast %cst_398 : f32 to vector<16x1xf32>
    %509 = arith.divf %507, %508 : vector<16x1xf32>
    %510 = vector.broadcast %502 : vector<16x1xf32> to vector<16x64xf32>
    %511 = arith.subf %498, %510 : vector<16x64xf32>
    %cst_399 = arith.constant 9.99999997E-7 : f32
    %512 = vector.broadcast %cst_399 : f32 to vector<16x1xf32>
    %513 = arith.addf %509, %512 : vector<16x1xf32>
    %514 = math.rsqrt %513 : vector<16x1xf32>
    %515 = vector.broadcast %514 : vector<16x1xf32> to vector<16x64xf32>
    %516 = arith.mulf %511, %515 : vector<16x64xf32>
    %cst_400 = arith.constant 1.000000e+00 : f32
    %517 = vector.broadcast %cst_400 : f32 to vector<1x64xf32>
    %518 = arith.addf %517, %330 : vector<1x64xf32>
    %519 = vector.broadcast %518 : vector<1x64xf32> to vector<16x64xf32>
    %520 = arith.mulf %516, %519 : vector<16x64xf32>
    %521 = vector.broadcast %323 : vector<1x64xf32> to vector<16x64xf32>
    %522 = arith.addf %520, %521 : vector<16x64xf32>
    %c1_401 = arith.constant 1 : index
    %c0_402 = arith.constant 0 : index
    %c0_403 = arith.constant 0 : index
    %523 = vector.load %arg26[%c1_401, %c0_402, %c0_403] : memref<2x64x256xbf16, #tpu.memory_space<vmem>>, vector<1x64x256xbf16>
    %524 = vector.shape_cast %523 : vector<1x64x256xbf16> to vector<64x256xbf16>
    %525 = arith.truncf %522 : vector<16x64xf32> to vector<16x64xbf16>
    %cst_404 = arith.constant dense<0.000000e+00> : vector<16x256xf32>
    %526 = tpu.matmul %525, %524, %cst_404 {dimension_numbers = #tpu.dot_dimension_numbers<[1], [0], [0], [1], [0, 0, 1, 1], [], []>} : vector<16x64xbf16>, vector<64x256xbf16>, vector<16x256xf32> -> vector<16x256xf32>
    %c1_405 = arith.constant 1 : index
    %c0_406 = arith.constant 0 : index
    %c0_407 = arith.constant 0 : index
    %527 = vector.load %arg27[%c1_405, %c0_406, %c0_407] : memref<2x1x256xf32, #tpu.memory_space<vmem>>, vector<1x1x256xf32>
    %528 = vector.shape_cast %527 : vector<1x1x256xf32> to vector<1x256xf32>
    %529 = vector.broadcast %528 : vector<1x256xf32> to vector<16x256xf32>
    %530 = arith.addf %526, %529 : vector<16x256xf32>
    %cst_408 = arith.constant 5.000000e-01 : f32
    %531 = vector.broadcast %cst_408 : f32 to vector<16x256xf32>
    %532 = arith.mulf %531, %530 : vector<16x256xf32>
    %cst_409 = arith.constant 4.471500e-02 : f32
    %533 = vector.broadcast %cst_409 : f32 to vector<16x256xf32>
    %534 = arith.mulf %533, %530 : vector<16x256xf32>
    %535 = arith.mulf %534, %530 : vector<16x256xf32>
    %536 = arith.mulf %535, %530 : vector<16x256xf32>
    %537 = arith.addf %530, %536 : vector<16x256xf32>
    %cst_410 = arith.constant 0.797884583 : f32
    %538 = vector.broadcast %cst_410 : f32 to vector<16x256xf32>
    %539 = arith.mulf %538, %537 : vector<16x256xf32>
    %540 = math.tanh %539 : vector<16x256xf32>
    %cst_411 = arith.constant 1.000000e+00 : f32
    %541 = vector.broadcast %cst_411 : f32 to vector<16x256xf32>
    %542 = arith.addf %541, %540 : vector<16x256xf32>
    %543 = arith.mulf %532, %542 : vector<16x256xf32>
    %c1_412 = arith.constant 1 : index
    %c0_413 = arith.constant 0 : index
    %c0_414 = arith.constant 0 : index
    %544 = vector.load %arg28[%c1_412, %c0_413, %c0_414] : memref<2x256x64xbf16, #tpu.memory_space<vmem>>, vector<1x256x64xbf16>
    %545 = vector.shape_cast %544 : vector<1x256x64xbf16> to vector<256x64xbf16>
    %546 = arith.truncf %543 : vector<16x256xf32> to vector<16x256xbf16>
    %cst_415 = arith.constant dense<0.000000e+00> : vector<16x64xf32>
    %547 = tpu.matmul %546, %545, %cst_415 {dimension_numbers = #tpu.dot_dimension_numbers<[1], [0], [0], [1], [0, 0, 1, 1], [], []>} : vector<16x256xbf16>, vector<256x64xbf16>, vector<16x64xf32> -> vector<16x64xf32>
    %c1_416 = arith.constant 1 : index
    %c0_417 = arith.constant 0 : index
    %c0_418 = arith.constant 0 : index
    %548 = vector.load %arg29[%c1_416, %c0_417, %c0_418] : memref<2x1x64xf32, #tpu.memory_space<vmem>>, vector<1x1x64xf32>
    %549 = vector.shape_cast %548 : vector<1x1x64xf32> to vector<1x64xf32>
    %550 = vector.broadcast %549 : vector<1x64xf32> to vector<16x64xf32>
    %551 = arith.addf %547, %550 : vector<16x64xf32>
    %552 = vector.broadcast %337 : vector<1x64xf32> to vector<16x64xf32>
    %553 = arith.mulf %552, %551 : vector<16x64xf32>
    %554 = arith.addf %498, %553 : vector<16x64xf32>
    %c0_419 = arith.constant 0 : index
    %c0_420 = arith.constant 0 : index
    %c0_421 = arith.constant 0 : index
    %555 = vector.load %arg30[%c0_419, %c0_420, %c0_421] : memref<2x64x64xbf16, #tpu.memory_space<vmem>>, vector<1x64x64xbf16>
    %556 = vector.shape_cast %555 : vector<1x64x64xbf16> to vector<64x64xbf16>
    %557 = arith.truncf %26 : vector<1x64xf32> to vector<1x64xbf16>
    %cst_422 = arith.constant dense<0.000000e+00> : vector<1x64xf32>
    %558 = tpu.matmul %557, %556, %cst_422 {dimension_numbers = #tpu.dot_dimension_numbers<[1], [0], [0], [1], [0, 0, 1, 1], [], []>} : vector<1x64xbf16>, vector<64x64xbf16>, vector<1x64xf32> -> vector<1x64xf32>
    %c0_423 = arith.constant 0 : index
    %c0_424 = arith.constant 0 : index
    %c0_425 = arith.constant 0 : index
    %559 = vector.load %arg31[%c0_423, %c0_424, %c0_425] : memref<2x1x64xf32, #tpu.memory_space<vmem>>, vector<1x1x64xf32>
    %560 = vector.shape_cast %559 : vector<1x1x64xf32> to vector<1x64xf32>
    %561 = arith.addf %558, %560 : vector<1x64xf32>
    %c1_426 = arith.constant 1 : index
    %c0_427 = arith.constant 0 : index
    %c0_428 = arith.constant 0 : index
    %562 = vector.load %arg30[%c1_426, %c0_427, %c0_428] : memref<2x64x64xbf16, #tpu.memory_space<vmem>>, vector<1x64x64xbf16>
    %563 = vector.shape_cast %562 : vector<1x64x64xbf16> to vector<64x64xbf16>
    %564 = arith.truncf %26 : vector<1x64xf32> to vector<1x64xbf16>
    %cst_429 = arith.constant dense<0.000000e+00> : vector<1x64xf32>
    %565 = tpu.matmul %564, %563, %cst_429 {dimension_numbers = #tpu.dot_dimension_numbers<[1], [0], [0], [1], [0, 0, 1, 1], [], []>} : vector<1x64xbf16>, vector<64x64xbf16>, vector<1x64xf32> -> vector<1x64xf32>
    %c1_430 = arith.constant 1 : index
    %c0_431 = arith.constant 0 : index
    %c0_432 = arith.constant 0 : index
    %566 = vector.load %arg31[%c1_430, %c0_431, %c0_432] : memref<2x1x64xf32, #tpu.memory_space<vmem>>, vector<1x1x64xf32>
    %567 = vector.shape_cast %566 : vector<1x1x64xf32> to vector<1x64xf32>
    %568 = arith.addf %565, %567 : vector<1x64xf32>
    %cst_433 = arith.constant dense<0.000000e+00> : vector<16xf32>
    %569 = vector.multi_reduction <add>, %554, %cst_433 [1] : vector<16x64xf32> to vector<16xf32>
    %570 = vector.shape_cast %569 : vector<16xf32> to vector<16x1xf32>
    %cst_434 = arith.constant 6.400000e+01 : f32
    %571 = vector.broadcast %cst_434 : f32 to vector<16x1xf32>
    %572 = arith.divf %570, %571 : vector<16x1xf32>
    %573 = vector.broadcast %572 : vector<16x1xf32> to vector<16x64xf32>
    %574 = arith.subf %554, %573 : vector<16x64xf32>
    %575 = arith.mulf %574, %574 : vector<16x64xf32>
    %cst_435 = arith.constant dense<0.000000e+00> : vector<16xf32>
    %576 = vector.multi_reduction <add>, %575, %cst_435 [1] : vector<16x64xf32> to vector<16xf32>
    %577 = vector.shape_cast %576 : vector<16xf32> to vector<16x1xf32>
    %cst_436 = arith.constant 6.400000e+01 : f32
    %578 = vector.broadcast %cst_436 : f32 to vector<16x1xf32>
    %579 = arith.divf %577, %578 : vector<16x1xf32>
    %580 = vector.broadcast %572 : vector<16x1xf32> to vector<16x64xf32>
    %581 = arith.subf %554, %580 : vector<16x64xf32>
    %cst_437 = arith.constant 9.99999997E-7 : f32
    %582 = vector.broadcast %cst_437 : f32 to vector<16x1xf32>
    %583 = arith.addf %579, %582 : vector<16x1xf32>
    %584 = math.rsqrt %583 : vector<16x1xf32>
    %585 = vector.broadcast %584 : vector<16x1xf32> to vector<16x64xf32>
    %586 = arith.mulf %581, %585 : vector<16x64xf32>
    %cst_438 = arith.constant 1.000000e+00 : f32
    %587 = vector.broadcast %cst_438 : f32 to vector<1x64xf32>
    %588 = arith.addf %587, %568 : vector<1x64xf32>
    %589 = vector.broadcast %588 : vector<1x64xf32> to vector<16x64xf32>
    %590 = arith.mulf %586, %589 : vector<16x64xf32>
    %591 = vector.broadcast %561 : vector<1x64xf32> to vector<16x64xf32>
    %592 = arith.addf %590, %591 : vector<16x64xf32>
    %c0_439 = arith.constant 0 : index
    %c0_440 = arith.constant 0 : index
    %593 = vector.load %arg32[%c0_439, %c0_440] : memref<64x16xbf16, #tpu.memory_space<vmem>>, vector<64x16xbf16>
    %594 = arith.truncf %592 : vector<16x64xf32> to vector<16x64xbf16>
    %cst_441 = arith.constant dense<0.000000e+00> : vector<16x16xf32>
    %595 = tpu.matmul %594, %593, %cst_441 {dimension_numbers = #tpu.dot_dimension_numbers<[1], [0], [0], [1], [0, 0, 1, 1], [], []>} : vector<16x64xbf16>, vector<64x16xbf16>, vector<16x16xf32> -> vector<16x16xf32>
    %c0_442 = arith.constant 0 : index
    %c0_443 = arith.constant 0 : index
    %596 = vector.load %arg33[%c0_442, %c0_443] : memref<1x16xf32, #tpu.memory_space<vmem>>, vector<1x16xf32>
    %597 = vector.broadcast %596 : vector<1x16xf32> to vector<16x16xf32>
    %598 = arith.addf %595, %597 : vector<16x16xf32>
    %c0_444 = arith.constant 0 : index
    %c0_445 = arith.constant 0 : index
    %c0_446 = arith.constant 0 : index
    %599 = vector.load %arg34[%c0_444, %c0_445, %c0_446] : memref<1x16x16xf32, #tpu.memory_space<vmem>>, vector<1x16x16xf32>
    %600 = vector.shape_cast %599 : vector<1x16x16xf32> to vector<16x16xf32>
    %601 = vector.shape_cast %598 : vector<16x16xf32> to vector<1x16x16xf32>
    tpu.vector_store %arg34[%c0_444, %c0_445, %c0_446], %601 {strides = array<i32>} : memref<1x16x16xf32, #tpu.memory_space<vmem>>, vector<1x16x16xf32>,
    return
  }
  func.func @transform_0(%arg0: i32) -> (i32, i32, i32) {
    %c0_i32 = arith.constant 0 : i32
    %c0_i32_0 = arith.constant 0 : i32
    %c0_i32_1 = arith.constant 0 : i32
    return %arg0, %c0_i32, %c0_i32_0 : i32, i32, i32
  }
  func.func @transform_1(%arg0: i32) -> (i32, i32, i32) {
    %c0_i32 = arith.constant 0 : i32
    %c0_i32_0 = arith.constant 0 : i32
    %c0_i32_1 = arith.constant 0 : i32
    return %arg0, %c0_i32, %c0_i32_0 : i32, i32, i32
  }
  func.func @transform_2(%arg0: i32) -> (i32, i32, i32) {
    %c0_i32 = arith.constant 0 : i32
    %c0_i32_0 = arith.constant 0 : i32
    %c0_i32_1 = arith.constant 0 : i32
    return %arg0, %c0_i32, %c0_i32_0 : i32, i32, i32
  }
  func.func @transform_3(%arg0: i32) -> (i32, i32) {
    %c0_i32 = arith.constant 0 : i32
    %c0_i32_0 = arith.constant 0 : i32
    %c0_i32_1 = arith.constant 0 : i32
    return %c0_i32, %c0_i32_0 : i32, i32
  }
  func.func @transform_4(%arg0: i32) -> (i32, i32) {
    %c0_i32 = arith.constant 0 : i32
    %c0_i32_0 = arith.constant 0 : i32
    %c0_i32_1 = arith.constant 0 : i32
    return %c0_i32, %c0_i32_0 : i32, i32
  }
  func.func @transform_5(%arg0: i32) -> (i32, i32) {
    %c0_i32 = arith.constant 0 : i32
    %c0_i32_0 = arith.constant 0 : i32
    %c0_i32_1 = arith.constant 0 : i32
    return %c0_i32, %c0_i32_0 : i32, i32
  }
  func.func @transform_6(%arg0: i32) -> (i32, i32) {
    %c0_i32 = arith.constant 0 : i32
    %c0_i32_0 = arith.constant 0 : i32
    %c0_i32_1 = arith.constant 0 : i32
    return %c0_i32, %c0_i32_0 : i32, i32
  }
  func.func @transform_7(%arg0: i32) -> (i32, i32) {
    %c0_i32 = arith.constant 0 : i32
    %c0_i32_0 = arith.constant 0 : i32
    %c0_i32_1 = arith.constant 0 : i32
    return %c0_i32, %c0_i32_0 : i32, i32
  }
  func.func @transform_8(%arg0: i32) -> (i32, i32) {
    %c0_i32 = arith.constant 0 : i32
    %c0_i32_0 = arith.constant 0 : i32
    %c0_i32_1 = arith.constant 0 : i32
    return %c0_i32, %c0_i32_0 : i32, i32
  }
  func.func @transform_9(%arg0: i32) -> (i32, i32) {
    %c0_i32 = arith.constant 0 : i32
    %c0_i32_0 = arith.constant 0 : i32
    %c0_i32_1 = arith.constant 0 : i32
    return %c0_i32, %c0_i32_0 : i32, i32
  }
  func.func @transform_10(%arg0: i32) -> (i32, i32) {
    %c0_i32 = arith.constant 0 : i32
    %c0_i32_0 = arith.constant 0 : i32
    %c0_i32_1 = arith.constant 0 : i32
    return %c0_i32, %c0_i32_0 : i32, i32
  }
  func.func @transform_11(%arg0: i32) -> (i32, i32, i32, i32) {
    %c0_i32 = arith.constant 0 : i32
    %c0_i32_0 = arith.constant 0 : i32
    %c0_i32_1 = arith.constant 0 : i32
    %c0_i32_2 = arith.constant 0 : i32
    %c0_i32_3 = arith.constant 0 : i32
    return %c0_i32, %c0_i32_0, %c0_i32_1, %c0_i32_2 : i32, i32, i32, i32
  }
  func.func @transform_12(%arg0: i32) -> (i32, i32, i32, i32) {
    %c0_i32 = arith.constant 0 : i32
    %c0_i32_0 = arith.constant 0 : i32
    %c0_i32_1 = arith.constant 0 : i32
    %c0_i32_2 = arith.constant 0 : i32
    %c0_i32_3 = arith.constant 0 : i32
    return %c0_i32, %c0_i32_0, %c0_i32_1, %c0_i32_2 : i32, i32, i32, i32
  }
  func.func @transform_13(%arg0: i32) -> (i32, i32, i32, i32) {
    %c0_i32 = arith.constant 0 : i32
    %c0_i32_0 = arith.constant 0 : i32
    %c0_i32_1 = arith.constant 0 : i32
    %c0_i32_2 = arith.constant 0 : i32
    %c0_i32_3 = arith.constant 0 : i32
    return %c0_i32, %c0_i32_0, %c0_i32_1, %c0_i32_2 : i32, i32, i32, i32
  }
  func.func @transform_14(%arg0: i32) -> (i32, i32, i32, i32) {
    %c0_i32 = arith.constant 0 : i32
    %c0_i32_0 = arith.constant 0 : i32
    %c0_i32_1 = arith.constant 0 : i32
    %c0_i32_2 = arith.constant 0 : i32
    %c0_i32_3 = arith.constant 0 : i32
    return %c0_i32, %c0_i32_0, %c0_i32_1, %c0_i32_2 : i32, i32, i32, i32
  }
  func.func @transform_15(%arg0: i32) -> (i32, i32, i32, i32) {
    %c0_i32 = arith.constant 0 : i32
    %c0_i32_0 = arith.constant 0 : i32
    %c0_i32_1 = arith.constant 0 : i32
    %c0_i32_2 = arith.constant 0 : i32
    %c0_i32_3 = arith.constant 0 : i32
    return %c0_i32, %c0_i32_0, %c0_i32_1, %c0_i32_2 : i32, i32, i32, i32
  }
  func.func @transform_16(%arg0: i32) -> (i32, i32, i32, i32) {
    %c0_i32 = arith.constant 0 : i32
    %c0_i32_0 = arith.constant 0 : i32
    %c0_i32_1 = arith.constant 0 : i32
    %c0_i32_2 = arith.constant 0 : i32
    %c0_i32_3 = arith.constant 0 : i32
    return %c0_i32, %c0_i32_0, %c0_i32_1, %c0_i32_2 : i32, i32, i32, i32
  }
  func.func @transform_17(%arg0: i32) -> (i32, i32, i32, i32) {
    %c0_i32 = arith.constant 0 : i32
    %c0_i32_0 = arith.constant 0 : i32
    %c0_i32_1 = arith.constant 0 : i32
    %c0_i32_2 = arith.constant 0 : i32
    %c0_i32_3 = arith.constant 0 : i32
    return %c0_i32, %c0_i32_0, %c0_i32_1, %c0_i32_2 : i32, i32, i32, i32
  }
  func.func @transform_18(%arg0: i32) -> (i32, i32, i32, i32) {
    %c0_i32 = arith.constant 0 : i32
    %c0_i32_0 = arith.constant 0 : i32
    %c0_i32_1 = arith.constant 0 : i32
    %c0_i32_2 = arith.constant 0 : i32
    %c0_i32_3 = arith.constant 0 : i32
    return %c0_i32, %c0_i32_0, %c0_i32_1, %c0_i32_2 : i32, i32, i32, i32
  }
  func.func @transform_19(%arg0: i32) -> (i32, i32, i32, i32) {
    %c0_i32 = arith.constant 0 : i32
    %c0_i32_0 = arith.constant 0 : i32
    %c0_i32_1 = arith.constant 0 : i32
    %c0_i32_2 = arith.constant 0 : i32
    %c0_i32_3 = arith.constant 0 : i32
    return %c0_i32, %c0_i32_0, %c0_i32_1, %c0_i32_2 : i32, i32, i32, i32
  }
  func.func @transform_20(%arg0: i32) -> (i32, i32, i32, i32) {
    %c0_i32 = arith.constant 0 : i32
    %c0_i32_0 = arith.constant 0 : i32
    %c0_i32_1 = arith.constant 0 : i32
    %c0_i32_2 = arith.constant 0 : i32
    %c0_i32_3 = arith.constant 0 : i32
    return %c0_i32, %c0_i32_0, %c0_i32_1, %c0_i32_2 : i32, i32, i32, i32
  }
  func.func @transform_21(%arg0: i32) -> (i32, i32, i32, i32) {
    %c0_i32 = arith.constant 0 : i32
    %c0_i32_0 = arith.constant 0 : i32
    %c0_i32_1 = arith.constant 0 : i32
    %c0_i32_2 = arith.constant 0 : i32
    %c0_i32_3 = arith.constant 0 : i32
    return %c0_i32, %c0_i32_0, %c0_i32_1, %c0_i32_2 : i32, i32, i32, i32
  }
  func.func @transform_22(%arg0: i32) -> (i32, i32, i32, i32) {
    %c0_i32 = arith.constant 0 : i32
    %c0_i32_0 = arith.constant 0 : i32
    %c0_i32_1 = arith.constant 0 : i32
    %c0_i32_2 = arith.constant 0 : i32
    %c0_i32_3 = arith.constant 0 : i32
    return %c0_i32, %c0_i32_0, %c0_i32_1, %c0_i32_2 : i32, i32, i32, i32
  }
  func.func @transform_23(%arg0: i32) -> (i32, i32, i32, i32) {
    %c0_i32 = arith.constant 0 : i32
    %c0_i32_0 = arith.constant 0 : i32
    %c0_i32_1 = arith.constant 0 : i32
    %c0_i32_2 = arith.constant 0 : i32
    %c0_i32_3 = arith.constant 0 : i32
    return %c0_i32, %c0_i32_0, %c0_i32_1, %c0_i32_2 : i32, i32, i32, i32
  }
  func.func @transform_24(%arg0: i32) -> (i32, i32, i32) {
    %c0_i32 = arith.constant 0 : i32
    %c0_i32_0 = arith.constant 0 : i32
    %c0_i32_1 = arith.constant 0 : i32
    %c0_i32_2 = arith.constant 0 : i32
    return %c0_i32, %c0_i32_0, %c0_i32_1 : i32, i32, i32
  }
  func.func @transform_25(%arg0: i32) -> (i32, i32, i32) {
    %c0_i32 = arith.constant 0 : i32
    %c0_i32_0 = arith.constant 0 : i32
    %c0_i32_1 = arith.constant 0 : i32
    %c0_i32_2 = arith.constant 0 : i32
    return %c0_i32, %c0_i32_0, %c0_i32_1 : i32, i32, i32
  }
  func.func @transform_26(%arg0: i32) -> (i32, i32, i32) {
    %c0_i32 = arith.constant 0 : i32
    %c0_i32_0 = arith.constant 0 : i32
    %c0_i32_1 = arith.constant 0 : i32
    %c0_i32_2 = arith.constant 0 : i32
    return %c0_i32, %c0_i32_0, %c0_i32_1 : i32, i32, i32
  }
  func.func @transform_27(%arg0: i32) -> (i32, i32, i32) {
    %c0_i32 = arith.constant 0 : i32
    %c0_i32_0 = arith.constant 0 : i32
    %c0_i32_1 = arith.constant 0 : i32
    %c0_i32_2 = arith.constant 0 : i32
    return %c0_i32, %c0_i32_0, %c0_i32_1 : i32, i32, i32
  }
  func.func @transform_28(%arg0: i32) -> (i32, i32, i32) {
    %c0_i32 = arith.constant 0 : i32
    %c0_i32_0 = arith.constant 0 : i32
    %c0_i32_1 = arith.constant 0 : i32
    %c0_i32_2 = arith.constant 0 : i32
    return %c0_i32, %c0_i32_0, %c0_i32_1 : i32, i32, i32
  }
  func.func @transform_29(%arg0: i32) -> (i32, i32, i32) {
    %c0_i32 = arith.constant 0 : i32
    %c0_i32_0 = arith.constant 0 : i32
    %c0_i32_1 = arith.constant 0 : i32
    %c0_i32_2 = arith.constant 0 : i32
    return %c0_i32, %c0_i32_0, %c0_i32_1 : i32, i32, i32
  }
  func.func @transform_30(%arg0: i32) -> (i32, i32, i32) {
    %c0_i32 = arith.constant 0 : i32
    %c0_i32_0 = arith.constant 0 : i32
    %c0_i32_1 = arith.constant 0 : i32
    %c0_i32_2 = arith.constant 0 : i32
    return %c0_i32, %c0_i32_0, %c0_i32_1 : i32, i32, i32
  }
  func.func @transform_31(%arg0: i32) -> (i32, i32) {
    %c0_i32 = arith.constant 0 : i32
    %c0_i32_0 = arith.constant 0 : i32
    %c0_i32_1 = arith.constant 0 : i32
    return %c0_i32, %c0_i32_0 : i32, i32
  }
  func.func @transform_32(%arg0: i32) -> (i32, i32) {
    %c0_i32 = arith.constant 0 : i32
    %c0_i32_0 = arith.constant 0 : i32
    %c0_i32_1 = arith.constant 0 : i32
    return %c0_i32, %c0_i32_0 : i32, i32
  }
  func.func @transform_33(%arg0: i32) -> (i32, i32, i32) {
    %c0_i32 = arith.constant 0 : i32
    %c0_i32_0 = arith.constant 0 : i32
    %c0_i32_1 = arith.constant 0 : i32
    return %arg0, %c0_i32, %c0_i32_0 : i32, i32, i32
  }
}

</mosaic_0001>

<bundles_post_ra>
// kernel: dit_forward_pallas.1
= control target key start
LH: loop header
LB: loop body
LE: loop exit
PB: predicated region body
PF: predicated region fallthrough
CT: control target
= control target key end

     0   :  { %s7805_s6 = smov 1   ;;  %s7806_s10 = smov 2   ;;  %s9001_s0 = inlined_call_operand.smem [shape: u32[34], index: -1, kind: input, shape index: {}] }
   0x1   :  { %s7852_s5 = sld [smem:[%s9001_s0]]   ;;  %s7807_s14 = smov 3  }
   0x2   :  { %s7857_s9 = sld [smem:[%s9001_s0 + %s7805_s6]]   ;;  %s7808_s18 = smov 4  }
   0x3   :  { %s7862_s13 = sld [smem:[%s9001_s0 + %s7806_s10]]   ;;  %s7809_s22 = smov 5  }
   0x4   :  { %s7867_s17 = sld [smem:[%s9001_s0 + %s7807_s14]]   ;;  %s7810_s26 = smov 6  }
   0x5   :  { %s7872_s21 = sld [smem:[%s9001_s0 + %s7808_s18]]   ;;  %s7811_s30 = smov 7  }
   0x6   :  { %s7877_s25 = sld [smem:[%s9001_s0 + %s7809_s22]]   ;;  %s7812_s4 = smov 8  }
   0x7   :  { %9032 = sst [smem:[#allocation5_spill]] %s7852_s5  ;;  %s7813_s10 = smov 9  }
   0x8   :  { %9033 = sst [smem:[#allocation6_spill]] %s7857_s9  ;;  %s7814_s15 = smov 10  }
   0x9   :  { %9034 = sst [smem:[#allocation7_spill]] %s7862_s13  ;;  %s7815_s20 = smov 11  }
   0xa   :  { %9035 = sst [smem:[#allocation8_spill]] %s7867_s17  ;;  %s7817_s1 = smov 13  }
   0xb   :  { %9036 = sst [smem:[#allocation9_spill]] %s7872_s21  ;;  %s7818_s7 = smov 14  }
   0xc   :  { %9037 = sst [smem:[#allocation10_spill]] %s7877_s25  ;;  %s7820_s22 = smov 16  }
   0xd   :  { %s7882_s29 = sld [smem:[%s9001_s0 + %s7810_s26]]   ;;  %s7816_s26 = smov 12  }
   0xe   :  { %s7887_s3 = sld [smem:[%s9001_s0 + %s7811_s30]]   ;;  %s7821_s28 = smov 17  }
   0xf   :  { %s7892_s8 = sld [smem:[%s9001_s0 + %s7812_s4]]  }
  0x10   :  { %s7897_s14 = sld [smem:[%s9001_s0 + %s7813_s10]]  }
  0x11   :  { %s7902_s19 = sld [smem:[%s9001_s0 + %s7814_s15]]   ;;  %s7819_s15 = smov 15  }
  0x12   :  { %s7907_s24 = sld [smem:[%s9001_s0 + %s7815_s20]]  }
  0x13   :  { %9038 = sst [smem:[#allocation11_spill]] %s7882_s29 }
  0x14   :  { %9039 = sst [smem:[#allocation12_spill]] %s7887_s3 }
  0x15   :  { %9040 = sst [smem:[#allocation13_spill]] %s7892_s8 }
  0x16   :  { %9041 = sst [smem:[#allocation14_spill]] %s7897_s14 }
  0x17   :  { %9042 = sst [smem:[#allocation15_spill]] %s7902_s19 }
  0x18   :  { %s7912_s30 = sld [smem:[%s9001_s0 + %s7816_s26]]  }
  0x19   :  { %s7917_s6 = sld [smem:[%s9001_s0 + %s7817_s1]]  }
  0x1a   :  { %s7922_s12 = sld [smem:[%s9001_s0 + %s7818_s7]]   ;;  %s7822_s7 = smov 18  }
  0x1b   :  { %s7927_s20 = sld [smem:[%s9001_s0 + %s7819_s15]]   ;;  %s7823_s15 = smov 19  }
  0x1c   :  { %s7932_s27 = sld [smem:[%s9001_s0 + %s7820_s22]]   ;;  %s7824_s22 = smov 20  }
  0x1d   :  { %s7937_s4 = sld [smem:[%s9001_s0 + %s7821_s28]]   ;;  %s7825_s28 = smov 21  }
  0x1e   :  { %s7947_s21 = sld [smem:[%s9001_s0 + %s7823_s15]]   ;;  %s7827_s15 = smov 23  }
  0x1f   :  { %9043 = sst [smem:[#allocation16_spill]] %s7917_s6 }
  0x20   :  { %9044 = sst [smem:[#allocation17_spill]] %s7922_s12 }
  0x21   :  { %s7942_s12 = sld [smem:[%s9001_s0 + %s7822_s7]]   ;;  %s7826_s7 = smov 22  }
  0x22   :  { %9045 = sst [smem:[#allocation18_spill]] %s7932_s27 }
  0x23   :  { %9046 = sst [smem:[#allocation19_spill]] %s7937_s4 }
  0x24   :  { %9048 = sst [smem:[#allocation21_spill]] %s7947_s21 }
  0x25   :  { %s7952_s27 = sld [smem:[%s9001_s0 + %s7824_s22]]   ;;  %s7828_s22 = smov 24  }
  0x26   :  { %s7957_s17 = sld [smem:[%s9001_s0 + %s7825_s28]]   ;;  %s7829_s28 = smov 25  }
  0x27   :  { %9047 = sst [smem:[#allocation20_spill]] %s7942_s12 }
  0x28   :  { %s7962_s12 = sld [smem:[%s9001_s0 + %s7826_s7]]   ;;  %s7830_s7 = smov 26  }
  0x29   :  { %s7967_s21 = sld [smem:[%s9001_s0 + %s7827_s15]]   ;;  %s7831_s15 = smov 27  }
  0x2b   :  { %9049 = sst [smem:[#allocation22_spill]] %s7952_s27 }
  0x2c   :  { %9050 = sst [smem:[#allocation23_spill]] %s7957_s17 }
  0x2d   :  { %s7972_s27 = sld [smem:[%s9001_s0 + %s7828_s22]]   ;;  %s7832_s22 = smov 28  }
  0x2e   :  { %9051 = sst [smem:[#allocation24_spill]] %s7962_s12 }
  0x2f   :  { %9052 = sst [smem:[#allocation25_spill]] %s7967_s21 }
  0x30   :  { %s7977_s17 = sld [smem:[%s9001_s0 + %s7829_s28]]   ;;  %s7833_s28 = smov 29  }
  0x31   :  { %s7982_s12 = sld [smem:[%s9001_s0 + %s7830_s7]]   ;;  %s7834_s7 = smov 30  }
  0x32   :  { %s7987_s21 = sld [smem:[%s9001_s0 + %s7831_s15]]   ;;  %s7835_s15 = smov 31  }
  0x33   :  { %9053 = sst [smem:[#allocation26_spill]] %s7972_s27 }
  0x34   :  { %s7992_s27 = sld [smem:[%s9001_s0 + %s7832_s22]]   ;;  %s7836_s22 = smov 32  }
  0x36   :  { %9054 = sst [smem:[#allocation27_spill]] %s7977_s17 }
  0x37   :  { %9055 = sst [smem:[#allocation28_spill]] %s7982_s12 }
  0x38   :  { %9056 = sst [smem:[#allocation29_spill]] %s7987_s21 }
  0x39   :  { %s7997_s17 = sld [smem:[%s9001_s0 + %s7833_s28]]   ;;  %s7837_s28 = smov 33  }
  0x3a   :  { %9057 = sst [smem:[#allocation30_spill]] %s7992_s27 }
  0x3b   :  { %s8002_s12 = sld [smem:[%s9001_s0 + %s7834_s7]]  }
  0x3c   :  { %s8007_s21 = sld [smem:[%s9001_s0 + %s7835_s15]]  }
  0x3d   :  { %s8012_s27 = sld [smem:[%s9001_s0 + %s7836_s22]]  }
  0x3f   :  { %9058 = sst [smem:[#allocation31_spill]] %s7997_s17 }
  0x40   :  { %s8017_s17 = sld [smem:[%s9001_s0 + %s7837_s28]]  }
  0x41   :  { %9059 = sst [smem:[#allocation32_spill]] %s8002_s12 }
  0x42   :  { %72 = vsyncpa [#allocation3], 0 }
  0x43   :  { %74 = vsyncpa [#allocation3 + $0x1], 0  ;;  %s8019_s7 = smov 0   ;;  %s8021_s10 = smov 0  }
  0x44   :  { %s8023_s11 = smov 0   ;;  %s8025_s15 = smov 0  }
  0x45 LB: > { %s9060_s12 = sld [smem:[#allocation32_spill]]  ;;  %s8040_s0 = sadd.s32 4294967295, %s7803_s15   ;;  %s7791_s7 = sphi %s8019_s7, %s9098_s7   ;;  %s7803_s15 = sphi %s8025_s15, %s9095_s15   ;;  %s7799_s11 = sphi %s8023_s11, %s9097_s11   ;;  %s7795_s10 = sphi %s8021_s10, %s9099_s10  }
  0x46   : > { %s9061_s6 = sld [smem:[#allocation16_spill]]  ;;  %s5958_s16 = sadd.s32 4294967294, %s7803_s15  }
  0x47   : > { %s9062_s4 = sld [smem:[#allocation19_spill]]  ;;  %s8044_s18 = sadd.s32 1, %s7803_s15  }
  0x48   : > { %s9063_s14 = sld [smem:[#allocation14_spill]]  ;;  %s795_s22 = sadd.s32 1, %s7799_s11 }
  0x49   : > { %s9064_s3 = sld [smem:[#allocation12_spill]]  ;;  %s792_s23 = ssub.s32 %s7803_s15, %s8044_s18 }
  0x4a   : > { %9065 = sst [smem:[#allocation33_spill]] %s7799_s11  ;;  %p805_p0 = scmp.ne.s32.totalorder %s7799_s11, %s7795_s10 }
  0x4b   : > { %9066 = sst [smem:[#allocation34_spill]] %s8044_s18  ;;  %p793_p1 = scmp.eq.s32.totalorder %s792_s23, 0 }
  0x4c   : > { %p806_p2 = scmp.eq.s32.totalorder %s8040_s0, 1  ;;  %p811_p3 = scmp.ne.s32.totalorder %s7795_s10, %s7791_s7 }
  0x4d   : > { %p812_p4 = scmp.eq.s32.totalorder %s5958_s16, 1  ;;  %p5961_p7 = scmp.ge.s32.totalorder %s7803_s15, 1 }
  0x4e   : > { %s8055_s26 = scalar_select %p793_p1, %s7799_s11, %s795_s22  }
  0x4f   : > { %p8057_p5 = por %p806_p2, %p805_p0  ;;  %p8061_p6 = por %p812_p4, %p811_p3 }
  0x50   : > { %9067 = sst [smem:[#allocation35_spill]] %s8055_s26  ;;  %p941_p8 = scmp.lt.s32.totalorder %s7803_s15, 3 }
  0x52   : > { %p942_p9 = pnand %p5961_p7, %p941_p8 }
  0x53   : > { %p1032_p10 = scmp.lt.s32.totalorder (!%p942_p9), %s8040_s0, 1  ;;  %s9070_s9 = sld [smem:[#allocation6_spill]] (!%p942_p9) }
  0x54   : > { %945 = sbr.rel (%p942_p9) target bundleno = 7013 (0x1b65), region = 152  ;;  %s9071_s8 = sld [smem:[#allocation13_spill]] (!%p942_p9) }
  0x55   : > { %s9072_s25 = sld [smem:[#allocation10_spill]] (!%p942_p9) }
  0x56   : > { %s9073_s5 = sld [smem:[#allocation5_spill]] (!%p942_p9) }
  0x57   : > { %s9074_s13 = sld [smem:[#allocation7_spill]] (!%p942_p9) }
  0x58   : > { %s9075_s19 = sld [smem:[#allocation15_spill]] (!%p942_p9) }
  0x59   : > { %v7438_v0 = vld [vmem:[%s9064_s3 + $0x78] sm:$0xff]   ;;  %v7440_v2 = vld [vmem:[%s9064_s3 + $0x70] sm:$0xff]   ;;  %v7442_v4 = vld [vmem:[%s9064_s3 + $0x68] sm:$0xff]   ;;  %v1079_v5 = vlaneseq  ;;  %s8074_s2 = scalar_select %p1032_p10, %s8040_s0, 1  ;;  %v7838_v26 = vmov 0.0   ;;  %vm7839_vm0 = vmmov 0  }
  0x5a   : > { %v7439_v1 = vld [vmem:[%s9064_s3 + $0x38] sm:$0xff]   ;;  %6567 = vmatprep.subr.bf16.mxu0 %v7438_v0  ;;  %v7441_v3 = vld [vmem:[%s9064_s3 + $0x30] sm:$0xff]   ;;  %v7443_v6 = vld [vmem:[%s9064_s3 + $0x28] sm:$0xff]   ;;  %6843 = vmatprep.subr.bf16.mxu1 %v7838_v26  ;;  %vm1269_vm1 = vcmask 523264   ;;  %vm1340_vm2 = vcmask 130048   ;;  %s9076_s29 = sld [smem:[#allocation11_spill]] }
  0x5b   : > { %6568 = vmatpush3.bf16.msra.mxu0 %v7439_v1  ;;  %v7444_v7 = vld [vmem:[%s9064_s3 + $0x60] sm:$0xff]   ;;  %v1080_v8 = vshrl.u32 %v1079_v5, 7  ;;  %s5965_s16 = sshll.u32 %s8074_s2, 1  ;;  %v7446_v10 = vld [vmem:[%s9064_s3 + $0x58] sm:$0xff]   ;;  %v7448_v13 = vld [vmem:[%s9064_s3 + $0x50] sm:$0xff]   ;;  %6851 = vmatprep.mubr.msk.bf16.mxu1 %vm7839_vm0, %v7838_v26  ;;  %s6565_s23 = sshll.u32 %s8074_s2, 4 }
  0x5c   : > { %6569 = vmatprep.subr.bf16.mxu0 %v7440_v2  ;;  %v7445_v9 = vld [vmem:[%s9064_s3 + $0x20] sm:$0xff]   ;;  %s1040_s22 = scalar_lea.vmem %s9070_s9, %s5965_s16  ;;  %v7447_v12 = vld [vmem:[%s9064_s3 + $0x18] sm:$0xff]   ;;  %v7449_v16 = vld [vmem:[%s9064_s3 + $0x10] sm:$0xff]   ;;  %s1036_s16 = scalar_lea.vmem %s9073_s5, %s6565_s23  ;;  %vm2299_vm3 = vcmask 261120  }
  0x5d   : > { %v8082_v11 = vsub.s32 1, %v1080_v8  ;;  %v1045_v14 = vld [vmem:[%s1040_s22] sm:$0x3]  ;;  %v8086_v15 = vsub.s32 0, %v1080_v8  ;;  %v7450_v18 = vld [vmem:[%s9064_s3 + $0x48] sm:$0xff]   ;;  %v7454_v25 = vld [vmem:[%s9063_s14 + $0x18] sm:$0xff]   ;;  %s1043_s22 = scalar_lea.vmem %s9074_s13, %s8074_s2 }
  0x5e   : > { %v7451_v20 = vld [vmem:[%s9064_s3 + $0x8] sm:$0xff]   ;;  %v7452_v21 = vld [vmem:[%s9064_s3 + $0x40] sm:$0xff]   ;;  %6844 = vmatpush3.bf16.msra.mxu1 %v7454_v25  ;;  %v7455_v27 = vld [vmem:[%s9063_s14 + $0x10] sm:$0xff]   ;;  %s9077_s2 = sld [smem:[#allocation21_spill]] }
  0x5f   : > { %6570 = vmatpush3.bf16.msra.mxu0 %v7441_v3  ;;  %v1086_v17 = vrot.slane %v1045_v14, %v8082_v11  ;;  %v7453_v22 = vld [vmem:[%s9064_s3] sm:$0xff]   ;;  %v1082_v23 = vrot.slane %v1045_v14, %v8086_v15  ;;  %6845 = vmatprep.subr.bf16.mxu1 %v7838_v26  ;;  %v7456_v28 = vld [vmem:[%s9063_s14 + $0x8] sm:$0xff]   ;;  %v7459_v47 = vld [vmem:[%s7907_s24 + $0x18] sm:$0xff]   ;;  %s9078_s23 = sld [smem:[#allocation23_spill]] }
  0x60   : > { %6571 = vmatprep.subr.bf16.mxu0 %v7442_v4  ;;  %v7457_v29 = vld [vmem:[%s9063_s14] sm:$0xff]   ;;  %v1323_v45 = vld [vmem:[%s1036_s16 + $0x8] sm:$0xff]  ;;  %v7460_v48 = vld [vmem:[%s7907_s24 + $0x38] sm:$0xff]   ;;  %s9081_s3 = sld [smem:[#allocation8_spill]] }
  0x61   : > { %v1090_v19 = vpack.c.bf16 %v1086_v17, %v1086_v17  ;;  %v1089_v24 = vpack.c.bf16 %v1082_v23, %v1082_v23  ;;  %v1091_v31 = vld [vmem:[%s9071_s8] sm:$0x1]  ;;  %v7461_v49 = vld [vmem:[%s7907_s24 + $0x10] sm:$0xff]   ;;  %v7463_v51 = vld [vmem:[%s7907_s24 + $0x8] sm:$0xff]   ;;  %s9082_s5 = sld [smem:[#allocation9_spill]] }
  0x62   : > { %6846 = vmatpush3.bf16.msra.mxu1 %v7455_v27  ;;  %v7458_v42 = vld [vmem:[%s9072_s25] sm:$0xff]   ;;  %v7462_v50 = vld [vmem:[%s7907_s24 + $0x30] sm:$0xff]   ;;  %v7464_v52 = vld [vmem:[%s7907_s24 + $0x28] sm:$0xff]   ;;  %s9083_s8 = sld [smem:[#allocation17_spill]] }
  0x63   : > { %6572 = vmatpush3.bf16.msra.mxu0 %v7443_v6  ;;  %1220 = vmatprep.mubr.bf16.mxu0 %v1090_v19  ;;  %v1322_v44 = vld [vmem:[%s1036_s16] sm:$0xff]  ;;  %v7467_v14 = vld [vmem:[%s7907_s24 + $0x58] sm:$0xff]   ;;  %v7470_v19 = vld [vmem:[%s7907_s24 + $0x70] sm:$0xff]   ;;  %s9079_s16 = sld [smem:[#allocation20_spill]] }
  0x64   : > { %6573 = vmatprep.subr.bf16.mxu0 %v7444_v7  ;;  %6847 = vmatprep.subr.bf16.mxu1 %v7838_v26  ;;  %v1326_v46 = vpack.c.bf16 %v1323_v45, %v1322_v44  ;;  %v7465_v53 = vld [vmem:[%s7907_s24] sm:$0xff]   ;;  %v7476_v25 = vld [vmem:[%s7907_s24 + $0xb8] sm:$0xff]   ;;  %v7477_v27 = vld [vmem:[%s7907_s24 + $0x90] sm:$0xff]   ;;  %s9084_s9 = sld [smem:[#allocation18_spill]] }
  0x65   : > { %v7466_v54 = vld [vmem:[%s7907_s24 + $0x20] sm:$0xff]   ;;  %v7484_v44 = vld [vmem:[%s7927_s20 + $0x18] sm:$0xff]   ;;  %v7485_v45 = vld [vmem:[%s9061_s6 + $0x10] sm:$0xff]   ;;  %s9085_s13 = sld [smem:[#allocation24_spill]] }
  0x66   : > { %6848 = vmatpush3.bf16.msra.mxu1 %v7456_v28  ;;  %v1244_v55 = vld [vmem:[%s9075_s19] sm:$0x1]  ;;  %v7478_v28 = vld [vmem:[%s7907_s24 + $0xb0] sm:$0xff]   ;;  %s9086_s14 = sld [smem:[#allocation25_spill]] }
  0x67   : > { %6574 = vmatpush3.bf16.msra.mxu0 %v7445_v9  ;;  %6849 = vmatprep.subr.bf16.mxu1 %v7838_v26  ;;  %v1313_v57 = vld [vmem:[%s1043_s22] sm:$0x1]  ;;  %s9080_s22 = sld [smem:[#allocation22_spill]] }
  0x68   : > { %6575 = vmatprep.subr.bf16.mxu0 %v7446_v10  ;;  %v5989_v0 = vld [vmem:[%s9076_s29] ss:$0 sm:$0xff]  ;;  %s9087_s19 = sld [smem:[#allocation26_spill]] }
  0x69   : > { %v7474_v23 = vld [vmem:[%s7907_s24 + $0x60] sm:$0xff]   ;;  %s9088_s25 = sld [smem:[#allocation27_spill]] }
  0x6a   : > { %6850 = vmatpush3.bf16.msra.mxu1 %v7457_v29  ;;  %v7479_v29 = vld [vmem:[%s7907_s24 + $0x88] sm:$0xff]   ;;  %s9089_s29 = sld [smem:[#allocation29_spill]] }
  0x6b   : > { %6576 = vmatpush3.bf16.msra.mxu0 %v7447_v12  ;;  %6855 = vmatprep.subr.bf16.mxu1 %v7838_v26  ;;  %s9090_s26 = sld [smem:[#allocation28_spill]] }
  0x6c   : > { %6577 = vmatprep.subr.bf16.mxu0 %v7448_v13  ;;  %s9091_s11 = sld [smem:[#allocation30_spill]] }
  0x6f   : > { %6578 = vmatpush3.bf16.msra.mxu0 %v7449_v16  ;;  %v7468_v16 = vld [vmem:[%s7907_s24 + $0x78] sm:$0xff]  }
  0x70   : > { %6579 = vmatprep.subr.bf16.mxu0 %v7450_v18  ;;  %v7469_v18 = vld [vmem:[%s7907_s24 + $0x50] sm:$0xff]  }
  0x72   : > { %s9092_s18 = smov %s9091_s11 }
  0x73   : > { %6580 = vmatpush3.bf16.msra.mxu0 %v7451_v20  ;;  %v7471_v20 = vld [vmem:[%s7907_s24 + $0x48] sm:$0xff]  }
  0x74   : > { %6581 = vmatprep.subr.bf16.mxu0 %v7452_v21  ;;  %v7472_v21 = vld [vmem:[%s7907_s24 + $0x68] sm:$0xff]  }
  0x77   : > { %6582 = vmatpush3.bf16.msra.mxu0 %v7453_v22  ;;  %v7473_v22 = vld [vmem:[%s7907_s24 + $0x40] sm:$0xff]  }
  0x78   : > { %6873 = vmatprep.subr.bf16.mxu0 %v7838_v26 }
  0x7a   : > { %1221 = vmatmul.mubr.bf16.vlgmr.msra.gmra.mxu0 %v1089_v24  ;;  %v7475_v24 = vld [vmem:[%s7907_s24 + $0x98] sm:$0xff]  }
  0x7b   : > { %6881 = vmatprep.mubr.msk.bf16.mxu0 %vm7839_vm0, %v7838_v26  ;;  %6874 = vmatpush3.bf16.msra.mxu0 %v7460_v48  ;;  %v7488_v48 = vld [vmem:[%s7927_s20 + $0x8] sm:$0xff]  }
  0x7c   : > { %6875 = vmatprep.subr.bf16.mxu0 %v7838_v26 }
  0x7f   : > { %6876 = vmatpush3.bf16.msra.mxu0 %v7462_v50  ;;  %v7490_v50 = vld [vmem:[%s7927_s20] sm:$0xff]  }
  0x80   : > { %6877 = vmatprep.subr.bf16.mxu0 %v7838_v26 }
  0x83   : > { %6878 = vmatpush3.bf16.msra.mxu0 %v7464_v52 }
  0x84   : > { %6879 = vmatprep.subr.bf16.mxu0 %v7838_v26 }
  0x87   : > { %6880 = vmatpush3.bf16.msra.mxu0 %v7466_v54 }
  0x88   : > { %6897 = vmatprep.subr.bf16.mxu0 %v7838_v26 }
 0x13a   : > { %v6583_v30 = vpop.f32.mrf.mxu0 }
 0x13c   : > { %v6584_v32 = vpop.f32.mrf.mxu0 }
 0x13d   : > { %v6585_v33 = vadd.f32 %v6584_v32, %v6583_v30  ;;  %v7480_v30 = vld [vmem:[%s7907_s24 + $0xa8] sm:$0xff]   ;;  %v7482_v32 = vld [vmem:[%s7907_s24 + $0xa0] sm:$0xff]  }
 0x13e   : > { %v6586_v34 = vpop.f32.mrf.mxu0 }
 0x13f   : > { %v1223_v35 = vadd.f32 %v6585_v33, %v1091_v31  ;;  %v7481_v31 = vld [vmem:[%s7907_s24 + $0x80] sm:$0xff]  }
 0x140   : > { %v6587_v36 = vpop.f32.mrf.mxu0 }
 0x141   : > { %v5982_v37 = vmul.f32 -1.442695, %v1223_v35 }
 0x143   : > { %7663 = vpow2.f32 %v5982_v37 }
 0x150   : > { %v7664_v38 = vpop.eup %7663 }
 0x151   : > { %v1231_v39 = vadd.f32 1.0, %v7664_v38 }
 0x153   : > { %7665 = vrcp.f32 %v1231_v39 }
 0x160   : > { %v7666_v40 = vpop.eup %7665 }
 0x161   : > { %v1234_v41 = vmul.f32 %v7666_v40, %v1223_v35 }
 0x163   : > { %v1243_v43 = vpack.c.bf16 %v1234_v41, %v1234_v41 }
 0x165   : > { %6852 = vmatmul.mubr.msk.bf16.vlgmr.msra.gmra.mxu1 %vm1269_vm1, %v1243_v43  ;;  %v7483_v43 = vld [vmem:[%s9061_s6 + $0x18] sm:$0xff]  }
 0x166   : > { %6856 = vmatpush3.bf16.msra.mxu1 %v7458_v42  ;;  %6857 = vmatprep.mubr.msk.bf16.mxu1 %vm7839_vm0, %v7838_v26 }
 0x167   : > { %6861 = vmatprep.subr.bf16.mxu1 %v7838_v26 }
 0x16d   : > { %6858 = vmatmul.mubr.msk.bf16.vlgmr.msra.gmra.mxu1 %vm1340_vm2, %v1326_v46  ;;  %v7486_v46 = vld [vmem:[%s7927_s20 + $0x10] sm:$0xff]  }
 0x16e   : > { %6869 = vmatprep.mubr.msk.bf16.mxu1 %vm7839_vm0, %v7838_v26  ;;  %6862 = vmatpush3.bf16.msra.mxu1 %v7459_v47  ;;  %v7487_v47 = vld [vmem:[%s9061_s6 + $0x8] sm:$0xff]  }
 0x16f   : > { %6863 = vmatprep.subr.bf16.mxu1 %v7838_v26 }
 0x172   : > { %6864 = vmatpush3.bf16.msra.mxu1 %v7461_v49  ;;  %v7489_v49 = vld [vmem:[%s9061_s6] sm:$0xff]  }
 0x173   : > { %6865 = vmatprep.subr.bf16.mxu1 %v7838_v26 }
 0x176   : > { %6866 = vmatpush3.bf16.msra.mxu1 %v7463_v51 }
 0x177   : > { %6867 = vmatprep.subr.bf16.mxu1 %v7838_v26 }
 0x17a   : > { %6868 = vmatpush3.bf16.msra.mxu1 %v7465_v53 }
 0x17b   : > { %6885 = vmatprep.subr.bf16.mxu1 %v7838_v26 }
 0x225   : > { %v1307_v56 = vpop.f32.mrf.mxu1 }
 0x226   : > { %v1308_v58 = vadd.f32 %v1307_v56, %v1244_v55 }
 0x227   : > { %v6853_v59 = vpop.f32.mrf.mxu1 }
 0x228   : > { %v1314_v60 = vadd.f32 %v1313_v57, %v1308_v58 }
 0x229   : > { %v1310_v61 = vpop.f32.mrf.mxu1 }
 0x22a   : > { %v5988_v62 = vmul.f32 -1.442695, %v1314_v60 }
 0x22b   : > { %v6854_v63 = vpop.f32.mrf.mxu1 }
 0x22c   : > { %7667 = vpow2.f32 %v5988_v62 }
 0x22d   : > { %v1378_v1 = vpop.f32.mrf.mxu1 }
 0x22e   : > { %v8140_v2 = vadd.f32 %v5989_v0, %v1378_v1 }
 0x22f   : > { %v6859_v3 = vpop.f32.mrf.mxu1 }
 0x230   : > { %v1841_v4 = vsel %vm1269_vm1, %v8140_v2, 0.0 }
 0x231   : > { %1842 = vadd.xlane.f32.xlu0 %v1841_v4  ;;  %v1381_v5 = vpop.f32.mrf.mxu1 }
 0x232   : > { %v8144_v6 = vadd.f32 %v5989_v0, %v1381_v5 }
 0x233   : > { %v6860_v7 = vpop.f32.mrf.mxu1 }
 0x234   : > { %v1844_v8 = vsel %vm1269_vm1, %v8144_v6, 0.0 }
 0x235   : > { %1845 = vadd.xlane.f32.xlu0 %v1844_v8 }
 0x239   : > { %v7668_v9 = vpop.eup %7667 }
 0x23a   : > { %v1318_v10 = vadd.f32 1.0, %v7668_v9 }
 0x23c   : > { %7669 = vrcp.f32 %v1318_v10 }
 0x249   : > { %v7670_v12 = vpop.eup %7669 }
 0x24a   : > { %v1321_v13 = vmul.f32 %v7670_v12, %v1314_v60 }
 0x24c   : > { %v8150_v17 = vpack.c.bf16 %v1321_v13, %v1321_v13 }
 0x24e   : > { %6870 = vmatmul.mubr.msk.bf16.vlgmr.msra.gmra.mxu1 %vm1269_vm1, %v8150_v17  ;;  %6882 = vmatmul.mubr.msk.bf16.vlgmr.msra.gmra.mxu0 %vm1269_vm1, %v8150_v17 }
 0x24f   : > { %6886 = vmatpush3.bf16.msra.mxu1 %v7467_v14  ;;  %6898 = vmatpush3.bf16.msra.mxu0 %v7468_v16 }
 0x250   : > { %6887 = vmatprep.subr.bf16.mxu1 %v7838_v26  ;;  %6899 = vmatprep.subr.bf16.mxu0 %v7838_v26 }
 0x251   : > { %6893 = vmatprep.mubr.msk.bf16.mxu1 %vm7839_vm0, %v7838_v26  ;;  %6905 = vmatprep.mubr.msk.bf16.mxu0 %vm7839_vm0, %v7838_v26 }
 0x253   : > { %6888 = vmatpush3.bf16.msra.mxu1 %v7469_v18  ;;  %6900 = vmatpush3.bf16.msra.mxu0 %v7470_v19 }
 0x254   : > { %6889 = vmatprep.subr.bf16.mxu1 %v7838_v26  ;;  %6901 = vmatprep.subr.bf16.mxu0 %v7838_v26 }
 0x257   : > { %6890 = vmatpush3.bf16.msra.mxu1 %v7471_v20  ;;  %6902 = vmatpush3.bf16.msra.mxu0 %v7472_v21 }
 0x258   : > { %6891 = vmatprep.subr.bf16.mxu1 %v7838_v26  ;;  %6903 = vmatprep.subr.bf16.mxu0 %v7838_v26 }
 0x25b   : > { %6892 = vmatpush3.bf16.msra.mxu1 %v7473_v22  ;;  %6904 = vmatpush3.bf16.msra.mxu0 %v7474_v23  ;;  %v6005_v22 = vld [vmem:[%s7912_s30 + $0x1] sm:$0x1] }
 0x25c   : > { %6909 = vmatprep.subr.bf16.mxu1 %v7838_v26  ;;  %6921 = vmatprep.subr.bf16.mxu0 %v7838_v26 }
 0x25e   : > { %6894 = vmatmul.mubr.msk.bf16.vlgmr.msra.gmra.mxu1 %vm1269_vm1, %v8150_v17  ;;  %6906 = vmatmul.mubr.msk.bf16.vlgmr.msra.gmra.mxu0 %vm1269_vm1, %v8150_v17 }
 0x25f   : > { %6910 = vmatpush3.bf16.msra.mxu1 %v7475_v24  ;;  %6922 = vmatpush3.bf16.msra.mxu0 %v7476_v25  ;;  %v1398_v24 = vld [vmem:[%s7912_s30] sm:$0x1] }
 0x260   : > { %6911 = vmatprep.subr.bf16.mxu1 %v7838_v26  ;;  %6923 = vmatprep.subr.bf16.mxu0 %v7838_v26 }
 0x261   : > { %6917 = vmatprep.mubr.msk.bf16.mxu1 %vm7839_vm0, %v7838_v26  ;;  %6929 = vmatprep.mubr.msk.bf16.mxu0 %vm7839_vm0, %v7838_v26 }
 0x263   : > { %6912 = vmatpush3.bf16.msra.mxu1 %v7477_v27  ;;  %6924 = vmatpush3.bf16.msra.mxu0 %v7478_v28 }
 0x264   : > { %6913 = vmatprep.subr.bf16.mxu1 %v7838_v26  ;;  %6925 = vmatprep.subr.bf16.mxu0 %v7838_v26 }
 0x267   : > { %6914 = vmatpush3.bf16.msra.mxu1 %v7479_v29  ;;  %6926 = vmatpush3.bf16.msra.mxu0 %v7480_v30 }
 0x268   : > { %6915 = vmatprep.subr.bf16.mxu1 %v7838_v26  ;;  %6927 = vmatprep.subr.bf16.mxu0 %v7838_v26 }
 0x26b   : > { %6916 = vmatpush3.bf16.msra.mxu1 %v7481_v31  ;;  %6928 = vmatpush3.bf16.msra.mxu0 %v7482_v32 }
 0x26c   : > { %6933 = vmatprep.subr.bf16.mxu1 %v7838_v26  ;;  %6945 = vmatprep.subr.bf16.mxu0 %v7838_v26 }
 0x26e   : > { %6918 = vmatmul.mubr.msk.bf16.vlgmr.msra.gmra.mxu1 %vm1269_vm1, %v8150_v17  ;;  %6930 = vmatmul.mubr.msk.bf16.vlgmr.msra.gmra.mxu0 %vm1269_vm1, %v8150_v17 }
 0x26f   : > { %6941 = vmatprep.mubr.msk.bf16.mxu1 %vm7839_vm0, %v7838_v26  ;;  %6953 = vmatprep.mubr.msk.bf16.mxu0 %vm7839_vm0, %v7838_v26 }
 0x270   : > { %6934 = vmatpush3.bf16.msra.mxu1 %v7483_v43  ;;  %6946 = vmatpush3.bf16.msra.mxu0 %v7484_v44  ;;  %v7495_v43 = vld [vmem:[%s9062_s4 + $0x8] sm:$0xff]  }
 0x271   : > { %6935 = vmatprep.subr.bf16.mxu1 %v7838_v26  ;;  %6947 = vmatprep.subr.bf16.mxu0 %v7838_v26  ;;  %v7496_v44 = vld [vmem:[%s9077_s2 + $0x8] sm:$0xff]  }
 0x274   : > { %6936 = vmatpush3.bf16.msra.mxu1 %v7485_v45  ;;  %6948 = vmatpush3.bf16.msra.mxu0 %v7486_v46  ;;  %v7497_v45 = vld [vmem:[%s9062_s4] sm:$0xff]  }
 0x275   : > { %6937 = vmatprep.subr.bf16.mxu1 %v7838_v26  ;;  %6949 = vmatprep.subr.bf16.mxu0 %v7838_v26  ;;  %v7498_v46 = vld [vmem:[%s9077_s2] sm:$0xff]  }
 0x278   : > { %6938 = vmatpush3.bf16.msra.mxu1 %v7487_v47  ;;  %6950 = vmatpush3.bf16.msra.mxu0 %v7488_v48  ;;  %v7499_v47 = vld [vmem:[%s9078_s23 + $0x18] sm:$0xff]   ;;  %v7500_v48 = vld [vmem:[%s9078_s23 + $0x10] sm:$0xff]  }
 0x279   : > { %6939 = vmatprep.subr.bf16.mxu1 %v7838_v26  ;;  %6951 = vmatprep.subr.bf16.mxu0 %v7838_v26 }
 0x27c   : > { %6940 = vmatpush3.bf16.msra.mxu1 %v7489_v49  ;;  %6952 = vmatpush3.bf16.msra.mxu0 %v7490_v50  ;;  %v7501_v49 = vld [vmem:[%s9078_s23 + $0x8] sm:$0xff]   ;;  %v7502_v50 = vld [vmem:[%s9078_s23] sm:$0xff]  }
 0x27d   : > { %6957 = vmatprep.subr.bf16.mxu1 %v7838_v26  ;;  %6969 = vmatprep.subr.bf16.mxu0 %v7838_v26 }
 0x2ba   : > { %v1843_v33 = vpop.xlane.xlu0 %1842 }
 0x2bb   : > { %v1848_v34 = vmul.f32 0.015625, %v1843_v33 }
 0x2bd   : > { %v8207_v35 = vsub.f32 %v8140_v2, %v1848_v34 }
 0x2be   : > { %v1846_v36 = vpop.xlane.xlu0 %1845 }
 0x2bf   : > { %v1849_v37 = vmul.f32 0.015625, %v1846_v36  ;;  %v1852_v38 = vmul.f32 %v8207_v35, %v8207_v35 }
 0x2c1   : > { %v8212_v39 = vsub.f32 %v8144_v6, %v1849_v37  ;;  %v1854_v40 = vsel %vm1269_vm1, %v1852_v38, 0.0 }
 0x2c2   : > { %1855 = vadd.xlane.f32.xlu1 %v1854_v40  ;;  %v7491_v40 = vld [vmem:[%s9062_s4 + $0x18] sm:$0xff]  }
 0x2c3   : > { %v1853_v41 = vmul.f32 %v8212_v39, %v8212_v39 }
 0x2c5   : > { %v1857_v42 = vsel %vm1269_vm1, %v1853_v41, 0.0  ;;  %v7492_v41 = vld [vmem:[%s9077_s2 + $0x18] sm:$0xff]  }
 0x2c6   : > { %1858 = vadd.xlane.f32.xlu1 %v1857_v42 }
 0x30e   : > { %v1460_v51 = vpop.f32.mrf.mxu1  ;;  %v1535_v52 = vpop.f32.mrf.mxu0 }
 0x30f   : > { %v1536_v23 = vadd.f32 %v6005_v22, %v1535_v52  ;;  %v1461_v27 = vadd.f32 %v1460_v51, %v1398_v24  ;;  %v7503_v51 = vld [vmem:[%s9061_s6 + $0x38] sm:$0xff]   ;;  %v7504_v52 = vld [vmem:[%s9061_s6 + $0x30] sm:$0xff]   ;;  %v8333_v24 = vld [vmem:[%s9081_s3] sm:$0xff] }
 0x310   : > { %v6871_v53 = vpop.f32.mrf.mxu1  ;;  %v6883_v54 = vpop.f32.mrf.mxu0 }
 0x311   : > { %v1868_v25 = vadd.f32 1.0, %v1536_v23  ;;  %v1878_v31 = vrot.slane %v1461_v27, %v8086_v15  ;;  %v7505_v53 = vld [vmem:[%s9061_s6 + $0x28] sm:$0xff]   ;;  %v7506_v54 = vld [vmem:[%s9061_s6 + $0x20] sm:$0xff]  }
 0x312   : > { %v1463_v55 = vpop.f32.mrf.mxu1  ;;  %v1538_v56 = vpop.f32.mrf.mxu0 }
 0x313   : > { %v1872_v29 = vrot.slane %v1868_v25, %v8086_v15  ;;  %v7507_v55 = vld [vmem:[%s9062_s4 + $0x38] sm:$0xff]   ;;  %v7508_v56 = vld [vmem:[%s9062_s4 + $0x30] sm:$0xff]   ;;  %v8336_v25 = vld [vmem:[%s9082_s5] sm:$0xff] }
 0x314   : > { %v6872_v57 = vpop.f32.mrf.mxu1  ;;  %v6884_v58 = vpop.f32.mrf.mxu0 }
 0x315   : > { %v7509_v57 = vld [vmem:[%s9062_s4 + $0x28] sm:$0xff]   ;;  %v7510_v58 = vld [vmem:[%s9062_s4 + $0x20] sm:$0xff]  }
 0x31e   : > { %v8234_v59 = vpop.f32.mrf.mxu1  ;;  %v8236_v60 = vpop.f32.mrf.mxu0 }
 0x320   : > { %v6895_v61 = vpop.f32.mrf.mxu1  ;;  %v6907_v62 = vpop.f32.mrf.mxu0 }
 0x321   : > { %v7511_v61 = vld [vmem:[%s9078_s23 + $0x38] sm:$0xff]   ;;  %v7512_v62 = vld [vmem:[%s9078_s23 + $0x30] sm:$0xff]  }
 0x322   : > { %v1613_v63 = vpop.f32.mrf.mxu1  ;;  %v1688_v0 = vpop.f32.mrf.mxu0 }
 0x323   : > { %v7513_v63 = vld [vmem:[%s9078_s23 + $0x28] sm:$0xff]   ;;  %v7514_v0 = vld [vmem:[%s9078_s23 + $0x20] sm:$0xff]  }
 0x324   : > { %v6896_v1 = vpop.f32.mrf.mxu1  ;;  %v6908_v3 = vpop.f32.mrf.mxu0 }
 0x32e   : > { %v8238_v4 = vpop.f32.mrf.mxu1  ;;  %v8240_v5 = vpop.f32.mrf.mxu0 }
 0x330   : > { %v6919_v7 = vpop.f32.mrf.mxu1  ;;  %v6931_v8 = vpop.f32.mrf.mxu0 }
 0x332   : > { %v1763_v9 = vpop.f32.mrf.mxu1  ;;  %v1838_v10 = vpop.f32.mrf.mxu0 }
 0x334   : > { %v6920_v12 = vpop.f32.mrf.mxu1  ;;  %v6932_v13 = vpop.f32.mrf.mxu0 }
 0x34b   : > { %v1856_v14 = vpop.xlane.xlu1 %1855 }
 0x34c   : > { %v1860_v16 = vmul.f32 0.015625, %v1856_v14  ;;  %v6079_v14 = vld [vmem:[%s9079_s16] ss:$0 sm:$0xff] }
 0x34e   : > { %v1862_v18 = vadd.f32 1e-06, %v1860_v16  ;;  %v6085_v16 = vld [vmem:[%s9080_s22] ss:$0 sm:$0xff] }
 0x34f   : > { %v1859_v19 = vpop.xlane.xlu1 %1858 }
 0x350   : > { %7671 = vrsqrt.f32 %v1862_v18  ;;  %v1861_v20 = vmul.f32 0.015625, %v1859_v19 }
 0x352   : > { %v1863_v21 = vadd.f32 1e-06, %v1861_v20 }
 0x354   : > { %7673 = vrsqrt.f32 %v1863_v21 }
 0x35d   : > { %v7672_v28 = vpop.eup %7671 }
 0x35e   : > { %v1866_v30 = vmul.f32 %v7672_v28, %v8207_v35  ;;  %v7493_v35 = vld [vmem:[%s9062_s4 + $0x10] sm:$0xff]  }
 0x360   : > { %v1873_v32 = vmul.f32 %v1872_v29, %v1866_v30 }
 0x361   : > { %v7674_v33 = vpop.eup %7673 }
 0x362   : > { %v1879_v34 = vadd.f32 %v1878_v31, %v1873_v32  ;;  %v1867_v36 = vmul.f32 %v7674_v33, %v8212_v39  ;;  %v7494_v39 = vld [vmem:[%s9077_s2 + $0x10] sm:$0xff]  }
 0x364   : > { %v1874_v37 = vmul.f32 %v1872_v29, %v1867_v36  ;;  %v6067_v29 = vld [vmem:[%s9083_s8] ss:$0 sm:$0xff]  ;;  %v8343_v36 = vld [vmem:[%s9081_s3 + $0x8] sm:$0xff] }
 0x366   : > { %v1880_v38 = vadd.f32 %v1878_v31, %v1874_v37  ;;  %v8346_v37 = vld [vmem:[%s9082_s5 + $0x8] sm:$0xff] }
 0x368   : > { %v8250_v42 = vpack.c.bf16 %v1880_v38, %v1879_v34  ;;  %v6073_v34 = vld [vmem:[%s9084_s9] ss:$0 sm:$0xff] }
 0x36a   : > { %6942 = vmatmul.mubr.msk.bf16.vlgmr.msra.gmra.mxu1 %vm1269_vm1, %v8250_v42  ;;  %6954 = vmatmul.mubr.msk.bf16.vlgmr.msra.gmra.mxu0 %vm1269_vm1, %v8250_v42 }
 0x36b   : > { %6958 = vmatpush3.bf16.msra.mxu1 %v7491_v40  ;;  %6970 = vmatpush3.bf16.msra.mxu0 %v7492_v41 }
 0x36c   : > { %6959 = vmatprep.subr.bf16.mxu1 %v7838_v26  ;;  %6971 = vmatprep.subr.bf16.mxu0 %v7838_v26 }
 0x36d   : > { %6965 = vmatprep.mubr.msk.bf16.mxu1 %vm7839_vm0, %v7838_v26  ;;  %6977 = vmatprep.mubr.msk.bf16.mxu0 %vm7839_vm0, %v7838_v26 }
 0x36f   : > { %6960 = vmatpush3.bf16.msra.mxu1 %v7493_v35  ;;  %6972 = vmatpush3.bf16.msra.mxu0 %v7494_v39 }
 0x370   : > { %6961 = vmatprep.subr.bf16.mxu1 %v7838_v26  ;;  %6973 = vmatprep.subr.bf16.mxu0 %v7838_v26 }
 0x373   : > { %6962 = vmatpush3.bf16.msra.mxu1 %v7495_v43  ;;  %6974 = vmatpush3.bf16.msra.mxu0 %v7496_v44 }
 0x374   : > { %6963 = vmatprep.subr.bf16.mxu1 %v7838_v26  ;;  %6975 = vmatprep.subr.bf16.mxu0 %v7838_v26 }
 0x377   : > { %6964 = vmatpush3.bf16.msra.mxu1 %v7497_v45  ;;  %6976 = vmatpush3.bf16.msra.mxu0 %v7498_v46 }
 0x378   : > { %6981 = vmatprep.subr.bf16.mxu1 %v7838_v26  ;;  %6993 = vmatprep.subr.bf16.mxu0 %v7838_v26 }
 0x37a   : > { %6966 = vmatmul.mubr.msk.bf16.vlgmr.msra.gmra.mxu1 %vm1269_vm1, %v8250_v42  ;;  %6978 = vmatmul.mubr.msk.bf16.vlgmr.msra.gmra.mxu0 %vm1269_vm1, %v8250_v42 }
 0x37b   : > { %6982 = vmatpush3.bf16.msra.mxu1 %v7499_v47  ;;  %6989 = vmatprep.mubr.msk.bf16.mxu1 %vm7839_vm0, %v7838_v26 }
 0x37c   : > { %6983 = vmatprep.subr.bf16.mxu1 %v7838_v26  ;;  %6995 = vmatprep.mubr.msk.bf16.mxu0 %vm7839_vm0, %v7838_v26 }
 0x37f   : > { %6984 = vmatpush3.bf16.msra.mxu1 %v7500_v48 }
 0x380   : > { %6985 = vmatprep.subr.bf16.mxu1 %v7838_v26 }
 0x383   : > { %6986 = vmatpush3.bf16.msra.mxu1 %v7501_v49 }
 0x384   : > { %6987 = vmatprep.subr.bf16.mxu1 %v7838_v26 }
 0x387   : > { %6988 = vmatpush3.bf16.msra.mxu1 %v7502_v50 }
 0x388   : > { %7005 = vmatprep.subr.bf16.mxu1 %v7838_v26 }
 0x38a   : > { %6990 = vmatmul.mubr.msk.bf16.vlgmr.msra.gmra.mxu1 %vm1269_vm1, %v8250_v42 }
 0x38b   : > { %7006 = vmatpush3.bf16.msra.mxu1 %v7503_v51  ;;  %7013 = vmatprep.mubr.msk.bf16.mxu1 %vm7839_vm0, %v7838_v26 }
 0x38c   : > { %7007 = vmatprep.subr.bf16.mxu1 %v7838_v26 }
 0x38f   : > { %7008 = vmatpush3.bf16.msra.mxu1 %v7504_v52 }
 0x390   : > { %7009 = vmatprep.subr.bf16.mxu1 %v7838_v26 }
 0x393   : > { %7010 = vmatpush3.bf16.msra.mxu1 %v7505_v53 }
 0x394   : > { %7011 = vmatprep.subr.bf16.mxu1 %v7838_v26 }
 0x397   : > { %7012 = vmatpush3.bf16.msra.mxu1 %v7506_v54 }
 0x398   : > { %7029 = vmatprep.subr.bf16.mxu1 %v7838_v26 }
 0x39a   : > { %7014 = vmatmul.mubr.msk.bf16.vlgmr.msra.gmra.mxu1 %vm1269_vm1, %v8250_v42 }
 0x39b   : > { %7030 = vmatpush3.bf16.msra.mxu1 %v7507_v55  ;;  %7037 = vmatprep.mubr.msk.bf16.mxu1 %vm7839_vm0, %v7838_v26 }
 0x39c   : > { %7031 = vmatprep.subr.bf16.mxu1 %v7838_v26 }
 0x39f   : > { %7032 = vmatpush3.bf16.msra.mxu1 %v7508_v56 }
 0x3a0   : > { %7033 = vmatprep.subr.bf16.mxu1 %v7838_v26 }
 0x3a3   : > { %7034 = vmatpush3.bf16.msra.mxu1 %v7509_v57  ;;  %v6091_v57 = vld [vmem:[%s9085_s13] ss:$0 sm:$0xff] }
 0x3a4   : > { %7035 = vmatprep.subr.bf16.mxu1 %v7838_v26 }
 0x3a7   : > { %7036 = vmatpush3.bf16.msra.mxu1 %v7510_v58 }
 0x3a8   : > { %7053 = vmatprep.subr.bf16.mxu1 %v7838_v26 }
 0x3aa   : > { %7038 = vmatmul.mubr.msk.bf16.vlgmr.msra.gmra.mxu1 %vm1269_vm1, %v8250_v42 }
 0x3ab   : > { %7054 = vmatpush3.bf16.msra.mxu1 %v7511_v61  ;;  %7061 = vmatprep.mubr.msk.bf16.mxu1 %vm7839_vm0, %v7838_v26 }
 0x3ac   : > { %7055 = vmatprep.subr.bf16.mxu1 %v7838_v26 }
 0x3af   : > { %7056 = vmatpush3.bf16.msra.mxu1 %v7512_v62 }
 0x3b0   : > { %7057 = vmatprep.subr.bf16.mxu1 %v7838_v26 }
 0x3b3   : > { %7058 = vmatpush3.bf16.msra.mxu1 %v7513_v63 }
 0x3b4   : > { %7059 = vmatprep.subr.bf16.mxu1 %v7838_v26 }
 0x3b7   : > { %7060 = vmatpush3.bf16.msra.mxu1 %v7514_v0 }
 0x3b8   : > { %7077 = vmatprep.subr.bf16.mxu1 %v7838_v26 }
 0x3ba   : > { %7062 = vmatmul.mubr.msk.bf16.vlgmr.msra.gmra.mxu1 %vm1269_vm1, %v8250_v42 }
 0x3bb   : > { %7081 = vmatprep.mubr.msk.bf16.mxu1 %vm7839_vm0, %v7838_v26 }
 0x42a   : > { %v1958_v1 = vpop.f32.mrf.mxu1  ;;  %v2038_v3 = vpop.f32.mrf.mxu0 }
 0x42b   : > { %v1959_v44 = vadd.f32 %v6067_v29, %v1958_v1  ;;  %v2039_v45 = vadd.f32 %v6073_v34, %v2038_v3 }
 0x42c   : > { %v6943_v7 = vpop.f32.mrf.mxu1  ;;  %v6955_v8 = vpop.f32.mrf.mxu0 }
 0x42d   : > { %v2285_v51 = vmul.f32 %v1959_v44, %v8333_v24  ;;  %v2287_v52 = vmul.f32 %v2039_v45, %v8336_v25 }
 0x42e   : > { %v1961_v9 = vpop.f32.mrf.mxu1  ;;  %v2041_v10 = vpop.f32.mrf.mxu0 }
 0x42f   : > { %v1962_v41 = vadd.f32 %v6067_v29, %v1961_v9  ;;  %v2042_v35 = vadd.f32 %v6073_v34, %v2041_v10  ;;  %v2289_v56 = vadd.f32 %v2287_v52, %v2285_v51 }
 0x430   : > { %v6944_v12 = vpop.f32.mrf.mxu1  ;;  %v6956_v13 = vpop.f32.mrf.mxu0 }
 0x431   : > { %v2286_v48 = vmul.f32 %v1962_v41, %v8343_v36  ;;  %v2288_v49 = vmul.f32 %v2042_v35, %v8346_v37 }
 0x433   : > { %v2290_v54 = vadd.f32 %v2288_v49, %v2286_v48 }
 0x435   : > { %v2297_v61 = vpack.c.bf16 %v2290_v54, %v2289_v56  ;;  %v7515_v56 = vld [vmem:[%s7927_s20 + $0x38] sm:$0xff]  }
 0x43a   : > { %v2118_v18 = vpop.f32.mrf.mxu1  ;;  %v2198_v19 = vpop.f32.mrf.mxu0 }
 0x43b   : > { %v2119_v20 = vadd.f32 %v6079_v14, %v2118_v18  ;;  %v2199_v21 = vadd.f32 %v6085_v16, %v2198_v19  ;;  %v6168_v19 = vld [vmem:[%s9085_s13 + $0x1] ss:$0 sm:$0xff] }
 0x43c   : > { %v6967_v22 = vpop.f32.mrf.mxu1  ;;  %v6979_v23 = vpop.f32.mrf.mxu0 }
 0x43d   : > { %v2291_v30 = vmul.f32 %v2119_v20, %v8333_v24  ;;  %v2293_v31 = vmul.f32 %v2199_v21, %v8336_v25 }
 0x43e   : > { %v2121_v27 = vpop.f32.mrf.mxu1  ;;  %v2201_v28 = vpop.f32.mrf.mxu0 }
 0x43f   : > { %v2122_v32 = vadd.f32 %v6079_v14, %v2121_v27  ;;  %v2202_v33 = vadd.f32 %v6085_v16, %v2201_v28  ;;  %v2295_v46 = vadd.f32 %v2293_v31, %v2291_v30 }
 0x440   : > { %v6968_v38 = vpop.f32.mrf.mxu1  ;;  %v6980_v40 = vpop.f32.mrf.mxu0 }
 0x441   : > { %v2292_v39 = vmul.f32 %v2122_v32, %v8343_v36  ;;  %v2294_v43 = vmul.f32 %v2202_v33, %v8346_v37 }
 0x443   : > { %v2296_v47 = vadd.f32 %v2294_v43, %v2292_v39 }
 0x445   : > { %v2298_v50 = vpack.c.bf16 %v2296_v47, %v2295_v46 }
 0x447   : > { %v2304_v53 = vsel %vm2299_vm3, %v2298_v50, 0 }
 0x448   : > { %6994 = vmatpush3.bf16.xpose.msra.mxu0 %v2304_v53 }
 0x449   : > { %6999 = vmatprep.subr.bf16.mxu0 %v7838_v26 }
 0x44a   : > { %v2278_v55 = vpop.f32.mrf.mxu1 }
 0x44b   : > { %v2279_v63 = vadd.f32 %v6091_v57, %v2278_v55 }
 0x44c   : > { %v6991_v58 = vpop.f32.mrf.mxu1 }
 0x44d   : > { %v7516_v58 = vld [vmem:[%s7927_s20 + $0x30] sm:$0xff]  }
 0x44e   : > { %v2281_v62 = vpop.f32.mrf.mxu1 }
 0x44f   : > { %v2282_v0 = vadd.f32 %v6091_v57, %v2281_v62  ;;  %6996 = vmatmul.mubr.msk.bf16.vlgmr.msra.gmra.mxu0 %vm2299_vm3, %v2297_v61  ;;  %v7517_v61 = vld [vmem:[%s7927_s20 + $0x28] sm:$0xff]   ;;  %v7518_v62 = vld [vmem:[%s7927_s20 + $0x20] sm:$0xff]  }
 0x450   : > { %v6992_v1 = vpop.f32.mrf.mxu1  ;;  %7001 = vmatprep.mubr.msk.bf16.mxu0 %vm7839_vm0, %v7838_v26 }
 0x451   : > { %v2372_v3 = vpack.c.bf16 %v2282_v0, %v2279_v63  ;;  %v7519_v63 = vld [vmem:[%s9077_s2 + $0x38] sm:$0xff]   ;;  %v7520_v0 = vld [vmem:[%s9077_s2 + $0x30] sm:$0xff]   ;;  %v7521_v1 = vld [vmem:[%s9077_s2 + $0x28] sm:$0xff]  }
 0x453   : > { %7000 = vmatpush3.bf16.msra.mxu0 %v2372_v3  ;;  %v7522_v3 = vld [vmem:[%s9077_s2 + $0x20] sm:$0xff]  }
 0x454   : > { %7017 = vmatprep.subr.bf16.mxu0 %v7838_v26 }
 0x45a   : > { %v8361_v7 = vpop.f32.mrf.mxu1 }
 0x45c   : > { %v7015_v8 = vpop.f32.mrf.mxu1 }
 0x45e   : > { %v8363_v9 = vpop.f32.mrf.mxu1 }
 0x460   : > { %v7016_v10 = vpop.f32.mrf.mxu1 }
 0x46a   : > { %v8365_v12 = vpop.f32.mrf.mxu1 }
 0x46c   : > { %v7039_v13 = vpop.f32.mrf.mxu1 }
 0x46e   : > { %v8367_v14 = vpop.f32.mrf.mxu1 }
 0x470   : > { %v7040_v16 = vpop.f32.mrf.mxu1 }
 0x47a   : > { %v2825_v18 = vpop.f32.mrf.mxu1 }
 0x47b   : > { %v8370_v22 = vadd.f32 %v6168_v19, %v2825_v18 }
 0x47c   : > { %v7063_v20 = vpop.f32.mrf.mxu1 }
 0x47d   : > { %v6108_v20 = vld [vmem:[%s9083_s8 + $0x1] ss:$0 sm:$0xff] }
 0x47e   : > { %v2828_v21 = vpop.f32.mrf.mxu1 }
 0x47f   : > { %v8372_v23 = vadd.f32 %v6168_v19, %v2828_v21  ;;  %v6123_v19 = vld [vmem:[%s9084_s9 + $0x1] ss:$0 sm:$0xff] }
 0x480   : > { %v7064_v27 = vpop.f32.mrf.mxu1 }
 0x481   : > { %v2918_v28 = vpack.c.bf16 %v8372_v23, %v8370_v22 }
 0x50f   : > { %v2340_v29 = vpop.f32.mrf.mxu0 }
 0x510   : > { %v2347_v30 = vmul.f32 0.17677669, %v2340_v29 }
 0x511   : > { %v6997_v31 = vpop.f32.mrf.mxu0 }
 0x512   : > { %v2349_v32 = vsel %vm1340_vm2, %v2347_v30, -inf }
 0x513   : > { %2350 = vmax.xlane.f32.xlu0 %v2349_v32  ;;  %v2343_v33 = vpop.f32.mrf.mxu0 }
 0x514   : > { %v2348_v34 = vmul.f32 0.17677669, %v2343_v33 }
 0x515   : > { %v6998_v38 = vpop.f32.mrf.mxu0 }
 0x516   : > { %v2352_v40 = vsel %vm1340_vm2, %v2348_v34, -inf }
 0x517   : > { %2353 = vmax.xlane.f32.xlu1 %v2352_v40 }
 0x59c   : > { %v2351_v41 = vpop.xlane.xlu0 %2350 }
 0x59d   : > { %v2355_v35 = vsub.f32 %v2347_v30, %v2351_v41  ;;  %v2501_v30 = vadd.f32 %v6108_v20, %v8363_v9 }
 0x59f   : > { %v2357_v39 = vmul.f32 1.442695, %v2355_v35  ;;  %v2833_v40 = vmul.f32 %v2501_v30, %v8343_v36 }
 0x5a0   : > { %v2354_v43 = vpop.xlane.xlu1 %2353 }
 0x5a1   : > { %7675 = vpow2.f32 %v2357_v39  ;;  %v2356_v44 = vsub.f32 %v2348_v34, %v2354_v43 }
 0x5a3   : > { %v2359_v45 = vmul.f32 1.442695, %v2356_v44  ;;  %v6153_v44 = vld [vmem:[%s9080_s22 + $0x1] ss:$0 sm:$0xff] }
 0x5a5   : > { %7677 = vpow2.f32 %v2359_v45  ;;  %v6138_v45 = vld [vmem:[%s9079_s16 + $0x1] ss:$0 sm:$0xff] }
 0x5a6   : > { %v2662_v9 = vadd.f32 %v6138_v45, %v8365_v12 }
 0x5ae   : > { %v7676_v46 = vpop.eup %7675 }
 0x5af   : > { %v2361_v47 = vsel %vm1340_vm2, %v7676_v46, 0.0 }
 0x5b0   : > { %2362 = vadd.xlane.f32.xlu0 %v2361_v47 }
 0x5b2   : > { %v7678_v48 = vpop.eup %7677 }
 0x5b3   : > { %v2364_v49 = vsel %vm1340_vm2, %v7678_v48, 0.0 }
 0x5b4   : > { %2365 = vadd.xlane.f32.xlu1 %v2364_v49 }
 0x639   : > { %v2363_v50 = vpop.xlane.xlu0 %2362 }
 0x63a   : > { %7679 = vrcp.f32 %v2363_v50 }
 0x63d   : > { %v2366_v51 = vpop.xlane.xlu1 %2365 }
 0x63e   : > { %7681 = vrcp.f32 %v2366_v51 }
 0x647   : > { %v7680_v52 = vpop.eup %7679 }
 0x648   : > { %v2369_v54 = vmul.f32 %v7680_v52, %v7676_v46 }
 0x64b   : > { %v7682_v53 = vpop.eup %7681 }
 0x64c   : > { %v2370_v55 = vmul.f32 %v7682_v53, %v7678_v48  ;;  %v2665_v48 = vadd.f32 %v6138_v45, %v8367_v14  ;;  %v2838_v53 = vmul.f32 %v2662_v9, %v8333_v24  ;;  %v6186_v9 = vld [vmem:[%s9087_s19] ss:$0 sm:$0xff] }
 0x64e   : > { %v2371_v57 = vpack.c.bf16 %v2370_v55, %v2369_v54  ;;  %v2839_v54 = vmul.f32 %v2665_v48, %v8343_v36 }
 0x650   : > { %7002 = vmatmul.mubr.msk.bf16.vlgmr.msra.gmra.mxu0 %vm1340_vm2, %v2371_v57 }
 0x651   : > { %7018 = vmatpush3.bf16.msra.mxu0 %v7515_v56  ;;  %7025 = vmatprep.mubr.msk.bf16.mxu0 %vm7839_vm0, %v7838_v26 }
 0x652   : > { %7019 = vmatprep.subr.bf16.mxu0 %v7838_v26 }
 0x655   : > { %7020 = vmatpush3.bf16.msra.mxu0 %v7516_v58 }
 0x656   : > { %7021 = vmatprep.subr.bf16.mxu0 %v7838_v26 }
 0x659   : > { %7022 = vmatpush3.bf16.msra.mxu0 %v7517_v61 }
 0x65a   : > { %7023 = vmatprep.subr.bf16.mxu0 %v7838_v26 }
 0x65d   : > { %7024 = vmatpush3.bf16.msra.mxu0 %v7518_v62 }
 0x65e   : > { %7041 = vmatprep.subr.bf16.mxu0 %v7838_v26 }
 0x660   : > { %7026 = vmatmul.mubr.msk.bf16.vlgmr.msra.gmra.mxu0 %vm1269_vm1, %v8250_v42 }
 0x661   : > { %7042 = vmatpush3.bf16.msra.mxu0 %v7519_v63  ;;  %7049 = vmatprep.mubr.msk.bf16.mxu0 %vm7839_vm0, %v7838_v26 }
 0x662   : > { %7043 = vmatprep.subr.bf16.mxu0 %v7838_v26 }
 0x665   : > { %7044 = vmatpush3.bf16.msra.mxu0 %v7520_v0 }
 0x666   : > { %7045 = vmatprep.subr.bf16.mxu0 %v7838_v26 }
 0x669   : > { %7046 = vmatpush3.bf16.msra.mxu0 %v7521_v1 }
 0x66a   : > { %7047 = vmatprep.subr.bf16.mxu0 %v7838_v26 }
 0x66d   : > { %7048 = vmatpush3.bf16.msra.mxu0 %v7522_v3 }
 0x66e   : > { %7065 = vmatprep.subr.bf16.mxu0 %v7838_v26 }
 0x670   : > { %7050 = vmatmul.mubr.msk.bf16.vlgmr.msra.gmra.mxu0 %vm1269_vm1, %v8250_v42  ;;  %v2498_v42 = vadd.f32 %v6108_v20, %v8361_v7 }
 0x671   : > { %7067 = vmatprep.mubr.msk.bf16.mxu0 %vm7839_vm0, %v7838_v26 }
 0x672   : > { %v2832_v38 = vmul.f32 %v2498_v42, %v8333_v24 }
 0x710   : > { %v8407_v8 = vpop.f32.mrf.mxu0 }
 0x712   : > { %v7003_v10 = vpop.f32.mrf.mxu0 }
 0x714   : > { %v8409_v13 = vpop.f32.mrf.mxu0 }
 0x715   : > { %v2421_v16 = vpack.c.bf16 %v8409_v13, %v8407_v8 }
 0x716   : > { %v7004_v18 = vpop.f32.mrf.mxu0 }
 0x720   : > { %v2579_v21 = vpop.f32.mrf.mxu0 }
 0x721   : > { %v2580_v27 = vadd.f32 %v6123_v19, %v2579_v21 }
 0x722   : > { %v7027_v29 = vpop.f32.mrf.mxu0 }
 0x723   : > { %v2834_v32 = vmul.f32 %v2580_v27, %v8336_v25 }
 0x724   : > { %v2582_v31 = vpop.f32.mrf.mxu0 }
 0x725   : > { %v2583_v33 = vadd.f32 %v6123_v19, %v2582_v31  ;;  %v2836_v35 = vadd.f32 %v2834_v32, %v2832_v38  ;;  %v7523_v32 = vld [vmem:[%s9086_s14 + $0x8] sm:$0xff]   ;;  %v7525_v38 = vld [vmem:[%s9086_s14 + $0x18] sm:$0xff]  }
 0x726   : > { %v7028_v34 = vpop.f32.mrf.mxu0  ;;  %7078 = vmatpush3.bf16.msra.mxu1 %v7525_v38 }
 0x727   : > { %v2835_v41 = vmul.f32 %v2583_v33, %v8346_v37  ;;  %v7524_v34 = vld [vmem:[%s9086_s14] sm:$0xff]   ;;  %7079 = vmatprep.subr.bf16.mxu1 %v7838_v26 }
 0x729   : > { %v2837_v39 = vadd.f32 %v2835_v41, %v2833_v40  ;;  %v7526_v40 = vld [vmem:[%s9086_s14 + $0x10] sm:$0xff]  }
 0x72a   : > { %7080 = vmatpush3.bf16.msra.mxu1 %v7526_v40 }
 0x72b   : > { %v2844_v43 = vpack.c.bf16 %v2837_v39, %v2836_v35 }
 0x730   : > { %v2743_v46 = vpop.f32.mrf.mxu0 }
 0x731   : > { %v2744_v7 = vadd.f32 %v6153_v44, %v2743_v46 }
 0x732   : > { %v7051_v47 = vpop.f32.mrf.mxu0 }
 0x733   : > { %v2840_v50 = vmul.f32 %v2744_v7, %v8336_v25 }
 0x734   : > { %v2746_v49 = vpop.f32.mrf.mxu0 }
 0x735   : > { %v2747_v51 = vadd.f32 %v6153_v44, %v2746_v49  ;;  %v2842_v56 = vadd.f32 %v2840_v50, %v2838_v53 }
 0x736   : > { %v7052_v52 = vpop.f32.mrf.mxu0 }
 0x737   : > { %v2841_v55 = vmul.f32 %v2747_v51, %v8346_v37 }
 0x739   : > { %v2843_v57 = vadd.f32 %v2841_v55, %v2839_v54 }
 0x73b   : > { %v2845_v58 = vpack.c.bf16 %v2843_v57, %v2842_v56 }
 0x73d   : > { %v2850_v61 = vsel %vm2299_vm3, %v2845_v58, 0 }
 0x73e   : > { %7066 = vmatpush3.bf16.xpose.msra.mxu0 %v2850_v61 }
 0x73f   : > { %7071 = vmatprep.subr.bf16.mxu0 %v7838_v26 }
 0x745   : > { %7068 = vmatmul.mubr.msk.bf16.vlgmr.msra.gmra.mxu0 %vm2299_vm3, %v2844_v43 }
 0x746   : > { %7072 = vmatpush3.bf16.msra.mxu0 %v2918_v28  ;;  %7073 = vmatprep.mubr.msk.bf16.mxu0 %vm7839_vm0, %v7838_v26 }
 0x747   : > { %7085 = vmatprep.subr.bf16.mxu0 %v7838_v26 }
 0x805   : > { %v2886_v24 = vpop.f32.mrf.mxu0 }
 0x806   : > { %v2893_v25 = vmul.f32 0.17677669, %v2886_v24 }
 0x807   : > { %v7069_v36 = vpop.f32.mrf.mxu0 }
 0x808   : > { %v2895_v37 = vsel %vm1340_vm2, %v2893_v25, -inf }
 0x809   : > { %2896 = vmax.xlane.f32.xlu0 %v2895_v37  ;;  %v2889_v12 = vpop.f32.mrf.mxu0 }
 0x80a   : > { %v2894_v14 = vmul.f32 0.17677669, %v2889_v12 }
 0x80b   : > { %v7070_v62 = vpop.f32.mrf.mxu0 }
 0x80c   : > { %v2898_v63 = vsel %vm1340_vm2, %v2894_v14, -inf }
 0x80d   : > { %2899 = vmax.xlane.f32.xlu1 %v2898_v63 }
 0x892   : > { %v2897_v0 = vpop.xlane.xlu0 %2896 }
 0x893   : > { %v2901_v22 = vsub.f32 %v2893_v25, %v2897_v0 }
 0x895   : > { %v2903_v23 = vmul.f32 1.442695, %v2901_v22  ;;  %v7529_v22 = vld [vmem:[%s9088_s25 + $0x34] ss:$8 sps:$4 sm:$0xff]  }
 0x896   : > { %v2900_v28 = vpop.xlane.xlu1 %2899  ;;  %3209 = vmatprep.subr.bf16.mxu1 %v7529_v22  ;;  %v7565_v22 = vld [vmem:[%s9089_s29 + $0x50] sm:$0xff]  }
 0x897   : > { %7683 = vpow2.f32 %v2903_v23  ;;  %v2902_v1 = vsub.f32 %v2894_v14, %v2900_v28  ;;  %v7527_v23 = vld [vmem:[%s9088_s25 + $0x30] ss:$8 sps:$4 sm:$0xff]   ;;  %v7532_v28 = vld [vmem:[%s9088_s25 + $0x24] ss:$8 sps:$4 sm:$0xff]  }
 0x899   : > { %v2905_v3 = vmul.f32 1.442695, %v2902_v1  ;;  %v7530_v1 = vld [vmem:[%s9088_s25 + $0x20] ss:$8 sps:$4 sm:$0xff]  }
 0x89b   : > { %7685 = vpow2.f32 %v2905_v3  ;;  %v7535_v3 = vld [vmem:[%s9088_s25 + $0x14] ss:$8 sps:$4 sm:$0xff]  }
 0x8a4   : > { %v7684_v10 = vpop.eup %7683 }
 0x8a5   : > { %v2907_v18 = vsel %vm1340_vm2, %v7684_v10, 0.0 }
 0x8a6   : > { %2908 = vadd.xlane.f32.xlu0 %v2907_v18  ;;  %v7536_v18 = vld [vmem:[%s9088_s25] ss:$8 sps:$4 sm:$0xff]  }
 0x8a8   : > { %v7686_v19 = vpop.eup %7685 }
 0x8a9   : > { %v2910_v20 = vsel %vm1340_vm2, %v7686_v19, 0.0 }
 0x8aa   : > { %2911 = vadd.xlane.f32.xlu1 %v2910_v20  ;;  %v7840_v20 = vmov 0  }
 0x92f   : > { %v2909_v21 = vpop.xlane.xlu0 %2908 }
 0x930   : > { %7687 = vrcp.f32 %v2909_v21 }
 0x933   : > { %v2912_v27 = vpop.xlane.xlu1 %2911 }
 0x934   : > { %7689 = vrcp.f32 %v2912_v27 }
 0x93d   : > { %v7688_v29 = vpop.eup %7687 }
 0x93e   : > { %v2915_v30 = vmul.f32 %v7688_v29, %v7684_v10  ;;  %v7533_v10 = vld [vmem:[%s9088_s25 + $0x10] ss:$8 sps:$4 sm:$0xff]  }
 0x941   : > { %v7690_v42 = vpop.eup %7689 }
 0x942   : > { %v2916_v31 = vmul.f32 %v7690_v42, %v7686_v19  ;;  %v7538_v19 = vld [vmem:[%s9088_s25 + $0x4] ss:$8 sps:$4 sm:$0xff]  }
 0x944   : > { %v2917_v33 = vpack.c.bf16 %v2916_v31, %v2915_v30 }
 0x946   : > { %7074 = vmatmul.mubr.msk.bf16.vlgmr.msra.gmra.mxu0 %vm1340_vm2, %v2917_v33 }
 0x947   : > { %7086 = vmatpush3.bf16.msra.mxu0 %v7523_v32  ;;  %7089 = vmatprep.mubr.msk.bf16.mxu0 %vm7839_vm0, %v7838_v26  ;;  %v6047_v32 = vld [vmem:[%s7912_s30 + $0x4] sm:$0x1] }
 0x948   : > { %7087 = vmatprep.subr.bf16.mxu0 %v7838_v26  ;;  %v1761_v33 = vadd.f32 %v6047_v32, %v8238_v4 }
 0x94a   : > { %v3124_v38 = vadd.f32 1.0, %v1761_v33 }
 0x94b   : > { %7088 = vmatpush3.bf16.msra.mxu0 %v7524_v34  ;;  %v6033_v34 = vld [vmem:[%s7912_s30 + $0x3] sm:$0x1] }
 0x94c   : > { %v1686_v40 = vadd.f32 %v6033_v34, %v8236_v60  ;;  %v7540_v60 = vld [vmem:[%s7907_s24 + $0xd0] sm:$0xff]  }
 0x94e   : > { %7090 = vmatmul.mubr.msk.bf16.vlgmr.msra.gmra.mxu0 %vm2299_vm3, %v2421_v16  ;;  %v6019_v16 = vld [vmem:[%s7912_s30 + $0x2] sm:$0x1] }
 0x94f   : > { %v1611_v7 = vadd.f32 %v6019_v16, %v8234_v59  ;;  %v7539_v16 = vld [vmem:[%s7907_s24 + $0xd8] sm:$0xff]  }
 0x951   : > { %v3093_v50 = vrot.slane %v1611_v7, %v8086_v15 }
 0xa06   : > { %v2956_v41 = vpop.f32.mrf.mxu0 }
 0xa08   : > { %v7075_v35 = vpop.f32.mrf.mxu0 }
 0xa09   : > { %v3128_v35 = vrot.slane %v3124_v38, %v8086_v15 }
 0xa0a   : > { %v2959_v39 = vpop.f32.mrf.mxu0 }
 0xa0b   : > { %v2968_v43 = vpack.c.bf16 %v2959_v39, %v2956_v41 }
 0xa0c   : > { %v7076_v44 = vpop.f32.mrf.mxu0 }
 0xa0d   : > { %7082 = vmatmul.mubr.msk.bf16.vlgmr.msra.gmra.mxu1 %vm2299_vm3, %v2968_v43  ;;  %v3134_v43 = vrot.slane %v1686_v40, %v8086_v15 }
 0xa0e   : > { %v3074_v45 = vpop.f32.mrf.mxu0  ;;  %3210 = vmatpush1.bf16.msra.mxu1 %v7527_v23  ;;  %3233 = vmatprep.mubr.bf16.mxu1 %v7840_v20  ;;  %v7566_v23 = vld [vmem:[%s9089_s29 + $0x10] sm:$0xff]  }
 0xa0f   : > { %3211 = vmatprep.subr.bf16.mxu1 %v7532_v28  ;;  %v7567_v28 = vld [vmem:[%s9089_s29 + $0x48] sm:$0xff]  }
 0xa10   : > { %v7091_v46 = vpop.f32.mrf.mxu0 }
 0xa12   : > { %v3077_v8 = vpop.f32.mrf.mxu0  ;;  %3212 = vmatpush1.bf16.msra.mxu1 %v7530_v1  ;;  %v7568_v1 = vld [vmem:[%s9089_s29 + $0x8] sm:$0xff]  }
 0xa13   : > { %3213 = vmatprep.subr.bf16.mxu1 %v7535_v3  ;;  %v7569_v3 = vld [vmem:[%s9089_s29 + $0x40] sm:$0xff]  }
 0xa14   : > { %v7092_v13 = vpop.f32.mrf.mxu0 }
 0xa16   : > { %3214 = vmatpush1.bf16.msra.mxu1 %v7533_v10  ;;  %v7570_v10 = vld [vmem:[%s9089_s29] sm:$0xff]  }
 0xa17   : > { %3215 = vmatprep.subr.bf16.mxu1 %v7538_v19 }
 0xa1a   : > { %3216 = vmatpush1.bf16.msra.mxu1 %v7536_v18  ;;  %v3146_v18 = vld [vmem:[%s9090_s26] sm:$0x3] }
 0xa1b   : > { %7093 = vmatprep.subr.bf16.mxu1 %v7838_v26  ;;  %v3151_v19 = vrot.slane %v3146_v18, %v8086_v15 }
 0xacd   : > { %v3018_v47 = vpop.f32.mrf.mxu1 }
 0xace   : > { %v3075_v48 = vadd.f32 %v3074_v45, %v3018_v47  ;;  %v7541_v47 = vld [vmem:[%s7907_s24 + $0xc8] sm:$0xff]  }
 0xacf   : > { %v7083_v49 = vpop.f32.mrf.mxu1 }
 0xad0   : > { %v3088_v51 = vadd.f32 %v6186_v9, %v3075_v48  ;;  %v7543_v48 = vld [vmem:[%s7907_s24 + $0xf8] sm:$0xff]   ;;  %v7544_v49 = vld [vmem:[%s7907_s24 + $0xf0] sm:$0xff]  }
 0xad1   : > { %v3021_v52 = vpop.f32.mrf.mxu1 }
 0xad2   : > { %v3094_v53 = vmul.f32 %v3093_v50, %v3088_v51  ;;  %v3078_v54 = vadd.f32 %v3077_v8, %v3021_v52  ;;  %v7546_v51 = vld [vmem:[%s7907_s24 + $0xe0] sm:$0xff]   ;;  %v7547_v52 = vld [vmem:[%s7907_s24 + $0x138] sm:$0xff]  }
 0xad3   : > { %v7084_v55 = vpop.f32.mrf.mxu1 }
 0xad4   : > { %v3089_v56 = vadd.f32 %v6186_v9, %v3078_v54  ;;  %v8461_v57 = vadd.f32 %v3094_v53, %v8140_v2  ;;  %v7542_v9 = vld [vmem:[%s7907_s24 + $0xc0] sm:$0xff]   ;;  %v7548_v53 = vld [vmem:[%s7907_s24 + $0x130] sm:$0xff]   ;;  %v7549_v54 = vld [vmem:[%s7907_s24 + $0x128] sm:$0xff]  }
 0xad5   : > { %v7550_v55 = vld [vmem:[%s7907_s24 + $0x120] sm:$0xff]  }
 0xad6   : > { %v3095_v58 = vmul.f32 %v3093_v50, %v3089_v56  ;;  %v3098_v61 = vsel %vm1269_vm1, %v8461_v57, 0.0  ;;  %v7545_v50 = vld [vmem:[%s7907_s24 + $0xe8] sm:$0xff]   ;;  %v7551_v56 = vld [vmem:[%s7907_s24 + $0x178] sm:$0xff]  }
 0xad7   : > { %3099 = vadd.xlane.f32.xlu0 %v3098_v61  ;;  %v7553_v61 = vld [vmem:[%s7907_s24 + $0x168] sm:$0xff]  }
 0xad8   : > { %v8466_v59 = vadd.f32 %v3095_v58, %v8144_v6  ;;  %v7552_v58 = vld [vmem:[%s7907_s24 + $0x170] sm:$0xff]  }
 0xada   : > { %v3101_v24 = vsel %vm1269_vm1, %v8466_v59, 0.0 }
 0xadb   : > { %3102 = vadd.xlane.f32.xlu1 %v3101_v24  ;;  %v7554_v24 = vld [vmem:[%s7907_s24 + $0x160] sm:$0xff]  }
 0xb60   : > { %v3100_v25 = vpop.xlane.xlu0 %3099 }
 0xb61   : > { %v3104_v36 = vmul.f32 0.015625, %v3100_v25  ;;  %v7555_v25 = vld [vmem:[%s9089_s29 + $0x78] sm:$0xff]  }
 0xb62   : > { %6690 = vmatprep.subr.bf16.mxu0 %v7555_v25 }
 0xb63   : > { %v3106_v2 = vsub.f32 %v8461_v57, %v3104_v36  ;;  %v7556_v36 = vld [vmem:[%s9089_s29 + $0x38] sm:$0xff]  }
 0xb64   : > { %v3103_v37 = vpop.xlane.xlu1 %3102  ;;  %6691 = vmatpush3.bf16.msra.mxu0 %v7556_v36 }
 0xb65   : > { %v3105_v12 = vmul.f32 0.015625, %v3103_v37  ;;  %v3108_v14 = vmul.f32 %v3106_v2, %v3106_v2  ;;  %v7558_v37 = vld [vmem:[%s9089_s29 + $0x30] sm:$0xff]  }
 0xb67   : > { %v3107_v62 = vsub.f32 %v8466_v59, %v3105_v12  ;;  %v3110_v6 = vsel %vm1269_vm1, %v3108_v14, 0.0  ;;  %v7559_v12 = vld [vmem:[%s9089_s29 + $0x68] sm:$0xff]  }
 0xb68   : > { %3111 = vadd.xlane.f32.xlu0 %v3110_v6  ;;  %v7560_v14 = vld [vmem:[%s9089_s29 + $0x28] sm:$0xff]   ;;  %v7562_v6 = vld [vmem:[%s9089_s29 + $0x20] sm:$0xff]  }
 0xb69   : > { %v3109_v63 = vmul.f32 %v3107_v62, %v3107_v62 }
 0xb6b   : > { %v3113_v0 = vsel %vm1269_vm1, %v3109_v63, 0.0  ;;  %v7563_v63 = vld [vmem:[%s9089_s29 + $0x58] sm:$0xff]  }
 0xb6c   : > { %3114 = vadd.xlane.f32.xlu1 %v3113_v0  ;;  %v7564_v0 = vld [vmem:[%s9089_s29 + $0x18] sm:$0xff]  }
 0xbf1   : > { %v3112_v21 = vpop.xlane.xlu0 %3111 }
 0xbf2   : > { %v3116_v27 = vmul.f32 0.015625, %v3112_v21  ;;  %v3155_v21 = vrot.slane %v3146_v18, %v8082_v11 }
 0xbf4   : > { %v3118_v29 = vadd.f32 1e-06, %v3116_v27 }
 0xbf5   : > { %v3115_v42 = vpop.xlane.xlu1 %3114 }
 0xbf6   : > { %7691 = vrsqrt.f32 %v3118_v29  ;;  %v3117_v30 = vmul.f32 0.015625, %v3115_v42 }
 0xbf8   : > { %v3119_v31 = vadd.f32 1e-06, %v3117_v30 }
 0xbfa   : > { %7693 = vrsqrt.f32 %v3119_v31 }
 0xc03   : > { %v7692_v41 = vpop.eup %7691 }
 0xc04   : > { %v3122_v39 = vmul.f32 %v7692_v41, %v3106_v2  ;;  %v7557_v2 = vld [vmem:[%s9089_s29 + $0x70] sm:$0xff]  }
 0xc05   : > { %6692 = vmatprep.subr.bf16.mxu0 %v7557_v2 }
 0xc06   : > { %v3129_v44 = vmul.f32 %v3128_v35, %v3122_v39  ;;  %6693 = vmatpush3.bf16.msra.mxu0 %v7558_v37 }
 0xc07   : > { %v7694_v45 = vpop.eup %7693  ;;  %6694 = vmatprep.subr.bf16.mxu0 %v7559_v12 }
 0xc08   : > { %v3123_v46 = vmul.f32 %v7694_v45, %v3107_v62  ;;  %v3135_v8 = vadd.f32 %v3134_v43, %v3129_v44  ;;  %v7561_v62 = vld [vmem:[%s9089_s29 + $0x60] sm:$0xff]  }
 0xc0a   : > { %v3130_v13 = vmul.f32 %v3128_v35, %v3123_v46  ;;  %6695 = vmatpush3.bf16.msra.mxu0 %v7560_v14 }
 0xc0b   : > { %6696 = vmatprep.subr.bf16.mxu0 %v7561_v62 }
 0xc0c   : > { %v3136_v4 = vadd.f32 %v3134_v43, %v3130_v13 }
 0xc0e   : > { %v3145_v7 = vpack.c.bf16 %v3136_v4, %v3135_v8  ;;  %6697 = vmatpush3.bf16.msra.mxu0 %v7562_v6 }
 0xc0f   : > { %6698 = vmatprep.subr.bf16.mxu0 %v7563_v63 }
 0xc10   : > { %6195 = vmatmul.mubr.msk.bf16.vlgmr.msra.gmra.mxu1 %vm1269_vm1, %v3145_v7 }
 0xc11   : > { %7094 = vmatpush3.bf16.msra.mxu1 %v7539_v16  ;;  %7101 = vmatprep.mubr.msk.bf16.mxu1 %vm7839_vm0, %v7838_v26 }
 0xc12   : > { %7095 = vmatprep.subr.bf16.mxu1 %v7838_v26  ;;  %6699 = vmatpush3.bf16.msra.mxu0 %v7564_v0 }
 0xc13   : > { %6700 = vmatprep.subr.bf16.mxu0 %v7565_v22 }
 0xc15   : > { %7096 = vmatpush3.bf16.msra.mxu1 %v7540_v60 }
 0xc16   : > { %7097 = vmatprep.subr.bf16.mxu1 %v7838_v26  ;;  %6701 = vmatpush3.bf16.msra.mxu0 %v7566_v23 }
 0xc17   : > { %6702 = vmatprep.subr.bf16.mxu0 %v7567_v28 }
 0xc19   : > { %7098 = vmatpush3.bf16.msra.mxu1 %v7541_v47 }
 0xc1a   : > { %7099 = vmatprep.subr.bf16.mxu1 %v7838_v26  ;;  %6703 = vmatpush3.bf16.msra.mxu0 %v7568_v1 }
 0xc1b   : > { %6704 = vmatprep.subr.bf16.mxu0 %v7569_v3 }
 0xc1d   : > { %7100 = vmatpush3.bf16.msra.mxu1 %v7542_v9 }
 0xc1e   : > { %7105 = vmatprep.subr.bf16.mxu1 %v7838_v26  ;;  %6705 = vmatpush3.bf16.msra.mxu0 %v7570_v10  ;;  %v7571_v10 = vld [vmem:[%s7907_s24 + $0x118] sm:$0xff]  }
 0xc1f   : > { %7117 = vmatprep.subr.bf16.mxu0 %v7838_v26 }
 0xc20   : > { %7102 = vmatmul.mubr.msk.bf16.vlgmr.msra.gmra.mxu1 %vm1269_vm1, %v8150_v17 }
 0xc21   : > { %7106 = vmatpush3.bf16.msra.mxu1 %v7543_v48  ;;  %7113 = vmatprep.mubr.msk.bf16.mxu1 %vm7839_vm0, %v7838_v26 }
 0xc22   : > { %7107 = vmatprep.subr.bf16.mxu1 %v7838_v26 }
 0xc25   : > { %7108 = vmatpush3.bf16.msra.mxu1 %v7544_v49 }
 0xc26   : > { %7109 = vmatprep.subr.bf16.mxu1 %v7838_v26 }
 0xc29   : > { %7110 = vmatpush3.bf16.msra.mxu1 %v7545_v50 }
 0xc2a   : > { %7111 = vmatprep.subr.bf16.mxu1 %v7838_v26 }
 0xc2d   : > { %7112 = vmatpush3.bf16.msra.mxu1 %v7546_v51 }
 0xc2e   : > { %7129 = vmatprep.subr.bf16.mxu1 %v7838_v26 }
 0xc30   : > { %7114 = vmatmul.mubr.msk.bf16.vlgmr.msra.gmra.mxu1 %vm1269_vm1, %v8150_v17 }
 0xc31   : > { %7130 = vmatpush3.bf16.msra.mxu1 %v7547_v52  ;;  %7137 = vmatprep.mubr.msk.bf16.mxu1 %vm7839_vm0, %v7838_v26 }
 0xc32   : > { %7131 = vmatprep.subr.bf16.mxu1 %v7838_v26 }
 0xc35   : > { %7132 = vmatpush3.bf16.msra.mxu1 %v7548_v53 }
 0xc36   : > { %7133 = vmatprep.subr.bf16.mxu1 %v7838_v26 }
 0xc39   : > { %7134 = vmatpush3.bf16.msra.mxu1 %v7549_v54 }
 0xc3a   : > { %7135 = vmatprep.subr.bf16.mxu1 %v7838_v26 }
 0xc3d   : > { %7136 = vmatpush3.bf16.msra.mxu1 %v7550_v55 }
 0xc3e   : > { %7153 = vmatprep.subr.bf16.mxu1 %v7838_v26 }
 0xc40   : > { %7138 = vmatmul.mubr.msk.bf16.vlgmr.msra.gmra.mxu1 %vm1269_vm1, %v8150_v17 }
 0xc41   : > { %7154 = vmatpush3.bf16.msra.mxu1 %v7551_v56  ;;  %7161 = vmatprep.mubr.msk.bf16.mxu1 %vm7839_vm0, %v7838_v26 }
 0xc42   : > { %7155 = vmatprep.subr.bf16.mxu1 %v7838_v26 }
 0xc45   : > { %7156 = vmatpush3.bf16.msra.mxu1 %v7552_v58 }
 0xc46   : > { %7157 = vmatprep.subr.bf16.mxu1 %v7838_v26 }
 0xc49   : > { %7158 = vmatpush3.bf16.msra.mxu1 %v7553_v61 }
 0xc4a   : > { %7159 = vmatprep.subr.bf16.mxu1 %v7838_v26 }
 0xc4d   : > { %7160 = vmatpush3.bf16.msra.mxu1 %v7554_v24 }
 0xc4e   : > { %7177 = vmatprep.subr.bf16.mxu1 %v7838_v26 }
 0xc50   : > { %7162 = vmatmul.mubr.msk.bf16.vlgmr.msra.gmra.mxu1 %vm1269_vm1, %v8150_v17 }
 0xc51   : > { %7185 = vmatprep.mubr.msk.bf16.mxu1 %vm7839_vm0, %v7838_v26 }
 0xcd0   : > { %v3235_v27 = vpop.f32.mrf.mxu1 }
 0xcd1   : > { %v3236_v29 = vadd.f32 %v3235_v27, %v3151_v19  ;;  %v7573_v27 = vld [vmem:[%s7907_s24 + $0x108] sm:$0xff]  }
 0xcd2   : > { %v3237_v42 = vpop.f32.mrf.mxu1 }
 0xcd3   : > { %v3248_v30 = vmul.f32 0.044715, %v3236_v29  ;;  %v3238_v31 = vadd.f32 %v3237_v42, %v3155_v21  ;;  %v3244_v63 = vmul.f32 0.5, %v3236_v29  ;;  %v7574_v42 = vld [vmem:[%s7907_s24 + $0x100] sm:$0xff]  }
 0xcd4   : > { %v3239_v32 = vpop.f32.mrf.mxu1 }
 0xcd5   : > { %v3252_v33 = vmul.f32 %v3248_v30, %v3236_v29  ;;  %v3249_v34 = vmul.f32 0.044715, %v3238_v31  ;;  %v3240_v38 = vadd.f32 %v3239_v32, %v3151_v19  ;;  %v3245_v12 = vmul.f32 0.5, %v3238_v31  ;;  %v7575_v32 = vld [vmem:[%s7907_s24 + $0x158] sm:$0xff]  }
 0xcd6   : > { %v3241_v40 = vpop.f32.mrf.mxu1 }
 0xcd7   : > { %v3256_v41 = vmul.f32 %v3252_v33, %v3236_v29  ;;  %v3253_v35 = vmul.f32 %v3249_v34, %v3238_v31  ;;  %v3250_v39 = vmul.f32 0.044715, %v3240_v38  ;;  %v3242_v43 = vadd.f32 %v3241_v40, %v3155_v21  ;;  %v7572_v21 = vld [vmem:[%s7907_s24 + $0x110] sm:$0xff]  }
 0xcd8   : > { %v3246_v2 = vmul.f32 0.5, %v3240_v38  ;;  %v7576_v34 = vld [vmem:[%s7907_s24 + $0x150] sm:$0xff]  }
 0xcd9   : > { %v3260_v44 = vadd.f32 %v3256_v41, %v3236_v29  ;;  %v3257_v45 = vmul.f32 %v3253_v35, %v3238_v31  ;;  %v3254_v46 = vmul.f32 %v3250_v39, %v3240_v38  ;;  %v3251_v8 = vmul.f32 0.044715, %v3242_v43  ;;  %v7578_v41 = vld [vmem:[%s7907_s24 + $0x140] sm:$0xff]  }
 0xcda   : > { %v3247_v14 = vmul.f32 0.5, %v3242_v43 }
 0xcdb   : > { %v3258_v13 = vmul.f32 %v3254_v46, %v3240_v38  ;;  %v3255_v4 = vmul.f32 %v3251_v8, %v3242_v43  ;;  %v3261_v16 = vadd.f32 %v3257_v45, %v3238_v31  ;;  %v3264_v7 = vmul.f32 0.7978846, %v3260_v44  ;;  %v6061_v44 = vld [vmem:[%s7912_s30 + $0x5] sm:$0x1]  ;;  %v6196_v8 = vld [vmem:[%s9091_s11] ss:$0 sm:$0xff] }
 0xcdc   : > { %v1836_v46 = vadd.f32 %v6061_v44, %v8240_v5  ;;  %s9093_s11 = sld [smem:[#allocation31_spill]] }
 0xcdd   : > { %v3262_v60 = vadd.f32 %v3258_v13, %v3240_v38  ;;  %v3259_v47 = vmul.f32 %v3255_v4, %v3242_v43  ;;  %v3265_v9 = vmul.f32 0.7978846, %v3261_v16  ;;  %v7577_v38 = vld [vmem:[%s7907_s24 + $0x148] sm:$0xff]  }
 0xcdf   : > { %v3266_v48 = vmul.f32 0.7978846, %v3262_v60  ;;  %v3263_v49 = vadd.f32 %v3259_v47, %v3242_v43  ;;  %7695 = vtanh.f32 %v3265_v9 }
 0xce0   : > { %7697 = vtanh.f32 %v3264_v7  ;;  %v8561_v50 = vpop.f32.mrf.mxu1  ;;  %v3461_v7 = vrot.slane %v1836_v46, %v8086_v15 }
 0xce1   : > { %7699 = vtanh.f32 %v3266_v48  ;;  %v3267_v51 = vmul.f32 0.7978846, %v3263_v49 }
 0xce2   : > { %v7103_v52 = vpop.f32.mrf.mxu1 }
 0xce3   : > { %7701 = vtanh.f32 %v3267_v51 }
 0xce4   : > { %v3538_v53 = vpop.f32.mrf.mxu1 }
 0xce6   : > { %v7104_v54 = vpop.f32.mrf.mxu1 }
 0xcec   : > { %v7696_v55 = vpop.eup %7695 }
 0xced   : > { %v7698_v56 = vpop.eup %7697  ;;  %v3273_v61 = vadd.f32 1.0, %v7696_v55 }
 0xcee   : > { %v7700_v58 = vpop.eup %7699  ;;  %v3272_v37 = vadd.f32 1.0, %v7698_v56 }
 0xcef   : > { %v3274_v24 = vadd.f32 1.0, %v7700_v58  ;;  %v3277_v22 = vmul.f32 %v3273_v61, %v3245_v12 }
 0xcf0   : > { %v7702_v25 = vpop.eup %7701  ;;  %v8563_v36 = vpop.f32.mrf.mxu1  ;;  %v3276_v1 = vmul.f32 %v3272_v37, %v3244_v63 }
 0xcf1   : > { %v3275_v62 = vadd.f32 1.0, %v7702_v25  ;;  %v3278_v0 = vmul.f32 %v3274_v24, %v3246_v2 }
 0xcf2   : > { %v7115_v6 = vpop.f32.mrf.mxu1 }
 0xcf3   : > { %v3279_v23 = vmul.f32 %v3275_v62, %v3247_v14  ;;  %v3312_v19 = vpack.c.bf16 %v3278_v0, %v3276_v1  ;;  %v7580_v1 = vld [vmem:[%s7927_s20 + $0x58] sm:$0xff]  }
 0xcf4   : > { %v3613_v28 = vpop.f32.mrf.mxu1  ;;  %7178 = vmatpush3.bf16.msra.mxu1 %v7580_v1 }
 0xcf5   : > { %v3313_v3 = vpack.c.bf16 %v3279_v23, %v3277_v22  ;;  %v7579_v28 = vld [vmem:[%s9061_s6 + $0x58] sm:$0xff]   ;;  %7179 = vmatprep.subr.bf16.mxu1 %v7838_v26 }
 0xcf6   : > { %v7116_v18 = vpop.f32.mrf.mxu1 }
 0xcf7   : > { %3449 = vmatprep.mubr.bf16.mxu0 %v3313_v3  ;;  %v7581_v3 = vld [vmem:[%s9061_s6 + $0x50] sm:$0xff]   ;;  %v7583_v18 = vld [vmem:[%s9061_s6 + $0x48] sm:$0xff]  }
 0xcf8   : > { %3450 = vmatmul.mubr.bf16.vlgmr.msra.gmra.mxu0 %v3312_v19  ;;  %v7584_v19 = vld [vmem:[%s7927_s20 + $0x48] sm:$0xff]  }
 0xcf9   : > { %7118 = vmatpush3.bf16.msra.mxu0 %v7571_v10  ;;  %7125 = vmatprep.mubr.msk.bf16.mxu0 %vm7839_vm0, %v7838_v26  ;;  %v7582_v10 = vld [vmem:[%s7927_s20 + $0x50] sm:$0xff]  }
 0xcfa   : > { %7119 = vmatprep.subr.bf16.mxu0 %v7838_v26  ;;  %7180 = vmatpush3.bf16.msra.mxu1 %v7582_v10 }
 0xcfb   : > { %7181 = vmatprep.subr.bf16.mxu1 %v7838_v26 }
 0xcfd   : > { %7120 = vmatpush3.bf16.msra.mxu0 %v7572_v21  ;;  %v7585_v21 = vld [vmem:[%s9061_s6 + $0x40] sm:$0xff]  }
 0xcfe   : > { %7121 = vmatprep.subr.bf16.mxu0 %v7838_v26  ;;  %7182 = vmatpush3.bf16.msra.mxu1 %v7584_v19 }
 0xcff   : > { %7183 = vmatprep.subr.bf16.mxu1 %v7838_v26 }
 0xd00   : > { %v8572_v29 = vpop.f32.mrf.mxu1 }
 0xd01   : > { %7122 = vmatpush3.bf16.msra.mxu0 %v7573_v27  ;;  %v7586_v27 = vld [vmem:[%s7927_s20 + $0x40] sm:$0xff]  }
 0xd02   : > { %v7139_v30 = vpop.f32.mrf.mxu1  ;;  %7123 = vmatprep.subr.bf16.mxu0 %v7838_v26  ;;  %7184 = vmatpush3.bf16.msra.mxu1 %v7586_v27  ;;  %v8688_v27 = vld [vmem:[%s9081_s3] sm:$0xff] }
 0xd03   : > { %7201 = vmatprep.subr.bf16.mxu1 %v7838_v26 }
 0xd04   : > { %v3763_v31 = vpop.f32.mrf.mxu1 }
 0xd05   : > { %7124 = vmatpush3.bf16.msra.mxu0 %v7574_v42 }
 0xd06   : > { %v7140_v33 = vpop.f32.mrf.mxu1  ;;  %7141 = vmatprep.subr.bf16.mxu0 %v7838_v26 }
 0xd08   : > { %7126 = vmatmul.mubr.msk.bf16.vlgmr.msra.gmra.mxu0 %vm1269_vm1, %v8150_v17 }
 0xd09   : > { %7142 = vmatpush3.bf16.msra.mxu0 %v7575_v32  ;;  %7149 = vmatprep.mubr.msk.bf16.mxu0 %vm7839_vm0, %v7838_v26 }
 0xd0a   : > { %7143 = vmatprep.subr.bf16.mxu0 %v7838_v26 }
 0xd0d   : > { %7144 = vmatpush3.bf16.msra.mxu0 %v7576_v34 }
 0xd0e   : > { %7145 = vmatprep.subr.bf16.mxu0 %v7838_v26 }
 0xd10   : > { %v8586_v40 = vpop.f32.mrf.mxu1 }
 0xd11   : > { %7146 = vmatpush3.bf16.msra.mxu0 %v7577_v38  ;;  %v6235_v38 = vld [vmem:[%s7912_s30 + $0x7] sm:$0x1] }
 0xd12   : > { %v7163_v35 = vpop.f32.mrf.mxu1  ;;  %7147 = vmatprep.subr.bf16.mxu0 %v7838_v26 }
 0xd13   : > { %v6221_v35 = vld [vmem:[%s7912_s30 + $0x6] sm:$0x1] }
 0xd14   : > { %v3913_v39 = vpop.f32.mrf.mxu1 }
 0xd15   : > { %7148 = vmatpush3.bf16.msra.mxu0 %v7578_v41  ;;  %v3611_v41 = vadd.f32 %v6235_v38, %v8563_v36  ;;  %v7587_v36 = vld [vmem:[%s9062_s4 + $0x58] sm:$0xff]   ;;  %v6321_v38 = vld [vmem:[%s9084_s9 + $0x2] ss:$0 sm:$0xff] }
 0xd16   : > { %v7164_v43 = vpop.f32.mrf.mxu1  ;;  %7165 = vmatprep.subr.bf16.mxu0 %v7838_v26 }
 0xd17   : > { %v3942_v39 = vadd.f32 1.0, %v3611_v41  ;;  %v3536_v43 = vadd.f32 %v6221_v35, %v8561_v50  ;;  %v7589_v50 = vld [vmem:[%s9062_s4 + $0x50] sm:$0xff]  }
 0xd18   : > { %7150 = vmatmul.mubr.msk.bf16.vlgmr.msra.gmra.mxu0 %vm1269_vm1, %v8150_v17 }
 0xd19   : > { %7173 = vmatprep.mubr.msk.bf16.mxu0 %vm7839_vm0, %v7838_v26  ;;  %7166 = vmatpush3.bf16.msra.mxu0 %v7579_v28 }
 0xd1a   : > { %7167 = vmatprep.subr.bf16.mxu0 %v7838_v26 }
 0xd1d   : > { %7168 = vmatpush3.bf16.msra.mxu0 %v7581_v3 }
 0xd1e   : > { %7169 = vmatprep.subr.bf16.mxu0 %v7838_v26 }
 0xd21   : > { %7170 = vmatpush3.bf16.msra.mxu0 %v7583_v18 }
 0xd22   : > { %7171 = vmatprep.subr.bf16.mxu0 %v7838_v26 }
 0xd25   : > { %7172 = vmatpush3.bf16.msra.mxu0 %v7585_v21 }
 0xd26   : > { %7189 = vmatprep.subr.bf16.mxu0 %v7838_v26 }
 0xdb8   : > { %v6706_v45 = vpop.f32.mrf.mxu0 }
 0xdba   : > { %v6707_v13 = vpop.f32.mrf.mxu0 }
 0xdbb   : > { %v6708_v4 = vadd.f32 %v6707_v13, %v6706_v45  ;;  %v3946_v45 = vrot.slane %v3942_v39, %v8086_v15 }
 0xdbc   : > { %v6709_v16 = vpop.f32.mrf.mxu0 }
 0xdbd   : > { %v3452_v60 = vadd.f32 %v6708_v4, %v6196_v8 }
 0xdbe   : > { %v6710_v47 = vpop.f32.mrf.mxu0 }
 0xdbf   : > { %v3462_v9 = vmul.f32 %v3461_v7, %v3452_v60  ;;  %v6711_v48 = vadd.f32 %v6710_v47, %v6709_v16 }
 0xdc1   : > { %v3455_v49 = vadd.f32 %v6711_v48, %v6196_v8  ;;  %v8600_v51 = vadd.f32 %v3462_v9, %v8461_v57  ;;  %v3952_v8 = vrot.slane %v3536_v43, %v8086_v15  ;;  %v7588_v9 = vld [vmem:[%s9077_s2 + $0x58] sm:$0xff]  }
 0xdc3   : > { %v3463_v52 = vmul.f32 %v3461_v7, %v3455_v49  ;;  %v3916_v53 = vsel %vm1269_vm1, %v8600_v51, 0.0  ;;  %v7590_v49 = vld [vmem:[%s9077_s2 + $0x50] sm:$0xff]  }
 0xdc4   : > { %3917 = vadd.xlane.f32.xlu0 %v3916_v53  ;;  %v7592_v53 = vld [vmem:[%s9077_s2 + $0x48] sm:$0xff]  }
 0xdc5   : > { %v8605_v5 = vadd.f32 %v3463_v52, %v8466_v59  ;;  %v7591_v52 = vld [vmem:[%s9062_s4 + $0x48] sm:$0xff]  }
 0xdc7   : > { %v3919_v54 = vsel %vm1269_vm1, %v8605_v5, 0.0 }
 0xdc8   : > { %v8609_v55 = vpop.f32.mrf.mxu0  ;;  %3920 = vadd.xlane.f32.xlu1 %v3919_v54  ;;  %v7593_v54 = vld [vmem:[%s9062_s4 + $0x40] sm:$0xff]  }
 0xdca   : > { %v7127_v56 = vpop.f32.mrf.mxu0 }
 0xdcb   : > { %v7594_v56 = vld [vmem:[%s9077_s2 + $0x40] sm:$0xff]  }
 0xdcc   : > { %v3688_v58 = vpop.f32.mrf.mxu0 }
 0xdcd   : > { %v7595_v58 = vld [vmem:[%s9078_s23 + $0x58] sm:$0xff]  }
 0xdce   : > { %v7128_v61 = vpop.f32.mrf.mxu0 }
 0xdcf   : > { %v7596_v61 = vld [vmem:[%s9078_s23 + $0x50] sm:$0xff]  }
 0xdd8   : > { %v8611_v24 = vpop.f32.mrf.mxu0 }
 0xdda   : > { %v7151_v57 = vpop.f32.mrf.mxu0 }
 0xddb   : > { %v7597_v57 = vld [vmem:[%s9078_s23 + $0x48] sm:$0xff]  }
 0xddc   : > { %v3838_v25 = vpop.f32.mrf.mxu0 }
 0xddd   : > { %v7598_v25 = vld [vmem:[%s9078_s23 + $0x40] sm:$0xff]  }
 0xdde   : > { %v7152_v2 = vpop.f32.mrf.mxu0 }
 0xe4d   : > { %v3918_v37 = vpop.xlane.xlu0 %3917 }
 0xe4e   : > { %v3922_v12 = vmul.f32 0.015625, %v3918_v37 }
 0xe50   : > { %v3924_v59 = vsub.f32 %v8600_v51, %v3922_v12 }
 0xe51   : > { %v3921_v14 = vpop.xlane.xlu1 %3920 }
 0xe52   : > { %v3923_v62 = vmul.f32 0.015625, %v3921_v14  ;;  %v3926_v6 = vmul.f32 %v3924_v59, %v3924_v59 }
 0xe54   : > { %v3925_v63 = vsub.f32 %v8605_v5, %v3923_v62  ;;  %v3928_v0 = vsel %vm1269_vm1, %v3926_v6, 0.0 }
 0xe55   : > { %3929 = vadd.xlane.f32.xlu0 %v3928_v0  ;;  %v6336_v0 = vld [vmem:[%s9079_s16 + $0x2] ss:$0 sm:$0xff] }
 0xe56   : > { %v3927_v22 = vmul.f32 %v3925_v63, %v3925_v63 }
 0xe58   : > { %v3931_v23 = vsel %vm1269_vm1, %v3927_v22, 0.0  ;;  %v6351_v22 = vld [vmem:[%s9080_s22 + $0x2] ss:$0 sm:$0xff] }
 0xe59   : > { %3932 = vadd.xlane.f32.xlu1 %v3931_v23 }
 0xede   : > { %v3930_v42 = vpop.xlane.xlu0 %3929 }
 0xedf   : > { %v3934_v30 = vmul.f32 0.015625, %v3930_v42 }
 0xee1   : > { %v3936_v31 = vadd.f32 1e-06, %v3934_v30  ;;  %v8692_v30 = vld [vmem:[%s9082_s5] sm:$0xff] }
 0xee2   : > { %v3933_v32 = vpop.xlane.xlu1 %3932 }
 0xee3   : > { %7703 = vrsqrt.f32 %v3936_v31  ;;  %v3935_v33 = vmul.f32 0.015625, %v3933_v32 }
 0xee5   : > { %v3937_v34 = vadd.f32 1e-06, %v3935_v33 }
 0xee7   : > { %7705 = vrsqrt.f32 %v3937_v34  ;;  %v6306_v34 = vld [vmem:[%s9083_s8 + $0x2] ss:$0 sm:$0xff] }
 0xef0   : > { %v7704_v44 = vpop.eup %7703 }
 0xef1   : > { %v3940_v46 = vmul.f32 %v7704_v44, %v3924_v59  ;;  %v8698_v44 = vld [vmem:[%s9081_s3 + $0x8] sm:$0xff] }
 0xef3   : > { %v3947_v13 = vmul.f32 %v3946_v45, %v3940_v46  ;;  %v8702_v46 = vld [vmem:[%s9082_s5 + $0x8] sm:$0xff]  ;;  %s6566_s5 = sshll.u32 %s8040_s0, 8  ;;  %s7841_s0 = smov [#allocation2]  }
 0xef4   : > { %v7706_v4 = vpop.eup %7705 }
 0xef5   : > { %v3953_v16 = vadd.f32 %v3952_v8, %v3947_v13  ;;  %v3941_v7 = vmul.f32 %v7706_v4, %v3925_v63 }
 0xef7   : > { %v3948_v60 = vmul.f32 %v3946_v45, %v3941_v7 }
 0xef9   : > { %v3954_v47 = vadd.f32 %v3952_v8, %v3948_v60 }
 0xefb   : > { %v8641_v48 = vpack.c.bf16 %v3954_v47, %v3953_v16 }
 0xefd   : > { %7174 = vmatmul.mubr.msk.bf16.vlgmr.msra.gmra.mxu0 %vm1269_vm1, %v8641_v48  ;;  %7186 = vmatmul.mubr.msk.bf16.vlgmr.msra.gmra.mxu1 %vm1269_vm1, %v8641_v48 }
 0xefe   : > { %7190 = vmatpush3.bf16.msra.mxu0 %v7587_v36  ;;  %7202 = vmatpush3.bf16.msra.mxu1 %v7588_v9 }
 0xeff   : > { %7191 = vmatprep.subr.bf16.mxu0 %v7838_v26  ;;  %7203 = vmatprep.subr.bf16.mxu1 %v7838_v26 }
 0xf00   : > { %7197 = vmatprep.mubr.msk.bf16.mxu0 %vm7839_vm0, %v7838_v26  ;;  %7209 = vmatprep.mubr.msk.bf16.mxu1 %vm7839_vm0, %v7838_v26 }
 0xf02   : > { %7192 = vmatpush3.bf16.msra.mxu0 %v7589_v50  ;;  %7204 = vmatpush3.bf16.msra.mxu1 %v7590_v49 }
 0xf03   : > { %7193 = vmatprep.subr.bf16.mxu0 %v7838_v26  ;;  %7205 = vmatprep.subr.bf16.mxu1 %v7838_v26 }
 0xf06   : > { %7194 = vmatpush3.bf16.msra.mxu0 %v7591_v52  ;;  %7206 = vmatpush3.bf16.msra.mxu1 %v7592_v53 }
 0xf07   : > { %7195 = vmatprep.subr.bf16.mxu0 %v7838_v26  ;;  %7207 = vmatprep.subr.bf16.mxu1 %v7838_v26 }
 0xf0a   : > { %7196 = vmatpush3.bf16.msra.mxu0 %v7593_v54  ;;  %7208 = vmatpush3.bf16.msra.mxu1 %v7594_v56  ;;  %v6366_v56 = vld [vmem:[%s9085_s13 + $0x2] ss:$0 sm:$0xff] }
 0xf0b   : > { %7213 = vmatprep.subr.bf16.mxu0 %v7838_v26  ;;  %7225 = vmatprep.subr.bf16.mxu1 %v7838_v26 }
 0xf0d   : > { %7198 = vmatmul.mubr.msk.bf16.vlgmr.msra.gmra.mxu0 %vm1269_vm1, %v8641_v48  ;;  %7210 = vmatmul.mubr.msk.bf16.vlgmr.msra.gmra.mxu1 %vm1269_vm1, %v8641_v48 }
 0xf0e   : > { %7214 = vmatpush3.bf16.msra.mxu0 %v7595_v58  ;;  %7221 = vmatprep.mubr.msk.bf16.mxu0 %vm7839_vm0, %v7838_v26 }
 0xf0f   : > { %7215 = vmatprep.subr.bf16.mxu0 %v7838_v26  ;;  %7227 = vmatprep.mubr.msk.bf16.mxu1 %vm7839_vm0, %v7838_v26 }
 0xf12   : > { %7216 = vmatpush3.bf16.msra.mxu0 %v7596_v61  ;;  %v7599_v61 = vld [vmem:[%s9061_s6 + $0x78] sm:$0xff]  }
 0xf13   : > { %7217 = vmatprep.subr.bf16.mxu0 %v7838_v26 }
 0xf16   : > { %7218 = vmatpush3.bf16.msra.mxu0 %v7597_v57 }
 0xf17   : > { %7219 = vmatprep.subr.bf16.mxu0 %v7838_v26 }
 0xf1a   : > { %7220 = vmatpush3.bf16.msra.mxu0 %v7598_v25 }
 0xf1b   : > { %7231 = vmatprep.subr.bf16.mxu0 %v7838_v26 }
 0xf1d   : > { %7222 = vmatmul.mubr.msk.bf16.vlgmr.msra.gmra.mxu0 %vm1269_vm1, %v8641_v48 }
 0xf1e   : > { %7233 = vmatprep.mubr.msk.bf16.mxu0 %vm7839_vm0, %v7838_v26 }
 0xfbd   : > { %v4034_v2 = vpop.f32.mrf.mxu0  ;;  %v4116_v37 = vpop.f32.mrf.mxu1 }
 0xfbe   : > { %v4035_v13 = vadd.f32 %v6306_v34, %v4034_v2  ;;  %v4117_v4 = vadd.f32 %v6321_v38, %v4116_v37 }
 0xfbf   : > { %v7175_v12 = vpop.f32.mrf.mxu0  ;;  %v7187_v59 = vpop.f32.mrf.mxu1 }
 0xfc0   : > { %v4369_v9 = vmul.f32 %v8688_v27, %v4035_v13  ;;  %v4371_v50 = vmul.f32 %v8692_v30, %v4117_v4  ;;  %v7600_v59 = vld [vmem:[%s9061_s6 + $0x70] sm:$0xff]  }
 0xfc1   : > { %v4037_v14 = vpop.f32.mrf.mxu0  ;;  %v4119_v62 = vpop.f32.mrf.mxu1 }
 0xfc2   : > { %v4038_v39 = vadd.f32 %v6306_v34, %v4037_v14  ;;  %v4120_v43 = vadd.f32 %v6321_v38, %v4119_v62  ;;  %v4373_v54 = vadd.f32 %v4371_v50, %v4369_v9  ;;  %v7601_v62 = vld [vmem:[%s9061_s6 + $0x68] sm:$0xff]  }
 0xfc3   : > { %v7176_v6 = vpop.f32.mrf.mxu0  ;;  %v7188_v63 = vpop.f32.mrf.mxu1 }
 0xfc4   : > { %v4370_v60 = vmul.f32 %v8698_v44, %v4038_v39  ;;  %v4372_v47 = vmul.f32 %v8702_v46, %v4120_v43  ;;  %v7602_v6 = vld [vmem:[%s9061_s6 + $0x60] sm:$0xff]   ;;  %v7603_v63 = vld [vmem:[%s9062_s4 + $0x78] sm:$0xff]   ;;  %s8962_s6 = scalar_lea.hbm %s8017_s17, %s6566_s5 }
 0xfc6   : > { %v4374_v52 = vadd.f32 %v4372_v47, %v4370_v60 }
 0xfc8   : > { %v4381_v57 = vpack.c.bf16 %v4374_v52, %v4373_v54 }
 0xfcd   : > { %v4198_v23 = vpop.f32.mrf.mxu0  ;;  %v4280_v28 = vpop.f32.mrf.mxu1 }
 0xfce   : > { %v4199_v1 = vadd.f32 %v6336_v0, %v4198_v23  ;;  %v4281_v3 = vadd.f32 %v6351_v22, %v4280_v28  ;;  %v7606_v23 = vld [vmem:[%s9062_s4 + $0x60] sm:$0xff]   ;;  %v7607_v28 = vld [vmem:[%s9078_s23 + $0x78] sm:$0xff]  }
 0xfcf   : > { %v7199_v10 = vpop.f32.mrf.mxu0  ;;  %v7211_v18 = vpop.f32.mrf.mxu1 }
 0xfd0   : > { %v4375_v42 = vmul.f32 %v8688_v27, %v4199_v1  ;;  %v4377_v31 = vmul.f32 %v8692_v30, %v4281_v3  ;;  %v7608_v1 = vld [vmem:[%s9078_s23 + $0x70] sm:$0xff]   ;;  %v7609_v3 = vld [vmem:[%s9078_s23 + $0x68] sm:$0xff]   ;;  %v7610_v10 = vld [vmem:[%s9078_s23 + $0x60] sm:$0xff]  }
 0xfd1   : > { %v4201_v19 = vpop.f32.mrf.mxu0  ;;  %v4283_v21 = vpop.f32.mrf.mxu1 }
 0xfd2   : > { %v4202_v32 = vadd.f32 %v6336_v0, %v4201_v19  ;;  %v4284_v33 = vadd.f32 %v6351_v22, %v4283_v21  ;;  %v4379_v16 = vadd.f32 %v4377_v31, %v4375_v42  ;;  %v7604_v0 = vld [vmem:[%s9062_s4 + $0x70] sm:$0xff]   ;;  %v7605_v22 = vld [vmem:[%s9062_s4 + $0x68] sm:$0xff]  }
 0xfd3   : > { %v7200_v41 = vpop.f32.mrf.mxu0  ;;  %v7212_v35 = vpop.f32.mrf.mxu1 }
 0xfd4   : > { %v4376_v45 = vmul.f32 %v8698_v44, %v4202_v32  ;;  %v4378_v8 = vmul.f32 %v8702_v46, %v4284_v33 }
 0xfd6   : > { %v4380_v7 = vadd.f32 %v4378_v8, %v4376_v45 }
 0xfd8   : > { %v4382_v36 = vpack.c.bf16 %v4380_v7, %v4379_v16  ;;  %v6447_v16 = vld [vmem:[%s9085_s13 + $0x3] ss:$0 sm:$0xff] }
 0xfda   : > { %v4387_v49 = vsel %vm2299_vm3, %v4382_v36, 0 }
 0xfdb   : > { %7226 = vmatpush3.bf16.xpose.msra.mxu1 %v4387_v49 }
 0xfdc   : > { %7237 = vmatprep.subr.bf16.mxu1 %v7838_v26 }
 0xfdd   : > { %v4362_v53 = vpop.f32.mrf.mxu0 }
 0xfde   : > { %v4363_v2 = vadd.f32 %v6366_v56, %v4362_v53 }
 0xfdf   : > { %v7223_v58 = vpop.f32.mrf.mxu0 }
 0xfe1   : > { %v4365_v25 = vpop.f32.mrf.mxu0 }
 0xfe2   : > { %v4366_v37 = vadd.f32 %v6366_v56, %v4365_v25  ;;  %7228 = vmatmul.mubr.msk.bf16.vlgmr.msra.gmra.mxu1 %vm2299_vm3, %v4381_v57 }
 0xfe3   : > { %v7224_v12 = vpop.f32.mrf.mxu0  ;;  %7238 = vmatpush3.bf16.msra.mxu1 %v7599_v61  ;;  %7245 = vmatprep.mubr.msk.bf16.mxu1 %vm7839_vm0, %v7838_v26 }
 0xfe4   : > { %v4455_v14 = vpack.c.bf16 %v4366_v37, %v4363_v2  ;;  %7239 = vmatprep.subr.bf16.mxu1 %v7838_v26 }
 0xfe6   : > { %7232 = vmatpush3.bf16.msra.mxu0 %v4455_v14 }
 0xfe7   : > { %7240 = vmatpush3.bf16.msra.mxu1 %v7600_v59  ;;  %7249 = vmatprep.subr.bf16.mxu0 %v7838_v26 }
 0xfe8   : > { %7241 = vmatprep.subr.bf16.mxu1 %v7838_v26 }
 0xfeb   : > { %7242 = vmatpush3.bf16.msra.mxu1 %v7601_v62 }
 0xfec   : > { %7243 = vmatprep.subr.bf16.mxu1 %v7838_v26 }
 0xfef   : > { %7244 = vmatpush3.bf16.msra.mxu1 %v7602_v6 }
 0xff0   : > { %7261 = vmatprep.subr.bf16.mxu1 %v7838_v26 }
 0xff2   : > { %7246 = vmatmul.mubr.msk.bf16.vlgmr.msra.gmra.mxu1 %vm1269_vm1, %v8641_v48 }
 0xff3   : > { %7262 = vmatpush3.bf16.msra.mxu1 %v7603_v63  ;;  %7269 = vmatprep.mubr.msk.bf16.mxu1 %vm7839_vm0, %v7838_v26  ;;  %v7611_v63 = vld [vmem:[%s7927_s20 + $0x78] sm:$0xff]  }
 0xff4   : > { %7263 = vmatprep.subr.bf16.mxu1 %v7838_v26 }
 0xff7   : > { %7264 = vmatpush3.bf16.msra.mxu1 %v7604_v0 }
 0xff8   : > { %7265 = vmatprep.subr.bf16.mxu1 %v7838_v26 }
 0xffb   : > { %7266 = vmatpush3.bf16.msra.mxu1 %v7605_v22  ;;  %v7612_v22 = vld [vmem:[%s7927_s20 + $0x70] sm:$0xff]  }
 0xffc   : > { %7267 = vmatprep.subr.bf16.mxu1 %v7838_v26 }
 0xfff   : > { %7268 = vmatpush3.bf16.msra.mxu1 %v7606_v23  ;;  %v7613_v23 = vld [vmem:[%s7927_s20 + $0x68] sm:$0xff]  }
0x1000   : > { %7285 = vmatprep.subr.bf16.mxu1 %v7838_v26 }
0x1002   : > { %7270 = vmatmul.mubr.msk.bf16.vlgmr.msra.gmra.mxu1 %vm1269_vm1, %v8641_v48 }
0x1003   : > { %7286 = vmatpush3.bf16.msra.mxu1 %v7607_v28  ;;  %7293 = vmatprep.mubr.msk.bf16.mxu1 %vm7839_vm0, %v7838_v26  ;;  %v7614_v28 = vld [vmem:[%s7927_s20 + $0x60] sm:$0xff]  }
0x1004   : > { %7287 = vmatprep.subr.bf16.mxu1 %v7838_v26 }
0x1007   : > { %7288 = vmatpush3.bf16.msra.mxu1 %v7608_v1  ;;  %v7615_v1 = vld [vmem:[%s9077_s2 + $0x78] sm:$0xff]  }
0x1008   : > { %7289 = vmatprep.subr.bf16.mxu1 %v7838_v26 }
0x100b   : > { %7290 = vmatpush3.bf16.msra.mxu1 %v7609_v3  ;;  %v7616_v3 = vld [vmem:[%s9077_s2 + $0x70] sm:$0xff]  }
0x100c   : > { %7291 = vmatprep.subr.bf16.mxu1 %v7838_v26 }
0x100f   : > { %7292 = vmatpush3.bf16.msra.mxu1 %v7610_v10  ;;  %v7617_v10 = vld [vmem:[%s9077_s2 + $0x68] sm:$0xff]  }
0x1010   : > { %7309 = vmatprep.subr.bf16.mxu1 %v7838_v26 }
0x1012   : > { %7294 = vmatmul.mubr.msk.bf16.vlgmr.msra.gmra.mxu1 %vm1269_vm1, %v8641_v48 }
0x1013   : > { %7313 = vmatprep.mubr.msk.bf16.mxu1 %vm7839_vm0, %v7838_v26 }
0x10a2   : > { %v4423_v18 = vpop.f32.mrf.mxu1 }
0x10a3   : > { %v4430_v19 = vmul.f32 0.17677669, %v4423_v18  ;;  %v7618_v18 = vld [vmem:[%s9077_s2 + $0x60] sm:$0xff]   ;;  %s9094_s2 = smov %s9093_s11 }
0x10a4   : > { %v7229_v21 = vpop.f32.mrf.mxu1 }
0x10a5   : > { %v4432_v42 = vsel %vm1340_vm2, %v4430_v19, -inf }
0x10a6   : > { %4433 = vmax.xlane.f32.xlu0 %v4432_v42  ;;  %v4426_v31 = vpop.f32.mrf.mxu1 }
0x10a7   : > { %v4431_v32 = vmul.f32 0.17677669, %v4426_v31 }
0x10a8   : > { %v7230_v33 = vpop.f32.mrf.mxu1 }
0x10a9   : > { %v4435_v34 = vsel %vm1340_vm2, %v4431_v32, -inf  ;;  %v6402_v33 = vld [vmem:[%s9084_s9 + $0x3] ss:$0 sm:$0xff]  ;;  %s7747_s9 = sshll.u32 %s7841_s0, 4  ;;  %s7748_s9 = int_to_ptr.vmem [resolvable:$false] %s7747_s9 }
0x10aa   : > { %4436 = vmax.xlane.f32.xlu1 %v4435_v34  ;;  %v6387_v34 = vld [vmem:[%s9083_s8 + $0x3] ss:$0 sm:$0xff] }
0x10b2   : > { %v8754_v38 = vpop.f32.mrf.mxu1 }
0x10b4   : > { %v7247_v41 = vpop.f32.mrf.mxu1 }
0x10b6   : > { %v8756_v35 = vpop.f32.mrf.mxu1 }
0x10b8   : > { %v7248_v39 = vpop.f32.mrf.mxu1 }
0x10c2   : > { %v8758_v43 = vpop.f32.mrf.mxu1 }
0x10c4   : > { %v7271_v45 = vpop.f32.mrf.mxu1 }
0x10c6   : > { %v8760_v8 = vpop.f32.mrf.mxu1 }
0x10c8   : > { %v7272_v13 = vpop.f32.mrf.mxu1 }
0x10c9   : > { %v4585_v13 = vadd.f32 %v6387_v34, %v8756_v35 }
0x10d2   : > { %v4909_v4 = vpop.f32.mrf.mxu1 }
0x10d3   : > { %v8763_v47 = vadd.f32 %v6447_v16, %v4909_v4 }
0x10d4   : > { %v7295_v7 = vpop.f32.mrf.mxu1 }
0x10d6   : > { %v4912_v60 = vpop.f32.mrf.mxu1 }
0x10d7   : > { %v8765_v36 = vadd.f32 %v6447_v16, %v4912_v60 }
0x10d8   : > { %v7296_v9 = vpop.f32.mrf.mxu1 }
0x10d9   : > { %v5002_v50 = vpack.c.bf16 %v8765_v36, %v8763_v47 }
0x112f   : > { %v4434_v49 = vpop.xlane.xlu0 %4433 }
0x1130   : > { %v4438_v52 = vsub.f32 %v4430_v19, %v4434_v49  ;;  %v4917_v49 = vmul.f32 %v8698_v44, %v4585_v13 }
0x1132   : > { %v4440_v53 = vmul.f32 1.442695, %v4438_v52 }
0x1133   : > { %v4437_v54 = vpop.xlane.xlu1 %4436 }
0x1134   : > { %7707 = vpow2.f32 %v4440_v53  ;;  %v4439_v56 = vsub.f32 %v4431_v32, %v4437_v54 }
0x1136   : > { %v4442_v58 = vmul.f32 1.442695, %v4439_v56 }
0x1138   : > { %7709 = vpow2.f32 %v4442_v58  ;;  %v6432_v58 = vld [vmem:[%s9080_s22 + $0x3] ss:$0 sm:$0xff] }
0x1141   : > { %v7708_v61 = vpop.eup %7707 }
0x1142   : > { %v4444_v57 = vsel %vm1340_vm2, %v7708_v61, 0.0 }
0x1143   : > { %4445 = vadd.xlane.f32.xlu0 %v4444_v57 }
0x1145   : > { %v7710_v25 = vpop.eup %7709 }
0x1146   : > { %v4447_v2 = vsel %vm1340_vm2, %v7710_v25, 0.0 }
0x1147   : > { %4448 = vadd.xlane.f32.xlu1 %v4447_v2 }
0x11cc   : > { %v4446_v37 = vpop.xlane.xlu0 %4445 }
0x11cd   : > { %7711 = vrcp.f32 %v4446_v37 }
0x11d0   : > { %v4449_v12 = vpop.xlane.xlu1 %4448 }
0x11d1   : > { %7713 = vrcp.f32 %v4449_v12 }
0x11da   : > { %v7712_v59 = vpop.eup %7711 }
0x11db   : > { %v4452_v62 = vmul.f32 %v7712_v59, %v7708_v61  ;;  %v6417_v61 = vld [vmem:[%s9079_s16 + $0x3] ss:$0 sm:$0xff] }
0x11dc   : > { %v4746_v35 = vadd.f32 %v6417_v61, %v8758_v43  ;;  %v4749_v2 = vadd.f32 %v6417_v61, %v8760_v8 }
0x11de   : > { %v7714_v14 = vpop.eup %7713 }
0x11df   : > { %v4453_v6 = vmul.f32 %v7714_v14, %v7710_v25 }
0x11e1   : > { %v4454_v0 = vpack.c.bf16 %v4453_v6, %v4452_v62  ;;  %v4922_v62 = vmul.f32 %v8688_v27, %v4746_v35  ;;  %v4923_v6 = vmul.f32 %v8698_v44, %v4749_v2  ;;  %v6466_v2 = vld [vmem:[%s9087_s19 + $0x1] ss:$0 sm:$0xff] }
0x11e3   : > { %7234 = vmatmul.mubr.msk.bf16.vlgmr.msra.gmra.mxu0 %vm1340_vm2, %v4454_v0 }
0x11e4   : > { %7250 = vmatpush3.bf16.msra.mxu0 %v7611_v63  ;;  %7257 = vmatprep.mubr.msk.bf16.mxu0 %vm7839_vm0, %v7838_v26 }
0x11e5   : > { %7251 = vmatprep.subr.bf16.mxu0 %v7838_v26 }
0x11e8   : > { %7252 = vmatpush3.bf16.msra.mxu0 %v7612_v22 }
0x11e9   : > { %7253 = vmatprep.subr.bf16.mxu0 %v7838_v26 }
0x11ec   : > { %7254 = vmatpush3.bf16.msra.mxu0 %v7613_v23 }
0x11ed   : > { %7255 = vmatprep.subr.bf16.mxu0 %v7838_v26 }
0x11f0   : > { %7256 = vmatpush3.bf16.msra.mxu0 %v7614_v28 }
0x11f1   : > { %7273 = vmatprep.subr.bf16.mxu0 %v7838_v26 }
0x11f3   : > { %7258 = vmatmul.mubr.msk.bf16.vlgmr.msra.gmra.mxu0 %vm1269_vm1, %v8641_v48 }
0x11f4   : > { %7274 = vmatpush3.bf16.msra.mxu0 %v7615_v1  ;;  %7281 = vmatprep.mubr.msk.bf16.mxu0 %vm7839_vm0, %v7838_v26 }
0x11f5   : > { %7275 = vmatprep.subr.bf16.mxu0 %v7838_v26 }
0x11f8   : > { %7276 = vmatpush3.bf16.msra.mxu0 %v7616_v3 }
0x11f9   : > { %7277 = vmatprep.subr.bf16.mxu0 %v7838_v26 }
0x11fc   : > { %7278 = vmatpush3.bf16.msra.mxu0 %v7617_v10 }
0x11fd   : > { %7279 = vmatprep.subr.bf16.mxu0 %v7838_v26 }
0x1200   : > { %7280 = vmatpush3.bf16.msra.mxu0 %v7618_v18 }
0x1201   : > { %7297 = vmatprep.subr.bf16.mxu0 %v7838_v26 }
0x1203   : > { %7282 = vmatmul.mubr.msk.bf16.vlgmr.msra.gmra.mxu0 %vm1269_vm1, %v8641_v48  ;;  %v4582_v48 = vadd.f32 %v6387_v34, %v8754_v38 }
0x1204   : > { %7299 = vmatprep.mubr.msk.bf16.mxu0 %vm7839_vm0, %v7838_v26 }
0x1205   : > { %v4916_v9 = vmul.f32 %v8688_v27, %v4582_v48 }
0x12a3   : > { %v8798_v19 = vpop.f32.mrf.mxu0 }
0x12a5   : > { %v7235_v21 = vpop.f32.mrf.mxu0 }
0x12a7   : > { %v8800_v42 = vpop.f32.mrf.mxu0 }
0x12a8   : > { %v4505_v31 = vpack.c.bf16 %v8800_v42, %v8798_v19 }
0x12a9   : > { %v7236_v32 = vpop.f32.mrf.mxu0 }
0x12b3   : > { %v4663_v41 = vpop.f32.mrf.mxu0 }
0x12b4   : > { %v4664_v39 = vadd.f32 %v6402_v33, %v4663_v41 }
0x12b5   : > { %v7259_v45 = vpop.f32.mrf.mxu0 }
0x12b6   : > { %v4918_v16 = vmul.f32 %v8692_v30, %v4664_v39 }
0x12b7   : > { %v4666_v4 = vpop.f32.mrf.mxu0 }
0x12b8   : > { %v4667_v7 = vadd.f32 %v6402_v33, %v4666_v4  ;;  %v4920_v53 = vadd.f32 %v4918_v16, %v4916_v9  ;;  %v7620_v9 = vld [vmem:[%s9086_s14 + $0x20] sm:$0xff]  }
0x12b9   : > { %v7260_v60 = vpop.f32.mrf.mxu0 }
0x12ba   : > { %v4919_v52 = vmul.f32 %v8702_v46, %v4667_v7  ;;  %v7619_v7 = vld [vmem:[%s9086_s14 + $0x28] sm:$0xff]  }
0x12bc   : > { %v4921_v54 = vadd.f32 %v4919_v52, %v4917_v49  ;;  %v7621_v49 = vld [vmem:[%s9086_s14 + $0x38] sm:$0xff]   ;;  %v7622_v52 = vld [vmem:[%s9086_s14 + $0x30] sm:$0xff]  }
0x12bd   : > { %7310 = vmatpush3.bf16.msra.mxu1 %v7621_v49 }
0x12be   : > { %v4928_v56 = vpack.c.bf16 %v4921_v54, %v4920_v53  ;;  %7311 = vmatprep.subr.bf16.mxu1 %v7838_v26 }
0x12c1   : > { %7312 = vmatpush3.bf16.msra.mxu1 %v7622_v52 }
0x12c3   : > { %v4827_v57 = vpop.f32.mrf.mxu0 }
0x12c4   : > { %v4828_v38 = vadd.f32 %v6432_v58, %v4827_v57 }
0x12c5   : > { %v7283_v25 = vpop.f32.mrf.mxu0 }
0x12c6   : > { %v4924_v12 = vmul.f32 %v8692_v30, %v4828_v38  ;;  %v6249_v38 = vld [vmem:[%s7912_s30 + $0x8] sm:$0x1] }
0x12c7   : > { %v4830_v37 = vpop.f32.mrf.mxu0  ;;  %v3686_v25 = vadd.f32 %v6249_v38, %v8609_v55 }
0x12c8   : > { %v4831_v59 = vadd.f32 %v6432_v58, %v4830_v37  ;;  %v4926_v0 = vadd.f32 %v4924_v12, %v4922_v62 }
0x12c9   : > { %v7284_v14 = vpop.f32.mrf.mxu0 }
0x12ca   : > { %v4925_v63 = vmul.f32 %v8702_v46, %v4831_v59  ;;  %v5178_v59 = vrot.slane %v3686_v25, %v8086_v15  ;;  %v7637_v25 = vld [vmem:[%s9094_s2 + $0x8] sm:$0xff]  }
0x12cc   : > { %v4927_v22 = vadd.f32 %v4925_v63, %v4923_v6 }
0x12ce   : > { %v4929_v23 = vpack.c.bf16 %v4927_v22, %v4926_v0 }
0x12d0   : > { %v4934_v28 = vsel %vm2299_vm3, %v4929_v23, 0 }
0x12d1   : > { %7298 = vmatpush3.bf16.xpose.msra.mxu0 %v4934_v28 }
0x12d2   : > { %7303 = vmatprep.subr.bf16.mxu0 %v7838_v26 }
0x12d8   : > { %7300 = vmatmul.mubr.msk.bf16.vlgmr.msra.gmra.mxu0 %vm2299_vm3, %v4928_v56 }
0x12d9   : > { %7304 = vmatpush3.bf16.msra.mxu0 %v5002_v50  ;;  %7305 = vmatprep.mubr.msk.bf16.mxu0 %vm7839_vm0, %v7838_v26 }
0x12da   : > { %7317 = vmatprep.subr.bf16.mxu0 %v7838_v26 }
0x1398   : > { %v4970_v27 = vpop.f32.mrf.mxu0 }
0x1399   : > { %v4977_v30 = vmul.f32 0.17677669, %v4970_v27 }
0x139a   : > { %v7301_v44 = vpop.f32.mrf.mxu0 }
0x139b   : > { %v4979_v46 = vsel %vm1340_vm2, %v4977_v30, -inf }
0x139c   : > { %4980 = vmax.xlane.f32.xlu0 %v4979_v46  ;;  %v4973_v43 = vpop.f32.mrf.mxu0 }
0x139d   : > { %v4978_v8 = vmul.f32 0.17677669, %v4973_v43 }
0x139e   : > { %v7302_v1 = vpop.f32.mrf.mxu0 }
0x139f   : > { %v4982_v3 = vsel %vm1340_vm2, %v4978_v8, -inf }
0x13a0   : > { %4983 = vmax.xlane.f32.xlu1 %v4982_v3 }
0x1425   : > { %v4981_v10 = vpop.xlane.xlu0 %4980 }
0x1426   : > { %v4985_v47 = vsub.f32 %v4977_v30, %v4981_v10 }
0x1428   : > { %v4987_v36 = vmul.f32 1.442695, %v4985_v47  ;;  %v7625_v47 = vld [vmem:[%s9088_s25 + $0x74] ss:$8 sps:$4 sm:$0xff]  }
0x1429   : > { %v4984_v50 = vpop.xlane.xlu1 %4983  ;;  %5296 = vmatprep.subr.bf16.mxu1 %v7625_v47 }
0x142a   : > { %7715 = vpow2.f32 %v4987_v36  ;;  %v4986_v18 = vsub.f32 %v4978_v8, %v4984_v50  ;;  %v7623_v36 = vld [vmem:[%s9088_s25 + $0x70] ss:$8 sps:$4 sm:$0xff]   ;;  %v7628_v50 = vld [vmem:[%s9088_s25 + $0x64] ss:$8 sps:$4 sm:$0xff]  }
0x142c   : > { %v4989_v21 = vmul.f32 1.442695, %v4986_v18  ;;  %v7626_v18 = vld [vmem:[%s9088_s25 + $0x60] ss:$8 sps:$4 sm:$0xff]  }
0x142e   : > { %7717 = vpow2.f32 %v4989_v21  ;;  %v7631_v21 = vld [vmem:[%s9088_s25 + $0x54] ss:$8 sps:$4 sm:$0xff]  }
0x1437   : > { %v7716_v32 = vpop.eup %7715 }
0x1438   : > { %v4991_v33 = vsel %vm1340_vm2, %v7716_v32, 0.0 }
0x1439   : > { %4992 = vadd.xlane.f32.xlu0 %v4991_v33  ;;  %v7632_v33 = vld [vmem:[%s9088_s25 + $0x40] ss:$8 sps:$4 sm:$0xff]  }
0x143b   : > { %v7718_v34 = vpop.eup %7717 }
0x143c   : > { %v4994_v41 = vsel %vm1340_vm2, %v7718_v34, 0.0 }
0x143d   : > { %4995 = vadd.xlane.f32.xlu1 %v4994_v41 }
0x14c2   : > { %v4993_v39 = vpop.xlane.xlu0 %4992 }
0x14c3   : > { %7719 = vrcp.f32 %v4993_v39 }
0x14c6   : > { %v4996_v45 = vpop.xlane.xlu1 %4995 }
0x14c7   : > { %7721 = vrcp.f32 %v4996_v45 }
0x14d0   : > { %v7720_v48 = vpop.eup %7719 }
0x14d1   : > { %v4999_v4 = vmul.f32 %v7720_v48, %v7716_v32  ;;  %v7629_v32 = vld [vmem:[%s9088_s25 + $0x50] ss:$8 sps:$4 sm:$0xff]  }
0x14d4   : > { %v7722_v13 = vpop.eup %7721 }
0x14d5   : > { %v5000_v16 = vmul.f32 %v7722_v13, %v7718_v34  ;;  %v7634_v34 = vld [vmem:[%s9088_s25 + $0x44] ss:$8 sps:$4 sm:$0xff]  }
0x14d7   : > { %v5001_v60 = vpack.c.bf16 %v5000_v16, %v4999_v4  ;;  %v6277_v16 = vld [vmem:[%s7912_s30 + $0xa] sm:$0x1] }
0x14d9   : > { %7306 = vmatmul.mubr.msk.bf16.vlgmr.msra.gmra.mxu0 %vm1340_vm2, %v5001_v60  ;;  %v6263_v60 = vld [vmem:[%s7912_s30 + $0x9] sm:$0x1] }
0x14da   : > { %7318 = vmatpush3.bf16.msra.mxu0 %v7619_v7  ;;  %7321 = vmatprep.mubr.msk.bf16.mxu0 %vm7839_vm0, %v7838_v26  ;;  %v3836_v7 = vadd.f32 %v6277_v16, %v8611_v24  ;;  %v3761_v49 = vadd.f32 %v6263_v60, %v8572_v29  ;;  %v7636_v29 = vld [vmem:[%s9094_s2 + $0x10] sm:$0xff]  }
0x14db   : > { %7319 = vmatprep.subr.bf16.mxu0 %v7838_v26 }
0x14de   : > { %7320 = vmatpush3.bf16.msra.mxu0 %v7620_v9  ;;  %v5209_v9 = vadd.f32 1.0, %v3836_v7 }
0x14e1   : > { %7322 = vmatmul.mubr.msk.bf16.vlgmr.msra.gmra.mxu0 %vm2299_vm3, %v4505_v31 }
0x1599   : > { %v5040_v53 = vpop.f32.mrf.mxu0 }
0x159b   : > { %v7307_v54 = vpop.f32.mrf.mxu0 }
0x159d   : > { %v5043_v56 = vpop.f32.mrf.mxu0 }
0x159e   : > { %v5052_v58 = vpack.c.bf16 %v5043_v56, %v5040_v53  ;;  %v5213_v53 = vrot.slane %v5209_v9, %v8086_v15  ;;  %v5219_v56 = vrot.slane %v3761_v49, %v8086_v15 }
0x159f   : > { %v7308_v61 = vpop.f32.mrf.mxu0 }
0x15a0   : > { %7314 = vmatmul.mubr.msk.bf16.vlgmr.msra.gmra.mxu1 %vm2299_vm3, %v5052_v58 }
0x15a1   : > { %v5158_v57 = vpop.f32.mrf.mxu0  ;;  %5320 = vmatprep.mubr.bf16.mxu1 %v7840_v20  ;;  %5297 = vmatpush1.bf16.msra.mxu1 %v7623_v36 }
0x15a2   : > { %5298 = vmatprep.subr.bf16.mxu1 %v7628_v50 }
0x15a3   : > { %v7323_v19 = vpop.f32.mrf.mxu0 }
0x15a5   : > { %v5161_v42 = vpop.f32.mrf.mxu0  ;;  %5299 = vmatpush1.bf16.msra.mxu1 %v7626_v18 }
0x15a6   : > { %5300 = vmatprep.subr.bf16.mxu1 %v7631_v21 }
0x15a7   : > { %v7324_v31 = vpop.f32.mrf.mxu0 }
0x15a8   : > { %v7635_v31 = vld [vmem:[%s9093_s11 + $0x18] sm:$0xff]   ;;  %s1029_s11 = sand.u32 1, %s7795_s10  }
0x15a9   : > { %5301 = vmatpush1.bf16.msra.mxu1 %v7629_v32  ;;  %s8965_s8 = scalar_lea.sflag [#allocation3], %s1029_s11 }
0x15aa   : > { %5302 = vmatprep.subr.bf16.mxu1 %v7634_v34 }
0x15ad   : > { %5303 = vmatpush1.bf16.msra.mxu1 %v7632_v33 }
0x15ae   : > { %7325 = vmatprep.subr.bf16.mxu1 %v7838_v26 }
0x1660   : > { %v5102_v35 = vpop.f32.mrf.mxu1 }
0x1661   : > { %v5159_v37 = vadd.f32 %v5158_v57, %v5102_v35  ;;  %v7638_v35 = vld [vmem:[%s9094_s2] sm:$0xff]  }
0x1662   : > { %v7315_v12 = vpop.f32.mrf.mxu1 }
0x1663   : > { %v5173_v14 = vadd.f32 %v6466_v2, %v5159_v37  ;;  %v7640_v37 = vld [vmem:[%s9094_s2 + $0x30] sm:$0xff]   ;;  %v7641_v12 = vld [vmem:[%s9094_s2 + $0x28] sm:$0xff]  }
0x1664   : > { %v5105_v62 = vpop.f32.mrf.mxu1 }
0x1665   : > { %v5179_v6 = vmul.f32 %v5178_v59, %v5173_v14  ;;  %v5162_v63 = vadd.f32 %v5161_v42, %v5105_v62  ;;  %v7643_v14 = vld [vmem:[%s9089_s29 + $0xf8] sm:$0xff]  }
0x1666   : > { %v7316_v0 = vpop.f32.mrf.mxu1  ;;  %v7644_v62 = vld [vmem:[%s9089_s29 + $0xb8] sm:$0xff]   ;;  %6806 = vmatprep.subr.bf16.mxu0 %v7643_v14 }
0x1667   : > { %v5174_v22 = vadd.f32 %v6466_v2, %v5162_v63  ;;  %v8853_v20 = vadd.f32 %v5179_v6, %v8600_v51  ;;  %v7639_v2 = vld [vmem:[%s9094_s2 + $0x38] sm:$0xff]   ;;  %6807 = vmatpush3.bf16.msra.mxu0 %v7644_v62  ;;  %v7645_v6 = vld [vmem:[%s9089_s29 + $0xf0] sm:$0xff]   ;;  %v7647_v0 = vld [vmem:[%s9089_s29 + $0xe8] sm:$0xff]  }
0x1668   : > { %v7646_v63 = vld [vmem:[%s9089_s29 + $0xb0] sm:$0xff]   ;;  %6808 = vmatprep.subr.bf16.mxu0 %v7645_v6 }
0x1669   : > { %v5180_v23 = vmul.f32 %v5178_v59, %v5174_v22  ;;  %v5183_v28 = vsel %vm1269_vm1, %v8853_v20, 0.0  ;;  %v7642_v59 = vld [vmem:[%s9094_s2 + $0x20] sm:$0xff]   ;;  %v7648_v22 = vld [vmem:[%s9089_s29 + $0xa8] sm:$0xff]   ;;  %s5962_s2 = sshll.u32 %s1029_s11, 4 }
0x166a   : > { %5184 = vadd.xlane.f32.xlu0 %v5183_v28  ;;  %v7651_v28 = vld [vmem:[%s9089_s29 + $0xd8] sm:$0xff]   ;;  %s1031_s3 = scalar_lea.vmem [#allocation2], %s5962_s2 }
0x166b   : > { %v8858_v55 = vadd.f32 %v5180_v23, %v8605_v5  ;;  %6809 = vmatpush3.bf16.msra.mxu0 %v7646_v63  ;;  %v7649_v23 = vld [vmem:[%s9089_s29 + $0xe0] sm:$0xff]   ;;  %s5842_s4 = sshll.u32 %s1031_s3, 4  ;;  %s8959_s4 = int_to_ptr.vmem [resolvable:$true] %s5842_s4 }
0x166c   : > { %6810 = vmatprep.subr.bf16.mxu0 %v7647_v0  ;;  %s7743_s2 = scalar_lea.vmem %s8959_s4, 256  ;;  %p7750_p0 = scmp.lt.s32.totalorder %s8959_s4, %s7748_s9 }
0x166d   : > { %v5186_v27 = vsel %vm1269_vm1, %v8858_v55, 0.0  ;;  %p7744_p11 = scmp.ne.s32.totalorder %s8959_s4, %s7743_s2 }
0x166e   : > { %5187 = vadd.xlane.f32.xlu1 %v5186_v27  ;;  %v7652_v27 = vld [vmem:[%s9089_s29 + $0x98] sm:$0xff]  }
0x166f   : > { %6811 = vmatpush3.bf16.msra.mxu0 %v7648_v22  ;;  %p7745_p12 = pnand %p7744_p11, %p8057_p5 }
0x1670   : > { %6812 = vmatprep.subr.bf16.mxu0 %v7649_v23 }
0x1671   : > { %p7746_p13 = pneg %p7745_p12 }
0x16f3   : > { %v5185_v30 = vpop.xlane.xlu0 %5184 }
0x16f4   : > { %v5189_v44 = vmul.f32 0.015625, %v5185_v30  ;;  %v7653_v30 = vld [vmem:[%s9089_s29 + $0xd0] sm:$0xff]  }
0x16f6   : > { %v5191_v51 = vsub.f32 %v8853_v20, %v5189_v44  ;;  %v7654_v44 = vld [vmem:[%s9089_s29 + $0x90] sm:$0xff]  }
0x16f7   : > { %v5188_v46 = vpop.xlane.xlu1 %5187 }
0x16f8   : > { %v5190_v43 = vmul.f32 0.015625, %v5188_v46  ;;  %v5193_v8 = vmul.f32 %v5191_v51, %v5191_v51  ;;  %v7656_v46 = vld [vmem:[%s9089_s29 + $0x88] sm:$0xff]  }
0x16fa   : > { %v5192_v1 = vsub.f32 %v8858_v55, %v5190_v43  ;;  %v5195_v5 = vsel %vm1269_vm1, %v5193_v8, 0.0  ;;  %v7657_v43 = vld [vmem:[%s9089_s29 + $0xc0] sm:$0xff]  }
0x16fb   : > { %5196 = vadd.xlane.f32.xlu0 %v5195_v5  ;;  %v7658_v8 = vld [vmem:[%s9089_s29 + $0x80] sm:$0xff]  }
0x16fc   : > { %v5194_v3 = vmul.f32 %v5192_v1, %v5192_v1 }
0x16fe   : > { %v5198_v10 = vsel %vm1269_vm1, %v5194_v3, 0.0 }
0x16ff   : > { %5199 = vadd.xlane.f32.xlu1 %v5198_v10 }
0x1784   : > { %v5197_v41 = vpop.xlane.xlu0 %5196 }
0x1785   : > { %v5201_v39 = vmul.f32 0.015625, %v5197_v41 }
0x1787   : > { %v5203_v45 = vadd.f32 1e-06, %v5201_v39 }
0x1788   : > { %v5200_v48 = vpop.xlane.xlu1 %5199 }
0x1789   : > { %7723 = vrsqrt.f32 %v5203_v45  ;;  %v5202_v13 = vmul.f32 0.015625, %v5200_v48 }
0x178b   : > { %v5204_v4 = vadd.f32 1e-06, %v5202_v13 }
0x178d   : > { %7725 = vrsqrt.f32 %v5204_v4 }
0x1796   : > { %v7724_v52 = vpop.eup %7723 }
0x1797   : > { %v5207_v54 = vmul.f32 %v7724_v52, %v5191_v51  ;;  %v7655_v51 = vld [vmem:[%s9089_s29 + $0xc8] sm:$0xff]  }
0x1799   : > { %v5214_v58 = vmul.f32 %v5213_v53, %v5207_v54 }
0x179a   : > { %v7726_v61 = vpop.eup %7725 }
0x179b   : > { %v5208_v57 = vmul.f32 %v7726_v61, %v5192_v1  ;;  %v5220_v19 = vadd.f32 %v5219_v56, %v5214_v58  ;;  %v6475_v1 = vld [vmem:[%s9090_s26 + $0x2] sm:$0x3] }
0x179c   : > { %v5238_v5 = vrot.slane %v6475_v1, %v8086_v15  ;;  %v5242_v3 = vrot.slane %v6475_v1, %v8082_v11 }
0x179d   : > { %v5215_v42 = vmul.f32 %v5213_v53, %v5208_v57 }
0x179f   : > { %v5221_v24 = vadd.f32 %v5219_v56, %v5215_v42 }
0x17a1   : > { %v5231_v38 = vpack.c.bf16 %v5221_v24, %v5220_v19 }
0x17a3   : > { %6484 = vmatmul.mubr.msk.bf16.vlgmr.msra.gmra.mxu1 %vm1269_vm1, %v5231_v38 }
0x17a4   : > { %7326 = vmatpush3.bf16.msra.mxu1 %v7635_v31  ;;  %7333 = vmatprep.mubr.msk.bf16.mxu1 %vm7839_vm0, %v7838_v26 }
0x17a5   : > { %7327 = vmatprep.subr.bf16.mxu1 %v7838_v26 }
0x17a8   : > { %7328 = vmatpush3.bf16.msra.mxu1 %v7636_v29 }
0x17a9   : > { %7329 = vmatprep.subr.bf16.mxu1 %v7838_v26 }
0x17ac   : > { %7330 = vmatpush3.bf16.msra.mxu1 %v7637_v25 }
0x17ad   : > { %7331 = vmatprep.subr.bf16.mxu1 %v7838_v26 }
0x17b0   : > { %7332 = vmatpush3.bf16.msra.mxu1 %v7638_v35 }
0x17b1   : > { %7337 = vmatprep.subr.bf16.mxu1 %v7838_v26 }
0x17b3   : > { %7334 = vmatmul.mubr.msk.bf16.vlgmr.msra.gmra.mxu1 %vm1269_vm1, %v8150_v17 }
0x17b4   : > { %7338 = vmatpush3.bf16.msra.mxu1 %v7639_v2  ;;  %7345 = vmatprep.mubr.msk.bf16.mxu1 %vm7839_vm0, %v7838_v26 }
0x17b5   : > { %7339 = vmatprep.subr.bf16.mxu1 %v7838_v26 }
0x17b8   : > { %7340 = vmatpush3.bf16.msra.mxu1 %v7640_v37 }
0x17b9   : > { %7341 = vmatprep.subr.bf16.mxu1 %v7838_v26 }
0x17bc   : > { %7342 = vmatpush3.bf16.msra.mxu1 %v7641_v12 }
0x17bd   : > { %7343 = vmatprep.subr.bf16.mxu1 %v7838_v26 }
0x17c0   : > { %7344 = vmatpush3.bf16.msra.mxu1 %v7642_v59 }
0x17c3   : > { %7346 = vmatmul.mubr.msk.bf16.vlgmr.msra.gmra.mxu1 %vm1269_vm1, %v8150_v17  ;;  %v7650_v17 = vld [vmem:[%s9089_s29 + $0xa0] sm:$0xff]  }
0x17c4   : > { %6813 = vmatpush3.bf16.msra.mxu0 %v7650_v17 }
0x17c5   : > { %6814 = vmatprep.subr.bf16.mxu0 %v7651_v28 }
0x17c8   : > { %6815 = vmatpush3.bf16.msra.mxu0 %v7652_v27 }
0x17c9   : > { %6816 = vmatprep.subr.bf16.mxu0 %v7653_v30 }
0x17cc   : > { %6817 = vmatpush3.bf16.msra.mxu0 %v7654_v44 }
0x17cd   : > { %6818 = vmatprep.subr.bf16.mxu0 %v7655_v51 }
0x17d0   : > { %6819 = vmatpush3.bf16.msra.mxu0 %v7656_v46 }
0x17d1   : > { %6820 = vmatprep.subr.bf16.mxu0 %v7657_v43  ;;  %v6291_v43 = vld [vmem:[%s7912_s30 + $0xb] sm:$0x1] }
0x17d2   : > { %v3911_v1 = vadd.f32 %v6291_v43, %v8586_v40 }
0x17d4   : > { %6821 = vmatpush3.bf16.msra.mxu0 %v7658_v8 }
0x17d5   : > { %7349 = vmatprep.subr.bf16.mxu0 %v7838_v26 }
0x1863   : > { %v5322_v10 = vpop.f32.mrf.mxu1 }
0x1864   : > { %v5323_v47 = vadd.f32 %v5322_v10, %v5238_v5 }
0x1865   : > { %v5324_v36 = vpop.f32.mrf.mxu1 }
0x1866   : > { %v5335_v50 = vmul.f32 0.044715, %v5323_v47  ;;  %v5325_v18 = vadd.f32 %v5324_v36, %v5242_v3  ;;  %v5331_v22 = vmul.f32 0.5, %v5323_v47  ;;  %v5550_v36 = vrot.slane %v3911_v1, %v8086_v15 }
0x1867   : > { %v5326_v21 = vpop.f32.mrf.mxu1 }
0x1868   : > { %v5339_v32 = vmul.f32 %v5335_v50, %v5323_v47  ;;  %v5336_v33 = vmul.f32 0.044715, %v5325_v18  ;;  %v5327_v34 = vadd.f32 %v5326_v21, %v5238_v5  ;;  %v5332_v62 = vmul.f32 0.5, %v5325_v18  ;;  %v6518_v5 = vld [vmem:[%s9092_s18 + $0x1] ss:$0 sm:$0xff] }
0x1869   : > { %v5328_v41 = vpop.f32.mrf.mxu1 }
0x186a   : > { %v5343_v39 = vmul.f32 %v5339_v32, %v5323_v47  ;;  %v5340_v45 = vmul.f32 %v5336_v33, %v5325_v18  ;;  %v5337_v48 = vmul.f32 0.044715, %v5327_v34  ;;  %v5329_v13 = vadd.f32 %v5328_v41, %v5242_v3 }
0x186b   : > { %v5333_v59 = vmul.f32 0.5, %v5327_v34 }
0x186c   : > { %v5347_v4 = vadd.f32 %v5343_v39, %v5323_v47  ;;  %v5344_v16 = vmul.f32 %v5340_v45, %v5325_v18  ;;  %v5341_v7 = vmul.f32 %v5337_v48, %v5327_v34  ;;  %v5338_v60 = vmul.f32 0.044715, %v5329_v13 }
0x186d   : > { %v5334_v6 = vmul.f32 0.5, %v5329_v13 }
0x186e   : > { %v5345_v9 = vmul.f32 %v5341_v7, %v5327_v34  ;;  %v5342_v11 = vmul.f32 %v5338_v60, %v5329_v13  ;;  %v5348_v49 = vadd.f32 %v5344_v16, %v5325_v18  ;;  %v5351_v52 = vmul.f32 0.7978846, %v5347_v4 }
0x1870   : > { %v5349_v53 = vadd.f32 %v5345_v9, %v5327_v34  ;;  %v5346_v54 = vmul.f32 %v5342_v11, %v5329_v13  ;;  %v5352_v56 = vmul.f32 0.7978846, %v5348_v49 }
0x1872   : > { %v5353_v58 = vmul.f32 0.7978846, %v5349_v53  ;;  %v5350_v61 = vadd.f32 %v5346_v54, %v5329_v13  ;;  %7727 = vtanh.f32 %v5352_v56  ;;  %v7661_v53 = vld [vmem:[%s8007_s21 + $0x8] sm:$0xff]   ;;  %v7662_v54 = vld [vmem:[%s8007_s21] sm:$0xff]  }
0x1873   : > { %7729 = vtanh.f32 %v5351_v52  ;;  %v8925_v57 = vpop.f32.mrf.mxu1  ;;  %v7660_v52 = vld [vmem:[%s8007_s21 + $0x10] sm:$0xff]  }
0x1874   : > { %7731 = vtanh.f32 %v5353_v58  ;;  %v5354_v19 = vmul.f32 0.7978846, %v5350_v61 }
0x1875   : > { %v7335_v42 = vpop.f32.mrf.mxu1 }
0x1876   : > { %7733 = vtanh.f32 %v5354_v19 }
0x1877   : > { %v5625_v24 = vpop.f32.mrf.mxu1 }
0x1879   : > { %v7336_v31 = vpop.f32.mrf.mxu1 }
0x187a   : > { %v6548_v31 = vld [vmem:[%s9060_s12 + $0x1] sm:$0x1] }
0x187f   : > { %v7728_v38 = vpop.eup %7727 }
0x1880   : > { %v7730_v29 = vpop.eup %7729  ;;  %v5360_v35 = vadd.f32 1.0, %v7728_v38 }
0x1881   : > { %v7732_v25 = vpop.eup %7731  ;;  %v5359_v14 = vadd.f32 1.0, %v7730_v29  ;;  %v5563_v29 = vld [vmem:[%s9060_s12] sm:$0x1]  ;;  %s7749_s12 = scalar_lea.vmem %s7748_s9, 512 }
0x1882   : > { %v5361_v2 = vadd.f32 1.0, %v7732_v25  ;;  %v5364_v17 = vmul.f32 %v5360_v35, %v5332_v62  ;;  %v5623_v35 = vadd.f32 %v8925_v57, %v5563_v29  ;;  %v6554_v57 = vld [vmem:[%s8012_s27] ss:$0 sm:$0xff]  ;;  %p7751_p1 = scmp.lt.s32.totalorder %s7749_s12, %s7743_s2 }
0x1883   : > { %v7734_v37 = vpop.eup %7733  ;;  %v8927_v12 = vpop.f32.mrf.mxu1  ;;  %v5363_v30 = vmul.f32 %v5359_v14, %v5331_v22 }
0x1884   : > { %v5362_v63 = vadd.f32 1.0, %v7734_v37  ;;  %v5365_v23 = vmul.f32 %v5361_v2, %v5333_v59  ;;  %v5698_v38 = vadd.f32 %v6548_v31, %v8927_v12  ;;  %v5739_v59 = vrot.slane %v5623_v35, %v8086_v15  ;;  %p7752_p2 = por %p7751_p1, %p7750_p0 }
0x1885   : > { %v7347_v0 = vpop.f32.mrf.mxu1 }
0x1886   : > { %v5366_v28 = vmul.f32 %v5362_v63, %v5334_v6  ;;  %v5400_v46 = vpack.c.bf16 %v5365_v23, %v5363_v30  ;;  %v5729_v25 = vadd.f32 1.0, %v5698_v38  ;;  %p7753_p3 = pnand %p7752_p2, %p7746_p13 }
0x1887   : > { %v5700_v27 = vpop.f32.mrf.mxu1 }
0x1888   : > { %v5401_v44 = vpack.c.bf16 %v5366_v28, %v5364_v17 }
0x1889   : > { %v7348_v51 = vpop.f32.mrf.mxu1 }
0x188a   : > { %5538 = vmatprep.mubr.bf16.mxu0 %v5401_v44 }
0x188b   : > { %5539 = vmatmul.mubr.bf16.vlgmr.msra.gmra.mxu0 %v5400_v46 }
0x188c   : > { %7357 = vmatprep.mubr.msk.bf16.mxu0 %vm7839_vm0, %v7838_v26 }
0x194b   : > { %v6822_v8 = vpop.f32.mrf.mxu0 }
0x194d   : > { %v6823_v3 = vpop.f32.mrf.mxu0 }
0x194e   : > { %v6824_v10 = vadd.f32 %v6823_v3, %v6822_v8 }
0x194f   : > { %v6825_v47 = vpop.f32.mrf.mxu0 }
0x1950   : > { %v5541_v50 = vadd.f32 %v6824_v10, %v6518_v5 }
0x1951   : > { %v6826_v18 = vpop.f32.mrf.mxu0 }
0x1952   : > { %v6827_v21 = vadd.f32 %v6826_v18, %v6825_v47  ;;  %v5551_v32 = vmul.f32 %v5550_v36, %v5541_v50 }
0x1954   : > { %v5544_v33 = vadd.f32 %v6827_v21, %v6518_v5  ;;  %v5553_v34 = vadd.f32 %v5551_v32, %v8853_v20 }
0x1956   : > { %v5703_v41 = vsel %vm1269_vm1, %v5553_v34, 0.0  ;;  %v5552_v39 = vmul.f32 %v5550_v36, %v5544_v33 }
0x1957   : > { %5704 = vadd.xlane.f32.xlu0 %v5703_v41 }
0x1958   : > { %v5554_v40 = vadd.f32 %v5552_v39, %v8858_v55  ;;  %v7659_v55 = vld [vmem:[%s8007_s21 + $0x18] sm:$0xff]  }
0x1959   : > { %7350 = vmatpush3.bf16.msra.mxu0 %v7659_v55 }
0x195a   : > { %v5706_v45 = vsel %vm1269_vm1, %v5554_v40, 0.0  ;;  %7351 = vmatprep.subr.bf16.mxu0 %v7838_v26 }
0x195b   : > { %5707 = vadd.xlane.f32.xlu1 %v5706_v45 }
0x195d   : > { %7352 = vmatpush3.bf16.msra.mxu0 %v7660_v52 }
0x195e   : > { %7353 = vmatprep.subr.bf16.mxu0 %v7838_v26 }
0x1961   : > { %7354 = vmatpush3.bf16.msra.mxu0 %v7661_v53 }
0x1962   : > { %7355 = vmatprep.subr.bf16.mxu0 %v7838_v26  ;;  %v5733_v26 = vrot.slane %v5729_v25, %v8086_v15 }
0x1965   : > { %7356 = vmatpush3.bf16.msra.mxu0 %v7662_v54 }
0x19e0   : > { %v5705_v48 = vpop.xlane.xlu0 %5704 }
0x19e1   : > { %v5709_v13 = vmul.f32 0.015625, %v5705_v48 }
0x19e3   : > { %v5711_v4 = vsub.f32 %v5553_v34, %v5709_v13 }
0x19e4   : > { %v5708_v16 = vpop.xlane.xlu1 %5707 }
0x19e5   : > { %v5710_v7 = vmul.f32 0.015625, %v5708_v16  ;;  %v5713_v60 = vmul.f32 %v5711_v4, %v5711_v4 }
0x19e7   : > { %v5712_v20 = vsub.f32 %v5554_v40, %v5710_v7  ;;  %v5715_v9 = vsel %vm1269_vm1, %v5713_v60, 0.0 }
0x19e8   : > { %5716 = vadd.xlane.f32.xlu0 %v5715_v9 }
0x19e9   : > { %v5714_v11 = vmul.f32 %v5712_v20, %v5712_v20 }
0x19eb   : > { %v5718_v49 = vsel %vm1269_vm1, %v5714_v11, 0.0 }
0x19ec   : > { %5719 = vadd.xlane.f32.xlu1 %v5718_v49 }
0x1a71   : > { %v5717_v56 = vpop.xlane.xlu0 %5716 }
0x1a72   : > { %v5721_v58 = vmul.f32 0.015625, %v5717_v56 }
0x1a74   : > { %v5723_v61 = vadd.f32 1e-06, %v5721_v58 }
0x1a75   : > { %v5720_v19 = vpop.xlane.xlu1 %5719 }
0x1a76   : > { %7735 = vrsqrt.f32 %v5723_v61  ;;  %v5722_v42 = vmul.f32 0.015625, %v5720_v19 }
0x1a78   : > { %v5724_v24 = vadd.f32 1e-06, %v5722_v42 }
0x1a7a   : > { %7737 = vrsqrt.f32 %v5724_v24 }
0x1a83   : > { %v7736_v2 = vpop.eup %7735 }
0x1a84   : > { %v5727_v37 = vmul.f32 %v7736_v2, %v5711_v4 }
0x1a86   : > { %v5734_v14 = vmul.f32 %v5733_v26, %v5727_v37 }
0x1a87   : > { %v7738_v62 = vpop.eup %7737 }
0x1a88   : > { %v5728_v6 = vmul.f32 %v7738_v62, %v5712_v20  ;;  %v5740_v63 = vadd.f32 %v5739_v59, %v5734_v14 }
0x1a8a   : > { %v5735_v0 = vmul.f32 %v5733_v26, %v5728_v6 }
0x1a8c   : > { %v5741_v22 = vadd.f32 %v5739_v59, %v5735_v0 }
0x1a8e   : > { %v5750_v12 = vpack.c.bf16 %v5741_v22, %v5740_v63 }
0x1a90   : > { %7358 = vmatmul.mubr.msk.bf16.vlgmr.msra.gmra.mxu0 %vm1269_vm1, %v5750_v12 }
0x1b50   : > { %v5819_v23 = vpop.f32.mrf.mxu0 }
0x1b51   : > { %v5820_v17 = vadd.f32 %v6554_v57, %v5819_v23 }
0x1b52   : > { %v7359_v15 = vpop.f32.mrf.mxu0 }
0x1b53   : > { %5826 = vst.msk [vmem:[%s1031_s3] sm:$0xff] %vm1340_vm2, %v5820_v17 }
0x1b54   : > { %v5822_v28 = vpop.f32.mrf.mxu0 }
0x1b55   : > { %v5823_v27 = vadd.f32 %v6554_v57, %v5822_v28 }
0x1b56   : > { %v7360_v30 = vpop.f32.mrf.mxu0 }
0x1b57   : > { %5827 = vst.msk [vmem:[%s1031_s3 + $0x8] sm:$0xff] %vm1340_vm2, %v5823_v27 }
0x1b58   : > { %7756 = shalt.err (!%p7753_p3)
}
0x1b59   : > { %s7757_s5 = scalar_lea.hbm %s8962_s6, 256  ;;  %s7761_s3 = scalar_lea.hbm %s8017_s17, 512 }
0x1b5a   : > { %p7758_p4 = scmp.ne.s32.totalorder %s8962_s6, %s7757_s5  ;;  %p7762_p9 = scmp.lt.s32.totalorder %s8962_s6, %s8017_s17 }
0x1b5b   : > { %p7763_p10 = scmp.lt.s32.totalorder %s7761_s3, %s7757_s5 }
0x1b5c   : > { %p7759_p7 = pnand %p7758_p4, %p8057_p5 }
0x1b5d   : > { %p7764_p11 = por %p7763_p10, %p7762_p9 }
0x1b5e   : > { %p7760_p8 = pneg %p7759_p7 }
0x1b60   : > { %p7765_p12 = pnand %p7764_p11, %p7760_p8 }
0x1b62   : > { %7768 = shalt.err (!%p7765_p12)
}
0x1b63   : > { %s7842_s9 = smov 128   ;;  %s7843_s12 = smov 8  }
0x1b64   : > { %7361 = dma.vmem_to_hbm [thread:$0]  (%p8057_p5), %s8959_s4, 256, %s8962_s6, %s8965_s8, %s7842_s9, %s7842_s9, %s7843_s12  }
0x1b65 PF: > { %p7367_p13 = scmp.ge.s32.totalorder %s7803_s15, 2  ;;  %s5857_s11 = sand.u32 1, %s7791_s7  }
0x1b66   : > { %s5858_s2 = scalar_lea.sflag [#allocation3], %s5857_s11 }
0x1b67   : > { %p7364_p0 = pnand %p7367_p13, %p8061_p6 }
0x1b69   : > { %p7365_p1 = pneg %p7364_p0 }
0x1b6b   : > { %7786 = dma.done.wait (%p7365_p1), %s5858_s2, 256  }
0x1b6c   : > { %7788 = vsyncadd (%p7365_p1), %s5858_s2, 4294967040  ;;  %s9095_s15 = sld [smem:[#allocation34_spill]]  ;;  %s9098_s7 = smov %s7795_s10 }
0x1b6d   : > { %s9096_s0 = sld [smem:[#allocation33_spill]] }
0x1b6e   : > { %s9097_s11 = sld [smem:[#allocation35_spill]] }
0x1b72   : > { %p77_p2 = scmp.ge.s32.totalorder %s9095_s15, 4  }
0x1b73   : > { %s9099_s10 = smov %s9096_s0 }
0x1b74   :  { %79 = sbr.rel (!%p77_p2) target bundleno = 69 (0x45), region = 288 }
0x1b79   :  { %5863 = vsyncpa [#allocation3], 1 }
0x1b7a   :  { %5865 = vsyncpa [#allocation3 + $0x1], 1 }

</bundles_post_ra>
